<compile_context>
chip_gen: v7x
topology: tpu7x:2x2x1
jax: 0.10.0
libtpu: 0.0.40
codegen_flags: <defaults>
</compile_context>

<pallas_src>
import numpy as np
import jax
import jax.numpy as jnp
from jax.experimental import pallas as pl
from jax.experimental.pallas import tpu as pltpu

BN_EPS = 1e-5
LANE = 128


# ----------------------------------------------------------------------------
# Host-side operand preparation: lower every decoder op to lane-dense matmuls
# in the (rows=H, lanes=W*C) layout.
# ----------------------------------------------------------------------------
def _bilinear_matrix(insz, outsz):
    """(outsz, insz) interpolation matrix: bilinear, align_corners=True."""
    U = np.zeros((outsz, insz), np.float32)
    if insz == 1:
        U[:, 0] = 1.0
        return U
    pos = np.arange(outsz, dtype=np.float64) * (insz - 1) / (outsz - 1)
    lo = np.clip(np.floor(pos).astype(np.int64), 0, insz - 1)
    hi = np.minimum(lo + 1, insz - 1)
    frac = (pos - lo).astype(np.float32)
    for o in range(outsz):
        U[o, lo[o]] += 1.0 - frac[o]
        U[o, hi[o]] += frac[o]
    return U


def _w_upsample_matrix(Wi, Wo, C):
    """(Wi*C, Wo*C) matrix applying the W-axis bilinear interp per channel."""
    Uw = _bilinear_matrix(Wi, Wo)                      # (Wo, Wi)
    M = np.zeros((Wi, C, Wo, C), np.float32)
    for c in range(C):
        M[:, c, :, c] = Uw.T
    return M.reshape(Wi * C, Wo * C)


def _conv_dy_matrix(w_dy, Wo):
    """Per-vertical-tap conv matrix.

    w_dy: (3, Cin, Cout) — the taps of one kernel row (dy fixed, dx=0..2).
    Returns B of shape (Wo*Cin, Wo*Cout) such that, for a single image row x
    laid out channel-minor (w*Cin + ci),  x @ B  is that row's contribution of
    this vertical tap (horizontal zero padding baked in).
    """
    _, Cin, Cout = w_dy.shape
    B = np.zeros((Wo, Cin, Wo, Cout), np.float32)
    for dx in range(3):
        for wcol in range(Wo):
            wx = wcol + dx - 1
            if 0 <= wx < Wo:
                B[wx, :, wcol, :] += w_dy[dx]
    return B.reshape(Wo * Cin, Wo * Cout)


def _fold_bn(conv_bias, gamma, beta, rmean, rvar):
    scale = gamma / np.sqrt(rvar + BN_EPS)
    shift = (conv_bias - rmean) * scale + beta
    return scale.astype(np.float32), shift.astype(np.float32)


def make_params(key, nb_filter, num_classes):
    """Raw synthetic parameters mirroring the PyTorch module (eval-mode BN)."""
    params = {}
    specs = [
        (nb_filter[3] + nb_filter[4], nb_filter[3], nb_filter[3]),
        (nb_filter[2] + nb_filter[3], nb_filter[2], nb_filter[2]),
        (nb_filter[1] + nb_filter[2], nb_filter[1], nb_filter[1]),
        (nb_filter[0] + nb_filter[1], nb_filter[0], nb_filter[0]),
    ]
    for i, (cin, cmid, cout) in enumerate(specs):
        keys = jax.random.split(jax.random.fold_in(key, i), 12)
        params[f"dec{i}"] = dict(
            w1=0.1 * jax.random.normal(keys[0], (3, 3, cin, cmid), jnp.float32),
            b1=0.1 * jax.random.normal(keys[1], (cmid,), jnp.float32),
            g1=jax.random.uniform(keys[2], (cmid,), jnp.float32, 0.5, 1.5),
            be1=0.1 * jax.random.normal(keys[3], (cmid,), jnp.float32),
            rm1=0.1 * jax.random.normal(keys[4], (cmid,), jnp.float32),
            rv1=jax.random.uniform(keys[5], (cmid,), jnp.float32, 0.5, 1.5),
            w2=0.1 * jax.random.normal(keys[6], (3, 3, cmid, cout), jnp.float32),
            b2=0.1 * jax.random.normal(keys[7], (cout,), jnp.float32),
            g2=jax.random.uniform(keys[8], (cout,), jnp.float32, 0.5, 1.5),
            be2=0.1 * jax.random.normal(keys[9], (cout,), jnp.float32),
            rm2=0.1 * jax.random.normal(keys[10], (cout,), jnp.float32),
            rv2=jax.random.uniform(keys[11], (cout,), jnp.float32, 0.5, 1.5),
        )
    kf = jax.random.fold_in(key, 100)
    kw, kb = jax.random.split(kf)
    params["final"] = dict(
        w=0.1 * jax.random.normal(kw, (nb_filter[0], num_classes), jnp.float32),
        b=0.1 * jax.random.normal(kb, (num_classes,), jnp.float32))
    return params


def prepare_decoder_operands(params, nb_filter, num_classes, S):
    """Returns (per-stage static dims, final-stage dims, kernel weight ops)."""
    dims, uh_ops, wb_blocks = [], [], []
    ss_rows = np.zeros((8 * 4 + 8, LANE), np.float32)
    wb_off = 0
    for i in range(4):
        Ho = S >> (3 - i)
        Wo = Ho
        Hi, Wi = Ho // 2, Wo // 2
        Ce = nb_filter[3 - i]          # encoder-skip channels
        Cd = nb_filter[4 - i]          # upsampled-decoder channels
        Cm = nb_filter[3 - i]          # VGGBlock middle channels
        Co = nb_filter[3 - i]          # VGGBlock out channels
        assert Wo * Ce == LANE and Wi * Cd == LANE, "config lane width != 128"
        assert Wo * Cm == LANE and Wo * Co == LANE, "config lane width != 128"

        p = {k: np.asarray(v, np.float32)
             for k, v in params[f"dec{i}"].items()}
        s1, sh1 = _fold_bn(p["b1"], p["g1"], p["be1"], p["rm1"], p["rv1"])
        s2, sh2 = _fold_bn(p["b2"], p["g2"], p["be2"], p["rm2"], p["rv2"])

        # Per-dy conv matrices.  conv1 is split along Cin so the channel concat
        # [enc_skip || upsample] never materializes; the W-axis upsample matrix
        # is folded into the decoder-path conv1 matrices (UwC @ B1d).
        uwc = _w_upsample_matrix(Wi, Wo, Cd)            # (Wi*Cd, Wo*Cd)
        blocks = []
        for dy in range(3):                             # enc path: (Wo*Ce, Wo*Cm)
            blocks.append(_conv_dy_matrix(p["w1"][dy][:, :Ce, :], Wo))
        for dy in range(3):                             # dec path folded: (Wi*Cd, Wo*Cm)
            b1d = _conv_dy_matrix(p["w1"][dy][:, Ce:, :], Wo)
            blocks.append(uwc @ b1d)
        for dy in range(3):                             # conv2: (Wo*Cm, Wo*Co)
            blocks.append(_conv_dy_matrix(p["w2"][dy], Wo))
        stage_wb = np.concatenate(blocks, axis=0)

        ss_rows[8 * i + 0] = np.tile(s1, Wo)
        ss_rows[8 * i + 1] = np.tile(sh1, Wo)
        ss_rows[8 * i + 2] = np.tile(s2, Wo)
        ss_rows[8 * i + 3] = np.tile(sh2, Wo)

        dims.append(dict(Hi=Hi, Wi=Wi, Ho=Ho, Wo=Wo,
                         k1e=Wo * Ce, k1d=Wi * Cd, k2=Wo * Cm,
                         wb_off=wb_off, ss_off=8 * i))
        wb_blocks.append(stage_wb)
        wb_off += stage_wb.shape[0]
        uh_ops.append(jnp.asarray(_bilinear_matrix(Hi, Ho), jnp.float32))

    # Final 1x1 conv: block-diagonal (Wo*Co, Wo*ncp) matmul, classes padded to
    # ncp so the output is a full 128-lane store.
    Wo, Co = S, nb_filter[0]
    ncp = num_classes
    while (Wo * ncp) % LANE != 0:
        ncp += 1
    wf = np.asarray(params["final"]["w"], np.float32)   # (Co, ncls)
    bf = np.asarray(params["final"]["b"], np.float32)   # (ncls,)
    wf_p = np.zeros((Co, ncp), np.float32)
    wf_p[:, :num_classes] = wf
    bf_p = np.zeros((ncp,), np.float32)
    bf_p[:num_classes] = bf
    Bf = np.zeros((Wo, Co, Wo, ncp), np.float32)
    for w in range(Wo):
        Bf[w, :, w, :] = wf_p
    Bf = Bf.reshape(Wo * Co, Wo * ncp)
    assert Wo * Co == LANE and Wo * ncp == LANE

    fin = dict(wb_off=wb_off, kf=Wo * Co, fb_row=32, ncp=ncp)
    wb_blocks.append(Bf)
    ss_rows[32] = np.tile(bf_p, Wo)

    wb = np.concatenate(wb_blocks, axis=0)              # (4736, 128)
    ops = tuple(uh_ops) + (jnp.asarray(wb, jnp.bfloat16),
                           jnp.asarray(ss_rows, jnp.float32))
    return dims, fin, ops


# ----------------------------------------------------------------------------
# Pallas kernel (whole decoder, one batch element per grid step)
# ----------------------------------------------------------------------------
def _make_decoder_kernel(dims, fin):
    n_stage = len(dims)

    def _conv3(xb, wb_ref, off, K):
        """3x3 'same' conv via 3 per-dy matmuls on an UNSHIFTED bf16 LHS.

        Vertical taps are applied by sublane-shifting the f32 accumulators
        (zero boundary rows); horizontal taps/padding are baked into the
        host-built (K, LANE) matrices.
        """
        H = xb.shape[0]
        a = jnp.dot(xb, wb_ref[off:off + K, :],                     # dy=0: -> row h+1
                    preferred_element_type=jnp.float32)
        c = jnp.dot(xb, wb_ref[off + K:off + 2 * K, :],             # dy=1: -> row h
                    preferred_element_type=jnp.float32)
        b = jnp.dot(xb, wb_ref[off + 2 * K:off + 3 * K, :],         # dy=2: -> row h-1
                    preferred_element_type=jnp.float32)
        z = jnp.zeros((1, a.shape[1]), jnp.float32)
        return (jnp.concatenate([z, a[:H - 1, :]], axis=0) + c
                + jnp.concatenate([b[1:, :], z], axis=0))

    def kernel(*refs):
        x_ref = refs[0]
        enc_refs = refs[1:1 + n_stage]
        uh_refs = refs[1 + n_stage:1 + 2 * n_stage]
        wb_ref, ss_ref, o_ref = refs[-3], refs[-2], refs[-1]

        d = x_ref[0]                                    # (Hi0, Wi0*Cd0) f32
        for i, dm in enumerate(dims):
            off, so = dm["wb_off"], dm["ss_off"]
            k1e, k1d, k2 = dm["k1e"], dm["k1d"], dm["k2"]

            # --- H-axis 2x bilinear upsample (align_corners=True): one matmul.
            #     (W-axis upsample is folded into the conv1 weights below.)
            t = jnp.dot(uh_refs[i][...], d, preferred_element_type=jnp.float32)
            tb = t.astype(jnp.bfloat16)                 # (Ho, Wi*Cd)
            eb = enc_refs[i][0].astype(jnp.bfloat16)    # (Ho, Wo*Ce)

            # --- conv1 (3x3, pad=1) over [enc_skip || upsample] + BN + ReLU.
            acc1 = (_conv3(eb, wb_ref, off, k1e)
                    + _conv3(tb, wb_ref, off + 3 * k1e, k1d))
            h1 = jnp.maximum(acc1 * ss_ref[so:so + 1, :]
                             + ss_ref[so + 1:so + 2, :], 0.0)

            # --- conv2 (3x3, pad=1) + BN + ReLU.
            acc2 = _conv3(h1.astype(jnp.bfloat16), wb_ref,
                          off + 3 * (k1e + k1d), k2)
            d = jnp.maximum(acc2 * ss_ref[so + 2:so + 3, :]
                            + ss_ref[so + 3:so + 4, :], 0.0)

        # --- final 1x1 conv (block-diagonal matmul, class-padded to 128 lanes).
        fo, kf, fr = fin["wb_off"], fin["kf"], fin["fb_row"]
        out = jnp.dot(d.astype(jnp.bfloat16), wb_ref[fo:fo + kf, :],
                      preferred_element_type=jnp.float32) + ss_ref[fr:fr + 1, :]
        o_ref[0] = out.astype(o_ref.dtype)

    return kernel


# ----------------------------------------------------------------------------
# Forward pass (mirrors UNetDecoderBlock.forward); one pallas_call total.
# ----------------------------------------------------------------------------
def build_forward(dims, fin, num_classes):
    n_stage = len(dims)
    Ho, Wo = dims[-1]["Ho"], dims[-1]["Wo"]
    ncp = fin["ncp"]

    @jax.jit
    def forward(x_nchw, enc_nchw, weight_ops):
        def to2d(t):  # NCHW -> (N, H, W*C), channel-minor lane layout
            n, c, h, w = t.shape
            return jnp.transpose(t, (0, 2, 3, 1)).reshape(n, h, w * c)

        x2d = to2d(x_nchw)
        e2d = [to2d(enc_nchw[3 - i]) for i in range(n_stage)]
        N = x2d.shape[0]

        operands = [x2d] + e2d + list(weight_ops)
        in_specs = [pl.BlockSpec((1,) + x2d.shape[1:], lambda n: (n, 0, 0))]
        in_specs += [pl.BlockSpec((1,) + e.shape[1:], lambda n: (n, 0, 0))
                     for e in e2d]
        in_specs += [pl.BlockSpec(w.shape, lambda n: (0, 0))
                     for w in weight_ops]
        out_spec = pl.BlockSpec((1, Ho, Wo * ncp), lambda n: (n, 0, 0))
        out_shape = jax.ShapeDtypeStruct((N, Ho, Wo * ncp), jnp.float32)

        # Advisory matmul-flop estimate for the XLA scheduler.
        flops = 0
        for dm in dims:
            flops += 2 * dm["Ho"] * dm["Hi"] * LANE            # H upsample
            flops += 9 * 2 * dm["Ho"] * LANE * LANE            # conv dots
        flops += 2 * Ho * LANE * LANE                          # final 1x1
        flops *= N
        bytes_accessed = int(sum(int(np.prod(o.shape)) * o.dtype.itemsize
                                 for o in operands)
                             + N * Ho * Wo * ncp * 4)

        out2d = pl.pallas_call(
            _make_decoder_kernel(dims, fin),
            out_shape=out_shape,
            grid=(N,),
            in_specs=in_specs,
            out_specs=out_spec,
            compiler_params=pltpu.CompilerParams(
                dimension_semantics=("parallel",),
                vmem_limit_bytes=32 * 1024 * 1024),
            cost_estimate=pl.CostEstimate(
                flops=int(flops), transcendentals=0,
                bytes_accessed=bytes_accessed),
        )(*operands)

        out = out2d.reshape(N, Ho, Wo, ncp)[..., :num_classes]
        return jnp.transpose(out, (0, 3, 1, 2))        # back to NCHW

    return forward


# ----------------------------------------------------------------------------
if __name__ == "__main__":
    config = {"num_classes": 3, "nb_filters": [4, 8, 16, 32, 64]}
    nb = config["nb_filters"]
    ncls = config["num_classes"]
    N, S = 2, 32  # batch, full-res spatial

    key = jax.random.PRNGKey(0)
    k_x, k_e0, k_e1, k_e2, k_e3, k_p = jax.random.split(key, 6)

    # PyTorch-convention NCHW inputs (bottleneck x + 4 encoder skips).
    x = jax.random.normal(k_x, (N, nb[4], S // 16, S // 16), jnp.float32)
    enc_output = [
        jax.random.normal(k_e0, (N, nb[0], S, S), jnp.float32),
        jax.random.normal(k_e1, (N, nb[1], S // 2, S // 2), jnp.float32),
        jax.random.normal(k_e2, (N, nb[2], S // 4, S // 4), jnp.float32),
        jax.random.normal(k_e3, (N, nb[3], S // 8, S // 8), jnp.float32),
    ]

    params = make_params(k_p, nb, ncls)
    dims, fin, weight_ops = prepare_decoder_operands(params, nb, ncls, S)
    forward = build_forward(dims, fin, ncls)

    out = forward(x, enc_output, weight_ops)
    out = jax.block_until_ready(out)

    assert out.shape == (N, ncls, S, S), out.shape
    assert bool(jnp.all(jnp.isfinite(out)))
    # TODO(synk): the per-dy conv matrices are still banded (density 3/W);
    # fully de-zeroed forms map poorly onto the MXU at these channel counts.
    print("KERNEL_OK")
</pallas_src>

<mosaic_0001>
module attributes {stable_mosaic.version = 11 : i64} {
  func.func @kernel(%arg0: i32, %arg1: memref<1x2x128xf32, #tpu.memory_space<vmem>>, %arg2: memref<1x4x128xf32, #tpu.memory_space<vmem>>, %arg3: memref<1x8x128xf32, #tpu.memory_space<vmem>>, %arg4: memref<1x16x128xf32, #tpu.memory_space<vmem>>, %arg5: memref<1x32x128xf32, #tpu.memory_space<vmem>>, %arg6: memref<4x2xf32, #tpu.memory_space<vmem>>, %arg7: memref<8x4xf32, #tpu.memory_space<vmem>>, %arg8: memref<16x8xf32, #tpu.memory_space<vmem>>, %arg9: memref<32x16xf32, #tpu.memory_space<vmem>>, %arg10: memref<4736x128xbf16, #tpu.memory_space<vmem>>, %arg11: memref<40x128xf32, #tpu.memory_space<vmem>>, %arg12: memref<1x32x128xf32, #tpu.memory_space<vmem>>) attributes {dimension_semantics = [#tpu.dimension_semantics<parallel>], iteration_bounds = array<i64: 2>, scalar_prefetch = 0 : i64, scratch_operands = 0 : i64, tpu.core_type = #tpu.core_type<tc>, window_params = [{transform_indices = @transform_0, window_bounds = array<i64: 1, 2, 128>}, {transform_indices = @transform_1, window_bounds = array<i64: 1, 4, 128>}, {transform_indices = @transform_2, window_bounds = array<i64: 1, 8, 128>}, {transform_indices = @transform_3, window_bounds = array<i64: 1, 16, 128>}, {transform_indices = @transform_4, window_bounds = array<i64: 1, 32, 128>}, {pipeline_mode = #tpu.pipeline_mode<synchronous>, transform_indices = @transform_5, window_bounds = array<i64: 4, 2>}, {pipeline_mode = #tpu.pipeline_mode<synchronous>, transform_indices = @transform_6, window_bounds = array<i64: 8, 4>}, {pipeline_mode = #tpu.pipeline_mode<synchronous>, transform_indices = @transform_7, window_bounds = array<i64: 16, 8>}, {pipeline_mode = #tpu.pipeline_mode<synchronous>, transform_indices = @transform_8, window_bounds = array<i64: 32, 16>}, {pipeline_mode = #tpu.pipeline_mode<synchronous>, transform_indices = @transform_9, window_bounds = array<i64: 4736, 128>}, {pipeline_mode = #tpu.pipeline_mode<synchronous>, transform_indices = @transform_10, window_bounds = array<i64: 40, 128>}, {transform_indices = @transform_11, window_bounds = array<i64: 1, 32, 128>}]} {
    %c0 = arith.constant 0 : index
    %c0_0 = arith.constant 0 : index
    %c0_1 = arith.constant 0 : index
    %0 = vector.load %arg1[%c0, %c0_0, %c0_1] : memref<1x2x128xf32, #tpu.memory_space<vmem>>, vector<1x2x128xf32>
    %1 = vector.shape_cast %0 : vector<1x2x128xf32> to vector<2x128xf32>
    %c0_2 = arith.constant 0 : index
    %c0_3 = arith.constant 0 : index
    %2 = vector.load %arg6[%c0_2, %c0_3] : memref<4x2xf32, #tpu.memory_space<vmem>>, vector<4x2xf32>
    %cst = arith.constant dense<0.000000e+00> : vector<4x128xf32>
    %3 = tpu.matmul %2, %1, %cst {dimension_numbers = #tpu.dot_dimension_numbers<[1], [0], [0], [1], [0, 0, 1, 1], [], []>} : vector<4x2xf32>, vector<2x128xf32>, vector<4x128xf32> -> vector<4x128xf32>
    %4 = arith.truncf %3 : vector<4x128xf32> to vector<4x128xbf16>
    %c0_4 = arith.constant 0 : index
    %c0_5 = arith.constant 0 : index
    %c0_6 = arith.constant 0 : index
    %5 = vector.load %arg2[%c0_4, %c0_5, %c0_6] : memref<1x4x128xf32, #tpu.memory_space<vmem>>, vector<1x4x128xf32>
    %6 = vector.shape_cast %5 : vector<1x4x128xf32> to vector<4x128xf32>
    %7 = arith.truncf %6 : vector<4x128xf32> to vector<4x128xbf16>
    %c0_7 = arith.constant 0 : index
    %c0_8 = arith.constant 0 : index
    %8 = vector.load %arg10[%c0_7, %c0_8] : memref<4736x128xbf16, #tpu.memory_space<vmem>>, vector<128x128xbf16>
    %cst_9 = arith.constant dense<0.000000e+00> : vector<4x128xf32>
    %9 = tpu.matmul %7, %8, %cst_9 {dimension_numbers = #tpu.dot_dimension_numbers<[1], [0], [0], [1], [0, 0, 1, 1], [], []>} : vector<4x128xbf16>, vector<128x128xbf16>, vector<4x128xf32> -> vector<4x128xf32>
    %c128 = arith.constant 128 : index
    %c0_10 = arith.constant 0 : index
    %10 = vector.load %arg10[%c128, %c0_10] : memref<4736x128xbf16, #tpu.memory_space<vmem>>, vector<128x128xbf16>
    %cst_11 = arith.constant dense<0.000000e+00> : vector<4x128xf32>
    %11 = tpu.matmul %7, %10, %cst_11 {dimension_numbers = #tpu.dot_dimension_numbers<[1], [0], [0], [1], [0, 0, 1, 1], [], []>} : vector<4x128xbf16>, vector<128x128xbf16>, vector<4x128xf32> -> vector<4x128xf32>
    %c256 = arith.constant 256 : index
    %c0_12 = arith.constant 0 : index
    %12 = vector.load %arg10[%c256, %c0_12] : memref<4736x128xbf16, #tpu.memory_space<vmem>>, vector<128x128xbf16>
    %cst_13 = arith.constant dense<0.000000e+00> : vector<4x128xf32>
    %13 = tpu.matmul %7, %12, %cst_13 {dimension_numbers = #tpu.dot_dimension_numbers<[1], [0], [0], [1], [0, 0, 1, 1], [], []>} : vector<4x128xbf16>, vector<128x128xbf16>, vector<4x128xf32> -> vector<4x128xf32>
    %cst_14 = arith.constant 0.000000e+00 : f32
    %14 = vector.broadcast %cst_14 : f32 to vector<1x128xf32>
    %15 = vector.extract_strided_slice %9 {offsets = [0, 0], sizes = [3, 128], strides = [1, 1]} : vector<4x128xf32> to vector<3x128xf32>
    %16 = tpu.concatenate %14, %15 in 0 : vector<1x128xf32>, vector<3x128xf32> -> vector<4x128xf32>
    %17 = arith.addf %16, %11 : vector<4x128xf32>
    %18 = vector.extract_strided_slice %13 {offsets = [1, 0], sizes = [3, 128], strides = [1, 1]} : vector<4x128xf32> to vector<3x128xf32>
    %19 = tpu.concatenate %18, %14 in 0 : vector<3x128xf32>, vector<1x128xf32> -> vector<4x128xf32>
    %20 = arith.addf %17, %19 : vector<4x128xf32>
    %c384 = arith.constant 384 : index
    %c0_15 = arith.constant 0 : index
    %21 = vector.load %arg10[%c384, %c0_15] : memref<4736x128xbf16, #tpu.memory_space<vmem>>, vector<128x128xbf16>
    %cst_16 = arith.constant dense<0.000000e+00> : vector<4x128xf32>
    %22 = tpu.matmul %4, %21, %cst_16 {dimension_numbers = #tpu.dot_dimension_numbers<[1], [0], [0], [1], [0, 0, 1, 1], [], []>} : vector<4x128xbf16>, vector<128x128xbf16>, vector<4x128xf32> -> vector<4x128xf32>
    %c512 = arith.constant 512 : index
    %c0_17 = arith.constant 0 : index
    %23 = vector.load %arg10[%c512, %c0_17] : memref<4736x128xbf16, #tpu.memory_space<vmem>>, vector<128x128xbf16>
    %cst_18 = arith.constant dense<0.000000e+00> : vector<4x128xf32>
    %24 = tpu.matmul %4, %23, %cst_18 {dimension_numbers = #tpu.dot_dimension_numbers<[1], [0], [0], [1], [0, 0, 1, 1], [], []>} : vector<4x128xbf16>, vector<128x128xbf16>, vector<4x128xf32> -> vector<4x128xf32>
    %c640 = arith.constant 640 : index
    %c0_19 = arith.constant 0 : index
    %25 = vector.load %arg10[%c640, %c0_19] : memref<4736x128xbf16, #tpu.memory_space<vmem>>, vector<128x128xbf16>
    %cst_20 = arith.constant dense<0.000000e+00> : vector<4x128xf32>
    %26 = tpu.matmul %4, %25, %cst_20 {dimension_numbers = #tpu.dot_dimension_numbers<[1], [0], [0], [1], [0, 0, 1, 1], [], []>} : vector<4x128xbf16>, vector<128x128xbf16>, vector<4x128xf32> -> vector<4x128xf32>
    %cst_21 = arith.constant 0.000000e+00 : f32
    %27 = vector.broadcast %cst_21 : f32 to vector<1x128xf32>
    %28 = vector.extract_strided_slice %22 {offsets = [0, 0], sizes = [3, 128], strides = [1, 1]} : vector<4x128xf32> to vector<3x128xf32>
    %29 = tpu.concatenate %27, %28 in 0 : vector<1x128xf32>, vector<3x128xf32> -> vector<4x128xf32>
    %30 = arith.addf %29, %24 : vector<4x128xf32>
    %31 = vector.extract_strided_slice %26 {offsets = [1, 0], sizes = [3, 128], strides = [1, 1]} : vector<4x128xf32> to vector<3x128xf32>
    %32 = tpu.concatenate %31, %27 in 0 : vector<3x128xf32>, vector<1x128xf32> -> vector<4x128xf32>
    %33 = arith.addf %30, %32 : vector<4x128xf32>
    %34 = arith.addf %20, %33 : vector<4x128xf32>
    %c0_22 = arith.constant 0 : index
    %c0_23 = arith.constant 0 : index
    %35 = vector.load %arg11[%c0_22, %c0_23] : memref<40x128xf32, #tpu.memory_space<vmem>>, vector<1x128xf32>
    %36 = vector.broadcast %35 : vector<1x128xf32> to vector<4x128xf32>
    %37 = arith.mulf %34, %36 : vector<4x128xf32>
    %c1 = arith.constant 1 : index
    %c0_24 = arith.constant 0 : index
    %38 = vector.load %arg11[%c1, %c0_24] : memref<40x128xf32, #tpu.memory_space<vmem>>, vector<1x128xf32>
    %39 = vector.broadcast %38 : vector<1x128xf32> to vector<4x128xf32>
    %40 = arith.addf %37, %39 : vector<4x128xf32>
    %cst_25 = arith.constant 0.000000e+00 : f32
    %41 = vector.broadcast %cst_25 : f32 to vector<4x128xf32>
    %42 = arith.maximumf %40, %41 : vector<4x128xf32>
    %43 = arith.truncf %42 : vector<4x128xf32> to vector<4x128xbf16>
    %c768 = arith.constant 768 : index
    %c0_26 = arith.constant 0 : index
    %44 = vector.load %arg10[%c768, %c0_26] : memref<4736x128xbf16, #tpu.memory_space<vmem>>, vector<128x128xbf16>
    %cst_27 = arith.constant dense<0.000000e+00> : vector<4x128xf32>
    %45 = tpu.matmul %43, %44, %cst_27 {dimension_numbers = #tpu.dot_dimension_numbers<[1], [0], [0], [1], [0, 0, 1, 1], [], []>} : vector<4x128xbf16>, vector<128x128xbf16>, vector<4x128xf32> -> vector<4x128xf32>
    %c896 = arith.constant 896 : index
    %c0_28 = arith.constant 0 : index
    %46 = vector.load %arg10[%c896, %c0_28] : memref<4736x128xbf16, #tpu.memory_space<vmem>>, vector<128x128xbf16>
    %cst_29 = arith.constant dense<0.000000e+00> : vector<4x128xf32>
    %47 = tpu.matmul %43, %46, %cst_29 {dimension_numbers = #tpu.dot_dimension_numbers<[1], [0], [0], [1], [0, 0, 1, 1], [], []>} : vector<4x128xbf16>, vector<128x128xbf16>, vector<4x128xf32> -> vector<4x128xf32>
    %c1024 = arith.constant 1024 : index
    %c0_30 = arith.constant 0 : index
    %48 = vector.load %arg10[%c1024, %c0_30] : memref<4736x128xbf16, #tpu.memory_space<vmem>>, vector<128x128xbf16>
    %cst_31 = arith.constant dense<0.000000e+00> : vector<4x128xf32>
    %49 = tpu.matmul %43, %48, %cst_31 {dimension_numbers = #tpu.dot_dimension_numbers<[1], [0], [0], [1], [0, 0, 1, 1], [], []>} : vector<4x128xbf16>, vector<128x128xbf16>, vector<4x128xf32> -> vector<4x128xf32>
    %cst_32 = arith.constant 0.000000e+00 : f32
    %50 = vector.broadcast %cst_32 : f32 to vector<1x128xf32>
    %51 = vector.extract_strided_slice %45 {offsets = [0, 0], sizes = [3, 128], strides = [1, 1]} : vector<4x128xf32> to vector<3x128xf32>
    %52 = tpu.concatenate %50, %51 in 0 : vector<1x128xf32>, vector<3x128xf32> -> vector<4x128xf32>
    %53 = arith.addf %52, %47 : vector<4x128xf32>
    %54 = vector.extract_strided_slice %49 {offsets = [1, 0], sizes = [3, 128], strides = [1, 1]} : vector<4x128xf32> to vector<3x128xf32>
    %55 = tpu.concatenate %54, %50 in 0 : vector<3x128xf32>, vector<1x128xf32> -> vector<4x128xf32>
    %56 = arith.addf %53, %55 : vector<4x128xf32>
    %c2 = arith.constant 2 : index
    %c0_33 = arith.constant 0 : index
    %57 = vector.load %arg11[%c2, %c0_33] : memref<40x128xf32, #tpu.memory_space<vmem>>, vector<1x128xf32>
    %58 = vector.broadcast %57 : vector<1x128xf32> to vector<4x128xf32>
    %59 = arith.mulf %56, %58 : vector<4x128xf32>
    %c3 = arith.constant 3 : index
    %c0_34 = arith.constant 0 : index
    %60 = vector.load %arg11[%c3, %c0_34] : memref<40x128xf32, #tpu.memory_space<vmem>>, vector<1x128xf32>
    %61 = vector.broadcast %60 : vector<1x128xf32> to vector<4x128xf32>
    %62 = arith.addf %59, %61 : vector<4x128xf32>
    %cst_35 = arith.constant 0.000000e+00 : f32
    %63 = vector.broadcast %cst_35 : f32 to vector<4x128xf32>
    %64 = arith.maximumf %62, %63 : vector<4x128xf32>
    %c0_36 = arith.constant 0 : index
    %c0_37 = arith.constant 0 : index
    %65 = vector.load %arg7[%c0_36, %c0_37] : memref<8x4xf32, #tpu.memory_space<vmem>>, vector<8x4xf32>
    %cst_38 = arith.constant dense<0.000000e+00> : vector<8x128xf32>
    %66 = tpu.matmul %65, %64, %cst_38 {dimension_numbers = #tpu.dot_dimension_numbers<[1], [0], [0], [1], [0, 0, 1, 1], [], []>} : vector<8x4xf32>, vector<4x128xf32>, vector<8x128xf32> -> vector<8x128xf32>
    %67 = arith.truncf %66 : vector<8x128xf32> to vector<8x128xbf16>
    %c0_39 = arith.constant 0 : index
    %c0_40 = arith.constant 0 : index
    %c0_41 = arith.constant 0 : index
    %68 = vector.load %arg3[%c0_39, %c0_40, %c0_41] : memref<1x8x128xf32, #tpu.memory_space<vmem>>, vector<1x8x128xf32>
    %69 = vector.shape_cast %68 : vector<1x8x128xf32> to vector<8x128xf32>
    %70 = arith.truncf %69 : vector<8x128xf32> to vector<8x128xbf16>
    %c1152 = arith.constant 1152 : index
    %c0_42 = arith.constant 0 : index
    %71 = vector.load %arg10[%c1152, %c0_42] : memref<4736x128xbf16, #tpu.memory_space<vmem>>, vector<128x128xbf16>
    %cst_43 = arith.constant dense<0.000000e+00> : vector<8x128xf32>
    %72 = tpu.matmul %70, %71, %cst_43 {dimension_numbers = #tpu.dot_dimension_numbers<[1], [0], [0], [1], [0, 0, 1, 1], [], []>} : vector<8x128xbf16>, vector<128x128xbf16>, vector<8x128xf32> -> vector<8x128xf32>
    %c1280 = arith.constant 1280 : index
    %c0_44 = arith.constant 0 : index
    %73 = vector.load %arg10[%c1280, %c0_44] : memref<4736x128xbf16, #tpu.memory_space<vmem>>, vector<128x128xbf16>
    %cst_45 = arith.constant dense<0.000000e+00> : vector<8x128xf32>
    %74 = tpu.matmul %70, %73, %cst_45 {dimension_numbers = #tpu.dot_dimension_numbers<[1], [0], [0], [1], [0, 0, 1, 1], [], []>} : vector<8x128xbf16>, vector<128x128xbf16>, vector<8x128xf32> -> vector<8x128xf32>
    %c1408 = arith.constant 1408 : index
    %c0_46 = arith.constant 0 : index
    %75 = vector.load %arg10[%c1408, %c0_46] : memref<4736x128xbf16, #tpu.memory_space<vmem>>, vector<128x128xbf16>
    %cst_47 = arith.constant dense<0.000000e+00> : vector<8x128xf32>
    %76 = tpu.matmul %70, %75, %cst_47 {dimension_numbers = #tpu.dot_dimension_numbers<[1], [0], [0], [1], [0, 0, 1, 1], [], []>} : vector<8x128xbf16>, vector<128x128xbf16>, vector<8x128xf32> -> vector<8x128xf32>
    %cst_48 = arith.constant 0.000000e+00 : f32
    %77 = vector.broadcast %cst_48 : f32 to vector<1x128xf32>
    %78 = vector.extract_strided_slice %72 {offsets = [0, 0], sizes = [7, 128], strides = [1, 1]} : vector<8x128xf32> to vector<7x128xf32>
    %79 = tpu.concatenate %77, %78 in 0 : vector<1x128xf32>, vector<7x128xf32> -> vector<8x128xf32>
    %80 = arith.addf %79, %74 : vector<8x128xf32>
    %81 = vector.extract_strided_slice %76 {offsets = [1, 0], sizes = [7, 128], strides = [1, 1]} : vector<8x128xf32> to vector<7x128xf32>
    %82 = tpu.concatenate %81, %77 in 0 : vector<7x128xf32>, vector<1x128xf32> -> vector<8x128xf32>
    %83 = arith.addf %80, %82 : vector<8x128xf32>
    %c1536 = arith.constant 1536 : index
    %c0_49 = arith.constant 0 : index
    %84 = vector.load %arg10[%c1536, %c0_49] : memref<4736x128xbf16, #tpu.memory_space<vmem>>, vector<128x128xbf16>
    %cst_50 = arith.constant dense<0.000000e+00> : vector<8x128xf32>
    %85 = tpu.matmul %67, %84, %cst_50 {dimension_numbers = #tpu.dot_dimension_numbers<[1], [0], [0], [1], [0, 0, 1, 1], [], []>} : vector<8x128xbf16>, vector<128x128xbf16>, vector<8x128xf32> -> vector<8x128xf32>
    %c1664 = arith.constant 1664 : index
    %c0_51 = arith.constant 0 : index
    %86 = vector.load %arg10[%c1664, %c0_51] : memref<4736x128xbf16, #tpu.memory_space<vmem>>, vector<128x128xbf16>
    %cst_52 = arith.constant dense<0.000000e+00> : vector<8x128xf32>
    %87 = tpu.matmul %67, %86, %cst_52 {dimension_numbers = #tpu.dot_dimension_numbers<[1], [0], [0], [1], [0, 0, 1, 1], [], []>} : vector<8x128xbf16>, vector<128x128xbf16>, vector<8x128xf32> -> vector<8x128xf32>
    %c1792 = arith.constant 1792 : index
    %c0_53 = arith.constant 0 : index
    %88 = vector.load %arg10[%c1792, %c0_53] : memref<4736x128xbf16, #tpu.memory_space<vmem>>, vector<128x128xbf16>
    %cst_54 = arith.constant dense<0.000000e+00> : vector<8x128xf32>
    %89 = tpu.matmul %67, %88, %cst_54 {dimension_numbers = #tpu.dot_dimension_numbers<[1], [0], [0], [1], [0, 0, 1, 1], [], []>} : vector<8x128xbf16>, vector<128x128xbf16>, vector<8x128xf32> -> vector<8x128xf32>
    %cst_55 = arith.constant 0.000000e+00 : f32
    %90 = vector.broadcast %cst_55 : f32 to vector<1x128xf32>
    %91 = vector.extract_strided_slice %85 {offsets = [0, 0], sizes = [7, 128], strides = [1, 1]} : vector<8x128xf32> to vector<7x128xf32>
    %92 = tpu.concatenate %90, %91 in 0 : vector<1x128xf32>, vector<7x128xf32> -> vector<8x128xf32>
    %93 = arith.addf %92, %87 : vector<8x128xf32>
    %94 = vector.extract_strided_slice %89 {offsets = [1, 0], sizes = [7, 128], strides = [1, 1]} : vector<8x128xf32> to vector<7x128xf32>
    %95 = tpu.concatenate %94, %90 in 0 : vector<7x128xf32>, vector<1x128xf32> -> vector<8x128xf32>
    %96 = arith.addf %93, %95 : vector<8x128xf32>
    %97 = arith.addf %83, %96 : vector<8x128xf32>
    %c8 = arith.constant 8 : index
    %c0_56 = arith.constant 0 : index
    %98 = vector.load %arg11[%c8, %c0_56] : memref<40x128xf32, #tpu.memory_space<vmem>>, vector<1x128xf32>
    %99 = vector.broadcast %98 : vector<1x128xf32> to vector<8x128xf32>
    %100 = arith.mulf %97, %99 : vector<8x128xf32>
    %c9 = arith.constant 9 : index
    %c0_57 = arith.constant 0 : index
    %101 = vector.load %arg11[%c9, %c0_57] : memref<40x128xf32, #tpu.memory_space<vmem>>, vector<1x128xf32>
    %102 = vector.broadcast %101 : vector<1x128xf32> to vector<8x128xf32>
    %103 = arith.addf %100, %102 : vector<8x128xf32>
    %cst_58 = arith.constant 0.000000e+00 : f32
    %104 = vector.broadcast %cst_58 : f32 to vector<8x128xf32>
    %105 = arith.maximumf %103, %104 : vector<8x128xf32>
    %106 = arith.truncf %105 : vector<8x128xf32> to vector<8x128xbf16>
    %c1920 = arith.constant 1920 : index
    %c0_59 = arith.constant 0 : index
    %107 = vector.load %arg10[%c1920, %c0_59] : memref<4736x128xbf16, #tpu.memory_space<vmem>>, vector<128x128xbf16>
    %cst_60 = arith.constant dense<0.000000e+00> : vector<8x128xf32>
    %108 = tpu.matmul %106, %107, %cst_60 {dimension_numbers = #tpu.dot_dimension_numbers<[1], [0], [0], [1], [0, 0, 1, 1], [], []>} : vector<8x128xbf16>, vector<128x128xbf16>, vector<8x128xf32> -> vector<8x128xf32>
    %c2048 = arith.constant 2048 : index
    %c0_61 = arith.constant 0 : index
    %109 = vector.load %arg10[%c2048, %c0_61] : memref<4736x128xbf16, #tpu.memory_space<vmem>>, vector<128x128xbf16>
    %cst_62 = arith.constant dense<0.000000e+00> : vector<8x128xf32>
    %110 = tpu.matmul %106, %109, %cst_62 {dimension_numbers = #tpu.dot_dimension_numbers<[1], [0], [0], [1], [0, 0, 1, 1], [], []>} : vector<8x128xbf16>, vector<128x128xbf16>, vector<8x128xf32> -> vector<8x128xf32>
    %c2176 = arith.constant 2176 : index
    %c0_63 = arith.constant 0 : index
    %111 = vector.load %arg10[%c2176, %c0_63] : memref<4736x128xbf16, #tpu.memory_space<vmem>>, vector<128x128xbf16>
    %cst_64 = arith.constant dense<0.000000e+00> : vector<8x128xf32>
    %112 = tpu.matmul %106, %111, %cst_64 {dimension_numbers = #tpu.dot_dimension_numbers<[1], [0], [0], [1], [0, 0, 1, 1], [], []>} : vector<8x128xbf16>, vector<128x128xbf16>, vector<8x128xf32> -> vector<8x128xf32>
    %cst_65 = arith.constant 0.000000e+00 : f32
    %113 = vector.broadcast %cst_65 : f32 to vector<1x128xf32>
    %114 = vector.extract_strided_slice %108 {offsets = [0, 0], sizes = [7, 128], strides = [1, 1]} : vector<8x128xf32> to vector<7x128xf32>
    %115 = tpu.concatenate %113, %114 in 0 : vector<1x128xf32>, vector<7x128xf32> -> vector<8x128xf32>
    %116 = arith.addf %115, %110 : vector<8x128xf32>
    %117 = vector.extract_strided_slice %112 {offsets = [1, 0], sizes = [7, 128], strides = [1, 1]} : vector<8x128xf32> to vector<7x128xf32>
    %118 = tpu.concatenate %117, %113 in 0 : vector<7x128xf32>, vector<1x128xf32> -> vector<8x128xf32>
    %119 = arith.addf %116, %118 : vector<8x128xf32>
    %c10 = arith.constant 10 : index
    %c0_66 = arith.constant 0 : index
    %120 = vector.load %arg11[%c10, %c0_66] : memref<40x128xf32, #tpu.memory_space<vmem>>, vector<1x128xf32>
    %121 = vector.broadcast %120 : vector<1x128xf32> to vector<8x128xf32>
    %122 = arith.mulf %119, %121 : vector<8x128xf32>
    %c11 = arith.constant 11 : index
    %c0_67 = arith.constant 0 : index
    %123 = vector.load %arg11[%c11, %c0_67] : memref<40x128xf32, #tpu.memory_space<vmem>>, vector<1x128xf32>
    %124 = vector.broadcast %123 : vector<1x128xf32> to vector<8x128xf32>
    %125 = arith.addf %122, %124 : vector<8x128xf32>
    %cst_68 = arith.constant 0.000000e+00 : f32
    %126 = vector.broadcast %cst_68 : f32 to vector<8x128xf32>
    %127 = arith.maximumf %125, %126 : vector<8x128xf32>
    %c0_69 = arith.constant 0 : index
    %c0_70 = arith.constant 0 : index
    %128 = vector.load %arg8[%c0_69, %c0_70] : memref<16x8xf32, #tpu.memory_space<vmem>>, vector<16x8xf32>
    %cst_71 = arith.constant dense<0.000000e+00> : vector<16x128xf32>
    %129 = tpu.matmul %128, %127, %cst_71 {dimension_numbers = #tpu.dot_dimension_numbers<[1], [0], [0], [1], [0, 0, 1, 1], [], []>} : vector<16x8xf32>, vector<8x128xf32>, vector<16x128xf32> -> vector<16x128xf32>
    %130 = arith.truncf %129 : vector<16x128xf32> to vector<16x128xbf16>
    %c0_72 = arith.constant 0 : index
    %c0_73 = arith.constant 0 : index
    %c0_74 = arith.constant 0 : index
    %131 = vector.load %arg4[%c0_72, %c0_73, %c0_74] : memref<1x16x128xf32, #tpu.memory_space<vmem>>, vector<1x16x128xf32>
    %132 = vector.shape_cast %131 : vector<1x16x128xf32> to vector<16x128xf32>
    %133 = arith.truncf %132 : vector<16x128xf32> to vector<16x128xbf16>
    %c2304 = arith.constant 2304 : index
    %c0_75 = arith.constant 0 : index
    %134 = vector.load %arg10[%c2304, %c0_75] : memref<4736x128xbf16, #tpu.memory_space<vmem>>, vector<128x128xbf16>
    %cst_76 = arith.constant dense<0.000000e+00> : vector<16x128xf32>
    %135 = tpu.matmul %133, %134, %cst_76 {dimension_numbers = #tpu.dot_dimension_numbers<[1], [0], [0], [1], [0, 0, 1, 1], [], []>} : vector<16x128xbf16>, vector<128x128xbf16>, vector<16x128xf32> -> vector<16x128xf32>
    %c2432 = arith.constant 2432 : index
    %c0_77 = arith.constant 0 : index
    %136 = vector.load %arg10[%c2432, %c0_77] : memref<4736x128xbf16, #tpu.memory_space<vmem>>, vector<128x128xbf16>
    %cst_78 = arith.constant dense<0.000000e+00> : vector<16x128xf32>
    %137 = tpu.matmul %133, %136, %cst_78 {dimension_numbers = #tpu.dot_dimension_numbers<[1], [0], [0], [1], [0, 0, 1, 1], [], []>} : vector<16x128xbf16>, vector<128x128xbf16>, vector<16x128xf32> -> vector<16x128xf32>
    %c2560 = arith.constant 2560 : index
    %c0_79 = arith.constant 0 : index
    %138 = vector.load %arg10[%c2560, %c0_79] : memref<4736x128xbf16, #tpu.memory_space<vmem>>, vector<128x128xbf16>
    %cst_80 = arith.constant dense<0.000000e+00> : vector<16x128xf32>
    %139 = tpu.matmul %133, %138, %cst_80 {dimension_numbers = #tpu.dot_dimension_numbers<[1], [0], [0], [1], [0, 0, 1, 1], [], []>} : vector<16x128xbf16>, vector<128x128xbf16>, vector<16x128xf32> -> vector<16x128xf32>
    %cst_81 = arith.constant 0.000000e+00 : f32
    %140 = vector.broadcast %cst_81 : f32 to vector<1x128xf32>
    %141 = vector.extract_strided_slice %135 {offsets = [0, 0], sizes = [15, 128], strides = [1, 1]} : vector<16x128xf32> to vector<15x128xf32>
    %142 = tpu.concatenate %140, %141 in 0 : vector<1x128xf32>, vector<15x128xf32> -> vector<16x128xf32>
    %143 = arith.addf %142, %137 : vector<16x128xf32>
    %144 = vector.extract_strided_slice %139 {offsets = [1, 0], sizes = [15, 128], strides = [1, 1]} : vector<16x128xf32> to vector<15x128xf32>
    %145 = tpu.concatenate %144, %140 in 0 : vector<15x128xf32>, vector<1x128xf32> -> vector<16x128xf32>
    %146 = arith.addf %143, %145 : vector<16x128xf32>
    %c2688 = arith.constant 2688 : index
    %c0_82 = arith.constant 0 : index
    %147 = vector.load %arg10[%c2688, %c0_82] : memref<4736x128xbf16, #tpu.memory_space<vmem>>, vector<128x128xbf16>
    %cst_83 = arith.constant dense<0.000000e+00> : vector<16x128xf32>
    %148 = tpu.matmul %130, %147, %cst_83 {dimension_numbers = #tpu.dot_dimension_numbers<[1], [0], [0], [1], [0, 0, 1, 1], [], []>} : vector<16x128xbf16>, vector<128x128xbf16>, vector<16x128xf32> -> vector<16x128xf32>
    %c2816 = arith.constant 2816 : index
    %c0_84 = arith.constant 0 : index
    %149 = vector.load %arg10[%c2816, %c0_84] : memref<4736x128xbf16, #tpu.memory_space<vmem>>, vector<128x128xbf16>
    %cst_85 = arith.constant dense<0.000000e+00> : vector<16x128xf32>
    %150 = tpu.matmul %130, %149, %cst_85 {dimension_numbers = #tpu.dot_dimension_numbers<[1], [0], [0], [1], [0, 0, 1, 1], [], []>} : vector<16x128xbf16>, vector<128x128xbf16>, vector<16x128xf32> -> vector<16x128xf32>
    %c2944 = arith.constant 2944 : index
    %c0_86 = arith.constant 0 : index
    %151 = vector.load %arg10[%c2944, %c0_86] : memref<4736x128xbf16, #tpu.memory_space<vmem>>, vector<128x128xbf16>
    %cst_87 = arith.constant dense<0.000000e+00> : vector<16x128xf32>
    %152 = tpu.matmul %130, %151, %cst_87 {dimension_numbers = #tpu.dot_dimension_numbers<[1], [0], [0], [1], [0, 0, 1, 1], [], []>} : vector<16x128xbf16>, vector<128x128xbf16>, vector<16x128xf32> -> vector<16x128xf32>
    %cst_88 = arith.constant 0.000000e+00 : f32
    %153 = vector.broadcast %cst_88 : f32 to vector<1x128xf32>
    %154 = vector.extract_strided_slice %148 {offsets = [0, 0], sizes = [15, 128], strides = [1, 1]} : vector<16x128xf32> to vector<15x128xf32>
    %155 = tpu.concatenate %153, %154 in 0 : vector<1x128xf32>, vector<15x128xf32> -> vector<16x128xf32>
    %156 = arith.addf %155, %150 : vector<16x128xf32>
    %157 = vector.extract_strided_slice %152 {offsets = [1, 0], sizes = [15, 128], strides = [1, 1]} : vector<16x128xf32> to vector<15x128xf32>
    %158 = tpu.concatenate %157, %153 in 0 : vector<15x128xf32>, vector<1x128xf32> -> vector<16x128xf32>
    %159 = arith.addf %156, %158 : vector<16x128xf32>
    %160 = arith.addf %146, %159 : vector<16x128xf32>
    %c16 = arith.constant 16 : index
    %c0_89 = arith.constant 0 : index
    %161 = vector.load %arg11[%c16, %c0_89] : memref<40x128xf32, #tpu.memory_space<vmem>>, vector<1x128xf32>
    %162 = vector.broadcast %161 : vector<1x128xf32> to vector<16x128xf32>
    %163 = arith.mulf %160, %162 : vector<16x128xf32>
    %c17 = arith.constant 17 : index
    %c0_90 = arith.constant 0 : index
    %164 = vector.load %arg11[%c17, %c0_90] : memref<40x128xf32, #tpu.memory_space<vmem>>, vector<1x128xf32>
    %165 = vector.broadcast %164 : vector<1x128xf32> to vector<16x128xf32>
    %166 = arith.addf %163, %165 : vector<16x128xf32>
    %cst_91 = arith.constant 0.000000e+00 : f32
    %167 = vector.broadcast %cst_91 : f32 to vector<16x128xf32>
    %168 = arith.maximumf %166, %167 : vector<16x128xf32>
    %169 = arith.truncf %168 : vector<16x128xf32> to vector<16x128xbf16>
    %c3072 = arith.constant 3072 : index
    %c0_92 = arith.constant 0 : index
    %170 = vector.load %arg10[%c3072, %c0_92] : memref<4736x128xbf16, #tpu.memory_space<vmem>>, vector<128x128xbf16>
    %cst_93 = arith.constant dense<0.000000e+00> : vector<16x128xf32>
    %171 = tpu.matmul %169, %170, %cst_93 {dimension_numbers = #tpu.dot_dimension_numbers<[1], [0], [0], [1], [0, 0, 1, 1], [], []>} : vector<16x128xbf16>, vector<128x128xbf16>, vector<16x128xf32> -> vector<16x128xf32>
    %c3200 = arith.constant 3200 : index
    %c0_94 = arith.constant 0 : index
    %172 = vector.load %arg10[%c3200, %c0_94] : memref<4736x128xbf16, #tpu.memory_space<vmem>>, vector<128x128xbf16>
    %cst_95 = arith.constant dense<0.000000e+00> : vector<16x128xf32>
    %173 = tpu.matmul %169, %172, %cst_95 {dimension_numbers = #tpu.dot_dimension_numbers<[1], [0], [0], [1], [0, 0, 1, 1], [], []>} : vector<16x128xbf16>, vector<128x128xbf16>, vector<16x128xf32> -> vector<16x128xf32>
    %c3328 = arith.constant 3328 : index
    %c0_96 = arith.constant 0 : index
    %174 = vector.load %arg10[%c3328, %c0_96] : memref<4736x128xbf16, #tpu.memory_space<vmem>>, vector<128x128xbf16>
    %cst_97 = arith.constant dense<0.000000e+00> : vector<16x128xf32>
    %175 = tpu.matmul %169, %174, %cst_97 {dimension_numbers = #tpu.dot_dimension_numbers<[1], [0], [0], [1], [0, 0, 1, 1], [], []>} : vector<16x128xbf16>, vector<128x128xbf16>, vector<16x128xf32> -> vector<16x128xf32>
    %cst_98 = arith.constant 0.000000e+00 : f32
    %176 = vector.broadcast %cst_98 : f32 to vector<1x128xf32>
    %177 = vector.extract_strided_slice %171 {offsets = [0, 0], sizes = [15, 128], strides = [1, 1]} : vector<16x128xf32> to vector<15x128xf32>
    %178 = tpu.concatenate %176, %177 in 0 : vector<1x128xf32>, vector<15x128xf32> -> vector<16x128xf32>
    %179 = arith.addf %178, %173 : vector<16x128xf32>
    %180 = vector.extract_strided_slice %175 {offsets = [1, 0], sizes = [15, 128], strides = [1, 1]} : vector<16x128xf32> to vector<15x128xf32>
    %181 = tpu.concatenate %180, %176 in 0 : vector<15x128xf32>, vector<1x128xf32> -> vector<16x128xf32>
    %182 = arith.addf %179, %181 : vector<16x128xf32>
    %c18 = arith.constant 18 : index
    %c0_99 = arith.constant 0 : index
    %183 = vector.load %arg11[%c18, %c0_99] : memref<40x128xf32, #tpu.memory_space<vmem>>, vector<1x128xf32>
    %184 = vector.broadcast %183 : vector<1x128xf32> to vector<16x128xf32>
    %185 = arith.mulf %182, %184 : vector<16x128xf32>
    %c19 = arith.constant 19 : index
    %c0_100 = arith.constant 0 : index
    %186 = vector.load %arg11[%c19, %c0_100] : memref<40x128xf32, #tpu.memory_space<vmem>>, vector<1x128xf32>
    %187 = vector.broadcast %186 : vector<1x128xf32> to vector<16x128xf32>
    %188 = arith.addf %185, %187 : vector<16x128xf32>
    %cst_101 = arith.constant 0.000000e+00 : f32
    %189 = vector.broadcast %cst_101 : f32 to vector<16x128xf32>
    %190 = arith.maximumf %188, %189 : vector<16x128xf32>
    %c0_102 = arith.constant 0 : index
    %c0_103 = arith.constant 0 : index
    %191 = vector.load %arg9[%c0_102, %c0_103] : memref<32x16xf32, #tpu.memory_space<vmem>>, vector<32x16xf32>
    %cst_104 = arith.constant dense<0.000000e+00> : vector<32x128xf32>
    %192 = tpu.matmul %191, %190, %cst_104 {dimension_numbers = #tpu.dot_dimension_numbers<[1], [0], [0], [1], [0, 0, 1, 1], [], []>} : vector<32x16xf32>, vector<16x128xf32>, vector<32x128xf32> -> vector<32x128xf32>
    %193 = arith.truncf %192 : vector<32x128xf32> to vector<32x128xbf16>
    %c0_105 = arith.constant 0 : index
    %c0_106 = arith.constant 0 : index
    %c0_107 = arith.constant 0 : index
    %194 = vector.load %arg5[%c0_105, %c0_106, %c0_107] : memref<1x32x128xf32, #tpu.memory_space<vmem>>, vector<1x32x128xf32>
    %195 = vector.shape_cast %194 : vector<1x32x128xf32> to vector<32x128xf32>
    %196 = arith.truncf %195 : vector<32x128xf32> to vector<32x128xbf16>
    %c3456 = arith.constant 3456 : index
    %c0_108 = arith.constant 0 : index
    %197 = vector.load %arg10[%c3456, %c0_108] : memref<4736x128xbf16, #tpu.memory_space<vmem>>, vector<128x128xbf16>
    %cst_109 = arith.constant dense<0.000000e+00> : vector<32x128xf32>
    %198 = tpu.matmul %196, %197, %cst_109 {dimension_numbers = #tpu.dot_dimension_numbers<[1], [0], [0], [1], [0, 0, 1, 1], [], []>} : vector<32x128xbf16>, vector<128x128xbf16>, vector<32x128xf32> -> vector<32x128xf32>
    %c3584 = arith.constant 3584 : index
    %c0_110 = arith.constant 0 : index
    %199 = vector.load %arg10[%c3584, %c0_110] : memref<4736x128xbf16, #tpu.memory_space<vmem>>, vector<128x128xbf16>
    %cst_111 = arith.constant dense<0.000000e+00> : vector<32x128xf32>
    %200 = tpu.matmul %196, %199, %cst_111 {dimension_numbers = #tpu.dot_dimension_numbers<[1], [0], [0], [1], [0, 0, 1, 1], [], []>} : vector<32x128xbf16>, vector<128x128xbf16>, vector<32x128xf32> -> vector<32x128xf32>
    %c3712 = arith.constant 3712 : index
    %c0_112 = arith.constant 0 : index
    %201 = vector.load %arg10[%c3712, %c0_112] : memref<4736x128xbf16, #tpu.memory_space<vmem>>, vector<128x128xbf16>
    %cst_113 = arith.constant dense<0.000000e+00> : vector<32x128xf32>
    %202 = tpu.matmul %196, %201, %cst_113 {dimension_numbers = #tpu.dot_dimension_numbers<[1], [0], [0], [1], [0, 0, 1, 1], [], []>} : vector<32x128xbf16>, vector<128x128xbf16>, vector<32x128xf32> -> vector<32x128xf32>
    %cst_114 = arith.constant 0.000000e+00 : f32
    %203 = vector.broadcast %cst_114 : f32 to vector<1x128xf32>
    %204 = vector.extract_strided_slice %198 {offsets = [0, 0], sizes = [31, 128], strides = [1, 1]} : vector<32x128xf32> to vector<31x128xf32>
    %205 = tpu.concatenate %203, %204 in 0 : vector<1x128xf32>, vector<31x128xf32> -> vector<32x128xf32>
    %206 = arith.addf %205, %200 : vector<32x128xf32>
    %207 = vector.extract_strided_slice %202 {offsets = [1, 0], sizes = [31, 128], strides = [1, 1]} : vector<32x128xf32> to vector<31x128xf32>
    %208 = tpu.concatenate %207, %203 in 0 : vector<31x128xf32>, vector<1x128xf32> -> vector<32x128xf32>
    %209 = arith.addf %206, %208 : vector<32x128xf32>
    %c3840 = arith.constant 3840 : index
    %c0_115 = arith.constant 0 : index
    %210 = vector.load %arg10[%c3840, %c0_115] : memref<4736x128xbf16, #tpu.memory_space<vmem>>, vector<128x128xbf16>
    %cst_116 = arith.constant dense<0.000000e+00> : vector<32x128xf32>
    %211 = tpu.matmul %193, %210, %cst_116 {dimension_numbers = #tpu.dot_dimension_numbers<[1], [0], [0], [1], [0, 0, 1, 1], [], []>} : vector<32x128xbf16>, vector<128x128xbf16>, vector<32x128xf32> -> vector<32x128xf32>
    %c3968 = arith.constant 3968 : index
    %c0_117 = arith.constant 0 : index
    %212 = vector.load %arg10[%c3968, %c0_117] : memref<4736x128xbf16, #tpu.memory_space<vmem>>, vector<128x128xbf16>
    %cst_118 = arith.constant dense<0.000000e+00> : vector<32x128xf32>
    %213 = tpu.matmul %193, %212, %cst_118 {dimension_numbers = #tpu.dot_dimension_numbers<[1], [0], [0], [1], [0, 0, 1, 1], [], []>} : vector<32x128xbf16>, vector<128x128xbf16>, vector<32x128xf32> -> vector<32x128xf32>
    %c4096 = arith.constant 4096 : index
    %c0_119 = arith.constant 0 : index
    %214 = vector.load %arg10[%c4096, %c0_119] : memref<4736x128xbf16, #tpu.memory_space<vmem>>, vector<128x128xbf16>
    %cst_120 = arith.constant dense<0.000000e+00> : vector<32x128xf32>
    %215 = tpu.matmul %193, %214, %cst_120 {dimension_numbers = #tpu.dot_dimension_numbers<[1], [0], [0], [1], [0, 0, 1, 1], [], []>} : vector<32x128xbf16>, vector<128x128xbf16>, vector<32x128xf32> -> vector<32x128xf32>
    %cst_121 = arith.constant 0.000000e+00 : f32
    %216 = vector.broadcast %cst_121 : f32 to vector<1x128xf32>
    %217 = vector.extract_strided_slice %211 {offsets = [0, 0], sizes = [31, 128], strides = [1, 1]} : vector<32x128xf32> to vector<31x128xf32>
    %218 = tpu.concatenate %216, %217 in 0 : vector<1x128xf32>, vector<31x128xf32> -> vector<32x128xf32>
    %219 = arith.addf %218, %213 : vector<32x128xf32>
    %220 = vector.extract_strided_slice %215 {offsets = [1, 0], sizes = [31, 128], strides = [1, 1]} : vector<32x128xf32> to vector<31x128xf32>
    %221 = tpu.concatenate %220, %216 in 0 : vector<31x128xf32>, vector<1x128xf32> -> vector<32x128xf32>
    %222 = arith.addf %219, %221 : vector<32x128xf32>
    %223 = arith.addf %209, %222 : vector<32x128xf32>
    %c24 = arith.constant 24 : index
    %c0_122 = arith.constant 0 : index
    %224 = vector.load %arg11[%c24, %c0_122] : memref<40x128xf32, #tpu.memory_space<vmem>>, vector<1x128xf32>
    %225 = vector.broadcast %224 : vector<1x128xf32> to vector<32x128xf32>
    %226 = arith.mulf %223, %225 : vector<32x128xf32>
    %c25 = arith.constant 25 : index
    %c0_123 = arith.constant 0 : index
    %227 = vector.load %arg11[%c25, %c0_123] : memref<40x128xf32, #tpu.memory_space<vmem>>, vector<1x128xf32>
    %228 = vector.broadcast %227 : vector<1x128xf32> to vector<32x128xf32>
    %229 = arith.addf %226, %228 : vector<32x128xf32>
    %cst_124 = arith.constant 0.000000e+00 : f32
    %230 = vector.broadcast %cst_124 : f32 to vector<32x128xf32>
    %231 = arith.maximumf %229, %230 : vector<32x128xf32>
    %232 = arith.truncf %231 : vector<32x128xf32> to vector<32x128xbf16>
    %c4224 = arith.constant 4224 : index
    %c0_125 = arith.constant 0 : index
    %233 = vector.load %arg10[%c4224, %c0_125] : memref<4736x128xbf16, #tpu.memory_space<vmem>>, vector<128x128xbf16>
    %cst_126 = arith.constant dense<0.000000e+00> : vector<32x128xf32>
    %234 = tpu.matmul %232, %233, %cst_126 {dimension_numbers = #tpu.dot_dimension_numbers<[1], [0], [0], [1], [0, 0, 1, 1], [], []>} : vector<32x128xbf16>, vector<128x128xbf16>, vector<32x128xf32> -> vector<32x128xf32>
    %c4352 = arith.constant 4352 : index
    %c0_127 = arith.constant 0 : index
    %235 = vector.load %arg10[%c4352, %c0_127] : memref<4736x128xbf16, #tpu.memory_space<vmem>>, vector<128x128xbf16>
    %cst_128 = arith.constant dense<0.000000e+00> : vector<32x128xf32>
    %236 = tpu.matmul %232, %235, %cst_128 {dimension_numbers = #tpu.dot_dimension_numbers<[1], [0], [0], [1], [0, 0, 1, 1], [], []>} : vector<32x128xbf16>, vector<128x128xbf16>, vector<32x128xf32> -> vector<32x128xf32>
    %c4480 = arith.constant 4480 : index
    %c0_129 = arith.constant 0 : index
    %237 = vector.load %arg10[%c4480, %c0_129] : memref<4736x128xbf16, #tpu.memory_space<vmem>>, vector<128x128xbf16>
    %cst_130 = arith.constant dense<0.000000e+00> : vector<32x128xf32>
    %238 = tpu.matmul %232, %237, %cst_130 {dimension_numbers = #tpu.dot_dimension_numbers<[1], [0], [0], [1], [0, 0, 1, 1], [], []>} : vector<32x128xbf16>, vector<128x128xbf16>, vector<32x128xf32> -> vector<32x128xf32>
    %cst_131 = arith.constant 0.000000e+00 : f32
    %239 = vector.broadcast %cst_131 : f32 to vector<1x128xf32>
    %240 = vector.extract_strided_slice %234 {offsets = [0, 0], sizes = [31, 128], strides = [1, 1]} : vector<32x128xf32> to vector<31x128xf32>
    %241 = tpu.concatenate %239, %240 in 0 : vector<1x128xf32>, vector<31x128xf32> -> vector<32x128xf32>
    %242 = arith.addf %241, %236 : vector<32x128xf32>
    %243 = vector.extract_strided_slice %238 {offsets = [1, 0], sizes = [31, 128], strides = [1, 1]} : vector<32x128xf32> to vector<31x128xf32>
    %244 = tpu.concatenate %243, %239 in 0 : vector<31x128xf32>, vector<1x128xf32> -> vector<32x128xf32>
    %245 = arith.addf %242, %244 : vector<32x128xf32>
    %c26 = arith.constant 26 : index
    %c0_132 = arith.constant 0 : index
    %246 = vector.load %arg11[%c26, %c0_132] : memref<40x128xf32, #tpu.memory_space<vmem>>, vector<1x128xf32>
    %247 = vector.broadcast %246 : vector<1x128xf32> to vector<32x128xf32>
    %248 = arith.mulf %245, %247 : vector<32x128xf32>
    %c27 = arith.constant 27 : index
    %c0_133 = arith.constant 0 : index
    %249 = vector.load %arg11[%c27, %c0_133] : memref<40x128xf32, #tpu.memory_space<vmem>>, vector<1x128xf32>
    %250 = vector.broadcast %249 : vector<1x128xf32> to vector<32x128xf32>
    %251 = arith.addf %248, %250 : vector<32x128xf32>
    %cst_134 = arith.constant 0.000000e+00 : f32
    %252 = vector.broadcast %cst_134 : f32 to vector<32x128xf32>
    %253 = arith.maximumf %251, %252 : vector<32x128xf32>
    %254 = arith.truncf %253 : vector<32x128xf32> to vector<32x128xbf16>
    %c4608 = arith.constant 4608 : index
    %c0_135 = arith.constant 0 : index
    %255 = vector.load %arg10[%c4608, %c0_135] : memref<4736x128xbf16, #tpu.memory_space<vmem>>, vector<128x128xbf16>
    %cst_136 = arith.constant dense<0.000000e+00> : vector<32x128xf32>
    %256 = tpu.matmul %254, %255, %cst_136 {dimension_numbers = #tpu.dot_dimension_numbers<[1], [0], [0], [1], [0, 0, 1, 1], [], []>} : vector<32x128xbf16>, vector<128x128xbf16>, vector<32x128xf32> -> vector<32x128xf32>
    %c32 = arith.constant 32 : index
    %c0_137 = arith.constant 0 : index
    %257 = vector.load %arg11[%c32, %c0_137] : memref<40x128xf32, #tpu.memory_space<vmem>>, vector<1x128xf32>
    %258 = vector.broadcast %257 : vector<1x128xf32> to vector<32x128xf32>
    %259 = arith.addf %256, %258 : vector<32x128xf32>
    %c0_138 = arith.constant 0 : index
    %c0_139 = arith.constant 0 : index
    %c0_140 = arith.constant 0 : index
    %260 = vector.load %arg12[%c0_138, %c0_139, %c0_140] : memref<1x32x128xf32, #tpu.memory_space<vmem>>, vector<1x32x128xf32>
    %261 = vector.shape_cast %260 : vector<1x32x128xf32> to vector<32x128xf32>
    %262 = vector.shape_cast %259 : vector<32x128xf32> to vector<1x32x128xf32>
    tpu.vector_store %arg12[%c0_138, %c0_139, %c0_140], %262 {strides = array<i32>} : memref<1x32x128xf32, #tpu.memory_space<vmem>>, vector<1x32x128xf32>,
    return
  }
  func.func @transform_0(%arg0: i32) -> (i32, i32, i32) {
    %c0_i32 = arith.constant 0 : i32
    %c0_i32_0 = arith.constant 0 : i32
    %c0_i32_1 = arith.constant 0 : i32
    return %arg0, %c0_i32, %c0_i32_0 : i32, i32, i32
  }
  func.func @transform_1(%arg0: i32) -> (i32, i32, i32) {
    %c0_i32 = arith.constant 0 : i32
    %c0_i32_0 = arith.constant 0 : i32
    %c0_i32_1 = arith.constant 0 : i32
    return %arg0, %c0_i32, %c0_i32_0 : i32, i32, i32
  }
  func.func @transform_2(%arg0: i32) -> (i32, i32, i32) {
    %c0_i32 = arith.constant 0 : i32
    %c0_i32_0 = arith.constant 0 : i32
    %c0_i32_1 = arith.constant 0 : i32
    return %arg0, %c0_i32, %c0_i32_0 : i32, i32, i32
  }
  func.func @transform_3(%arg0: i32) -> (i32, i32, i32) {
    %c0_i32 = arith.constant 0 : i32
    %c0_i32_0 = arith.constant 0 : i32
    %c0_i32_1 = arith.constant 0 : i32
    return %arg0, %c0_i32, %c0_i32_0 : i32, i32, i32
  }
  func.func @transform_4(%arg0: i32) -> (i32, i32, i32) {
    %c0_i32 = arith.constant 0 : i32
    %c0_i32_0 = arith.constant 0 : i32
    %c0_i32_1 = arith.constant 0 : i32
    return %arg0, %c0_i32, %c0_i32_0 : i32, i32, i32
  }
  func.func @transform_5(%arg0: i32) -> (i32, i32) {
    %c0_i32 = arith.constant 0 : i32
    %c0_i32_0 = arith.constant 0 : i32
    %c0_i32_1 = arith.constant 0 : i32
    return %c0_i32, %c0_i32_0 : i32, i32
  }
  func.func @transform_6(%arg0: i32) -> (i32, i32) {
    %c0_i32 = arith.constant 0 : i32
    %c0_i32_0 = arith.constant 0 : i32
    %c0_i32_1 = arith.constant 0 : i32
    return %c0_i32, %c0_i32_0 : i32, i32
  }
  func.func @transform_7(%arg0: i32) -> (i32, i32) {
    %c0_i32 = arith.constant 0 : i32
    %c0_i32_0 = arith.constant 0 : i32
    %c0_i32_1 = arith.constant 0 : i32
    return %c0_i32, %c0_i32_0 : i32, i32
  }
  func.func @transform_8(%arg0: i32) -> (i32, i32) {
    %c0_i32 = arith.constant 0 : i32
    %c0_i32_0 = arith.constant 0 : i32
    %c0_i32_1 = arith.constant 0 : i32
    return %c0_i32, %c0_i32_0 : i32, i32
  }
  func.func @transform_9(%arg0: i32) -> (i32, i32) {
    %c0_i32 = arith.constant 0 : i32
    %c0_i32_0 = arith.constant 0 : i32
    %c0_i32_1 = arith.constant 0 : i32
    return %c0_i32, %c0_i32_0 : i32, i32
  }
  func.func @transform_10(%arg0: i32) -> (i32, i32) {
    %c0_i32 = arith.constant 0 : i32
    %c0_i32_0 = arith.constant 0 : i32
    %c0_i32_1 = arith.constant 0 : i32
    return %c0_i32, %c0_i32_0 : i32, i32
  }
  func.func @transform_11(%arg0: i32) -> (i32, i32, i32) {
    %c0_i32 = arith.constant 0 : i32
    %c0_i32_0 = arith.constant 0 : i32
    %c0_i32_1 = arith.constant 0 : i32
    return %arg0, %c0_i32, %c0_i32_0 : i32, i32, i32
  }
}

</mosaic_0001>

<bundles_post_ra>
// kernel: forward.1
= control target key start
LH: loop header
LB: loop body
LE: loop exit
PB: predicated region body
PF: predicated region fallthrough
CT: control target
= control target key end

     0   :  { %16 = vsyncpa [#allocation3], 0  ;;  %s7817_s0 = inlined_call_operand.vmem [shape: f32[2,2,128], index: 0, kind: input, shape index: {}]   ;;  %s7818_s1 = inlined_call_operand.vmem [shape: f32[2,4,128], index: 1, kind: input, shape index: {}]   ;;  %s7819_s2 = inlined_call_operand.vmem [shape: f32[2,8,128], index: 2, kind: input, shape index: {}]   ;;  %s7820_s3 = inlined_call_operand.vmem [shape: f32[2,16,128], index: 3, kind: input, shape index: {}]   ;;  %s7821_s4 = inlined_call_operand.vmem [shape: f32[2,32,128], index: 4, kind: input, shape index: {}]   ;;  %s7822_s5 = inlined_call_operand.vmem [shape: f32[4,2], index: 5, kind: input, shape index: {}]   ;;  %s7823_s6 = inlined_call_operand.vmem [shape: f32[8,4], index: 6, kind: input, shape index: {}]   ;;  %s7824_s7 = inlined_call_operand.vmem [shape: f32[16,8], index: 7, kind: input, shape index: {}]   ;;  %s7825_s8 = inlined_call_operand.vmem [shape: f32[32,16], index: 8, kind: input, shape index: {}]   ;;  %s7826_s9 = inlined_call_operand.hbm [shape: bf16[4736,128], index: 9, kind: input, shape index: {}]   ;;  %s7827_s10 = inlined_call_operand.hbm [shape: f32[40,128], index: 10, kind: input, shape index: {}]   ;;  %s7828_s11 = inlined_call_operand.vmem [shape: f32[2,32,128], index: 11, kind: output, shape index: {}]  }
   0x1   :  { %17 = vsyncpa [#allocation5], 0  ;;  %s7309_s17 = smov 0  }
   0x2 LB: > { %s7241_s18 = smov [#allocation2]   ;;  %s7315_s20 = sadd.s32 4294967295, %s7239_s17   ;;  %s7239_s17 = sphi %s7309_s17, %s23_s17  }
   0x3   : > { %s334_s19 = sshll.u32 %s7241_s18, 4  ;;  %p5321_p0 = scmp.ge.s32.totalorder %s7239_s17, 1  ;;  %s335_s19 = int_to_ptr.vmem [resolvable:$true] %s334_s19 }
   0x4   : > { %p310_p1 = scmp.lt.s32.totalorder %s7239_s17, 3  ;;  %p7829_p3 = scmp.eq.s32.totalorder %s7315_s20, 0 }
   0x5   : > { %s7242_s22 = smov [#allocation4]   ;;  %s7169_s27 = scalar_lea.hbm %s7826_s9, 37888 }
   0x6   : > { %p7319_p2 = pnand %p5321_p0, %p310_p1  ;;  %s347_s23 = sshll.u32 %s7242_s22, 4  ;;  %s7332_s23 = int_to_ptr.vmem [resolvable:$true] %s347_s23 }
   0x7   : > { %p7170_p6 = scmp.ne.s32.totalorder %s7826_s9, %s7169_s27  ;;  %p7176_p10 = scmp.lt.u32.totalorder %s7169_s27, %s7826_s9 }
   0x8   : > { %s7831_s21 = scalar_select %p7319_p2, 1, 0 }
   0x9   : > { %p6846_p4 = pneg %p7319_p2 }
   0xb   : > { %p7328_p5 = pnand %p7829_p3, %p6846_p4 }
   0xd   : > { %p7171_p7 = pneg %p7328_p5 }
   0xf   : > { %p7172_p8 = pnand %p7171_p7, %p7170_p6 }
  0x11   : > { %p7173_p9 = pneg %p7172_p8 }
  0x13   : > { %p7178_p11 = pnand %p7176_p10, %p7173_p9 }
  0x15   : > { %7181 = shalt.err (!%p7178_p11)
}
  0x16   : > { %s7182_s13 = scalar_lea.vmem %s335_s19, 37888  ;;  %p7190_p1 = scmp.lt.s32.totalorder %s335_s19, %s335_s19 }
  0x17   : > { %p7183_p12 = scmp.ne.s32.totalorder %s335_s19, %s7182_s13  ;;  %p7191_p4 = scmp.lt.s32.totalorder %s7182_s13, %s7182_s13 }
  0x19   : > { %p7185_p13 = pnand %p7183_p12, %p7171_p7  ;;  %p7192_p3 = por %p7191_p4, %p7190_p1 }
  0x1b   : > { %p7186_p0 = pneg %p7185_p13 }
  0x1d   : > { %p7193_p2 = pnand %p7192_p3, %p7186_p0 }
  0x1f   : > { %7196 = shalt.err (!%p7193_p2)
}
  0x20   : > { %s7243_s14 = smov 64   ;;  %s7244_s15 = smov 4  }
  0x21   : > { %6849 = dma.hbm_to_vmem [thread:$0]  (!%p7328_p5), %s7826_s9, 37888, %s335_s19, [#allocation3], %s7243_s14, %s7243_s14, %s7244_s15  }
  0x22   : > { %s7197_s26 = scalar_lea.hbm %s7827_s10, 640 }
  0x23   : > { %p7198_p6 = scmp.ne.s32.totalorder %s7827_s10, %s7197_s26  ;;  %p7204_p8 = scmp.lt.u32.totalorder %s7197_s26, %s7827_s10 }
  0x25   : > { %p7200_p2 = pnand %p7198_p6, %p7171_p7 }
  0x27   : > { %p7201_p3 = pneg %p7200_p2 }
  0x29   : > { %p7206_p9 = pnand %p7204_p8, %p7201_p3 }
  0x2b   : > { %7209 = shalt.err (!%p7206_p9)
}
  0x2c   : > { %s7210_s19 = scalar_lea.vmem %s7332_s23, 640  ;;  %p7218_p13 = scmp.lt.s32.totalorder %s7332_s23, %s7332_s23 }
  0x2d   : > { %p7211_p10 = scmp.ne.s32.totalorder %s7332_s23, %s7210_s19  ;;  %p7219_p0 = scmp.lt.s32.totalorder %s7210_s19, %s7210_s19 }
  0x2f   : > { %p7213_p11 = pnand %p7211_p10, %p7171_p7  ;;  %p7220_p1 = por %p7219_p0, %p7218_p13 }
  0x31   : > { %p7214_p12 = pneg %p7213_p11 }
  0x33   : > { %p7221_p4 = pnand %p7220_p1, %p7214_p12 }
  0x35   : > { %7224 = shalt.err (!%p7221_p4)
}
  0x36   : > { %s7245_s12 = smov 128   ;;  %s7246_s13 = smov 8  }
  0x37   : > { %6852 = dma.hbm_to_vmem [thread:$0]  (!%p7328_p5), %s7827_s10, 640, %s7332_s23, [#allocation5], %s7245_s12, %s7245_s12, %s7246_s13  }
  0x38   : > { %p7833_p6 = scmp.ne.s32.totalorder %s7831_s21, 0 }
  0x39   : > { %p7834_p7 = scmp.eq.s32.totalorder (!%p7833_p6), %s7315_s20, 0 }
  0x3a   : > { %400 = sbr.rel (%p7833_p6) target bundleno = 3232 (0xca0), region = 64 }
  0x41   : > { %7230 = dma.done.wait (%p7834_p7), [#allocation3], 37888   ;;  %p7835_p2 = pmov %p7834_p7 }
  0x43   : > { %7232 = vsyncadd (%p7835_p2), [#allocation3], 4294929408  ;;  %p7836_p3 = pmov %p7835_p2 }
  0x44   : > { %p7837_p8 = pmov %p7835_p2 }
  0x45   : > { %7234 = dma.done.wait (%p7836_p3), [#allocation5], 640  }
  0x46   : > { %7236 = vsyncadd (%p7837_p8), [#allocation5], 4294966656  ;;  %p461_p9 = scmp.lt.s32.totalorder %s7315_s20, 1  ;;  %v7247_v0 = vmov 0.0   ;;  %vm7248_vm0 = vmmov 0   ;;  %vm495_vm1 = vcmask 1041408  }
  0x47   : > { %6021 = vmatprep.subr.mxu0 %v7247_v0  ;;  %6023 = vmatprep.mubr.msk.f32.mxu0 %vm7248_vm0, %v7247_v0  ;;  %vm491_vm2 = vcmask 15360   ;;  %v490_v2 = vld [vmem:[%s7822_s5] sm:$0xf]  ;;  %v6874_v4 = vld [vmem:[#allocation2 + $0x8] sm:$0xff]   ;;  %v6875_v5 = vld [vmem:[#allocation2 + $0x10] sm:$0xff]   ;;  %vm887_vm3 = vcmask 1040384  }
  0x48   : > { %s7839_s20 = smov (!%p461_p9, %s7315_s20), 1  ;;  %6026 = vmatprep.subr.bf16.mxu1 %v7247_v0  ;;  %6042 = vmatprep.mubr.msk.bf16.mxu1 %vm7248_vm0, %v7247_v0  ;;  %v6873_v3 = vld [vmem:[#allocation2] sm:$0xff]   ;;  %v6876_v7 = vld [vmem:[#allocation2 + $0x18] sm:$0xff]   ;;  %v6883_v8 = vld [vmem:[#allocation2 + $0x48] sm:$0xff]   ;;  %vm893_vm4 = vcmask 1042432   ;;  %vm1573_vm5 = vcmask 1043456  }
  0x49   : > { %s5328_s21 = sshll.u32 %s7839_s20, 1  ;;  %6027 = vmatpush3.bf16.msra.mxu1 %v6873_v3  ;;  %v6881_v6 = vld [vmem:[#allocation2 + $0x40] sm:$0xff]   ;;  %v6885_v10 = vld [vmem:[#allocation2 + $0x50] sm:$0xff]   ;;  %v6878_v11 = vld [vmem:[#allocation2 + $0x28] sm:$0xff]   ;;  %s5329_s25 = sshll.u32 %s7839_s20, 2  ;;  %vm1569_vm6 = vcmask 31744  }
  0x4a   : > { %s464_s16 = scalar_lea.vmem %s7817_s0, %s5328_s21  ;;  %6028 = vmatprep.subr.bf16.mxu1 %v7247_v0  ;;  %v6877_v9 = vld [vmem:[#allocation2 + $0x20] sm:$0xff]   ;;  %v6887_v12 = vld [vmem:[#allocation2 + $0x58] sm:$0xff]   ;;  %v6879_v13 = vld [vmem:[#allocation2 + $0x30] sm:$0xff]   ;;  %s468_s28 = scalar_lea.vmem %s7818_s1, %s5329_s25  ;;  %vm1970_vm7 = vcmask 1046528   ;;  %vm2647_vm8 = vcmask 64512   ;;  %vm3777_vm9 = vcmask 130048  }
  0x4b   : > { %v489_v1 = vld [vmem:[%s464_s16] sm:$0x3]  ;;  %v6880_v15 = vld [vmem:[#allocation2 + $0x38] sm:$0xff]   ;;  %v6891_v17 = vld [vmem:[#allocation2 + $0x68] sm:$0xff]   ;;  %s5330_s29 = sshll.u32 %s7839_s20, 3  ;;  %s5662_s23 = sshll.u32 %s7839_s20, 4 }
  0x4c   : > { %6022 = vmatpush3.msk.msra.mxu0 %vm495_vm1, %v489_v1  ;;  %v6889_v14 = vld [vmem:[#allocation2 + $0x60] sm:$0xff]   ;;  %v6893_v20 = vld [vmem:[#allocation2 + $0x70] sm:$0xff]   ;;  %v6884_v21 = vld [vmem:[#allocation2 + $0x88] sm:$0xff]   ;;  %s472_s12 = scalar_lea.vmem %s7819_s2, %s5330_s29  ;;  %s477_s18 = scalar_lea.vmem %s7820_s3, %s5662_s23 }
  0x4d   : > { %6024 = vmatmul.mubr.msk.f32.vlgmr.msra.gmra.mrb[0].mxu0 %vm491_vm2, %v490_v2  ;;  %6046 = vmatprep.subr.bf16.mxu0 %v7247_v0  ;;  %v570_v16 = vld [vmem:[%s468_s28] sm:$0xf]  ;;  %v6895_v22 = vld [vmem:[#allocation2 + $0x78] sm:$0xff]   ;;  %v6886_v23 = vld [vmem:[#allocation2 + $0x90] sm:$0xff]   ;;  %s5663_s28 = sshll.u32 %s7839_s20, 5 }
  0x4e   : > { %6062 = vmatprep.mubr.msk.bf16.mxu0 %vm7248_vm0, %v7247_v0  ;;  %6029 = vmatpush3.bf16.msra.mxu1 %v6874_v4  ;;  %v571_v18 = vpack.c.bf16 %v570_v16, %v570_v16  ;;  %v6882_v19 = vld [vmem:[#allocation2 + $0x80] sm:$0xff]   ;;  %v6888_v25 = vld [vmem:[#allocation2 + $0x98] sm:$0xff]   ;;  %v6899_v26 = vld [vmem:[#allocation2 + $0xc8] sm:$0xff]   ;;  %s482_s19 = scalar_lea.vmem %s7821_s4, %s5663_s28 }
  0x4f   : > { %6030 = vmatprep.subr.bf16.mxu1 %v7247_v0  ;;  %6047 = vmatpush3.bf16.msra.mxu0 %v6881_v6  ;;  %v6897_v24 = vld [vmem:[#allocation2 + $0xc0] sm:$0xff]   ;;  %v6901_v28 = vld [vmem:[#allocation2 + $0xd0] sm:$0xff]   ;;  %v6892_v29 = vld [vmem:[#allocation2 + $0xa8] sm:$0xff]  }
  0x50   : > { %6048 = vmatprep.subr.bf16.mxu0 %v7247_v0  ;;  %v6890_v27 = vld [vmem:[#allocation2 + $0xa0] sm:$0xff]   ;;  %v6903_v30 = vld [vmem:[#allocation2 + $0xd8] sm:$0xff]   ;;  %v6894_v31 = vld [vmem:[#allocation2 + $0xb0] sm:$0xff]  }
  0x51   : > { %v6905_v32 = vld [vmem:[#allocation2 + $0xe0] sm:$0xff]   ;;  %v6896_v33 = vld [vmem:[#allocation2 + $0xb8] sm:$0xff]   ;;  %v6907_v34 = vld [vmem:[#allocation2 + $0xe8] sm:$0xff]  }
  0x52   : > { %6031 = vmatpush3.bf16.msra.mxu1 %v6875_v5  ;;  %v6898_v35 = vld [vmem:[#allocation2 + $0x140] sm:$0xff]   ;;  %v6909_v36 = vld [vmem:[#allocation2 + $0xf0] sm:$0xff]   ;;  %v6900_v37 = vld [vmem:[#allocation2 + $0x148] sm:$0xff]  }
  0x53   : > { %6032 = vmatprep.subr.bf16.mxu1 %v7247_v0  ;;  %6049 = vmatpush3.bf16.msra.mxu0 %v6883_v8  ;;  %v6911_v38 = vld [vmem:[#allocation2 + $0xf8] sm:$0xff]   ;;  %v6902_v39 = vld [vmem:[#allocation2 + $0x150] sm:$0xff]   ;;  %v6906_v41 = vld [vmem:[#allocation2 + $0x160] sm:$0xff]  }
  0x54   : > { %6050 = vmatprep.subr.bf16.mxu0 %v7247_v0  ;;  %v6904_v40 = vld [vmem:[#allocation2 + $0x158] sm:$0xff]   ;;  %v6908_v42 = vld [vmem:[#allocation2 + $0x168] sm:$0xff]   ;;  %v6910_v43 = vld [vmem:[#allocation2 + $0x170] sm:$0xff]  }
  0x55   : > { %v6912_v44 = vld [vmem:[#allocation2 + $0x178] sm:$0xff]   ;;  %v6913_v46 = vld [vmem:[#allocation2 + $0x100] sm:$0xff]   ;;  %v6914_v49 = vld [vmem:[#allocation2 + $0x108] sm:$0xff]  }
  0x56   : > { %6033 = vmatpush3.bf16.msra.mxu1 %v6876_v7  ;;  %v6915_v50 = vld [vmem:[#allocation2 + $0x110] sm:$0xff]   ;;  %v6916_v51 = vld [vmem:[#allocation2 + $0x118] sm:$0xff]   ;;  %v6917_v52 = vld [vmem:[#allocation2 + $0x120] sm:$0xff]  }
  0x57   : > { %6034 = vmatprep.subr.bf16.mxu1 %v7247_v0  ;;  %6051 = vmatpush3.bf16.msra.mxu0 %v6885_v10  ;;  %v6918_v53 = vld [vmem:[#allocation2 + $0x128] sm:$0xff]   ;;  %v6919_v54 = vld [vmem:[#allocation2 + $0x130] sm:$0xff]   ;;  %v6920_v55 = vld [vmem:[#allocation2 + $0x138] sm:$0xff]  }
  0x58   : > { %6052 = vmatprep.subr.bf16.mxu0 %v7247_v0  ;;  %v6921_v6 = vld [vmem:[#allocation2 + $0x180] sm:$0xff]   ;;  %v6923_v8 = vld [vmem:[#allocation2 + $0x188] sm:$0xff]   ;;  %v6925_v10 = vld [vmem:[#allocation2 + $0x190] sm:$0xff]  }
  0x59   : > { %v6922_v7 = vld [vmem:[#allocation2 + $0x1c0] sm:$0xff]   ;;  %v6931_v16 = vld [vmem:[#allocation2 + $0x1a8] sm:$0xff]  }
  0x5a   : > { %6035 = vmatpush3.bf16.msra.mxu1 %v6877_v9  ;;  %v6924_v9 = vld [vmem:[#allocation2 + $0x1c8] sm:$0xff]  }
  0x5b   : > { %6036 = vmatprep.subr.bf16.mxu1 %v7247_v0  ;;  %6053 = vmatpush3.bf16.msra.mxu0 %v6887_v12  ;;  %v6927_v12 = vld [vmem:[#allocation2 + $0x198] sm:$0xff]  }
  0x5c   : > { %6054 = vmatprep.subr.bf16.mxu0 %v7247_v0 }
  0x5e   : > { %6037 = vmatpush3.bf16.msra.mxu1 %v6878_v11  ;;  %v6926_v11 = vld [vmem:[#allocation2 + $0x1d0] sm:$0xff]  }
  0x5f   : > { %6038 = vmatprep.subr.bf16.mxu1 %v7247_v0  ;;  %6055 = vmatpush3.bf16.msra.mxu0 %v6889_v14  ;;  %v6929_v14 = vld [vmem:[#allocation2 + $0x1a0] sm:$0xff]  }
  0x60   : > { %6056 = vmatprep.subr.bf16.mxu0 %v7247_v0 }
  0x62   : > { %6039 = vmatpush3.bf16.msra.mxu1 %v6879_v13  ;;  %v6928_v13 = vld [vmem:[#allocation2 + $0x1d8] sm:$0xff]  }
  0x63   : > { %6040 = vmatprep.subr.bf16.mxu1 %v7247_v0  ;;  %6057 = vmatpush3.bf16.msra.mxu0 %v6891_v17  ;;  %v6932_v17 = vld [vmem:[#allocation2 + $0x1e8] sm:$0xff]  }
  0x64   : > { %6058 = vmatprep.subr.bf16.mxu0 %v7247_v0 }
  0x66   : > { %6041 = vmatpush3.bf16.msra.mxu1 %v6880_v15  ;;  %v6930_v15 = vld [vmem:[#allocation2 + $0x1e0] sm:$0xff]  }
  0x67   : > { %6066 = vmatprep.subr.bf16.mxu1 %v7247_v0  ;;  %6059 = vmatpush3.bf16.msra.mxu0 %v6893_v20  ;;  %v6935_v20 = vld [vmem:[#allocation2 + $0x1b8] sm:$0xff]  }
  0x68   : > { %6060 = vmatprep.subr.bf16.mxu0 %v7247_v0 }
  0x69   : > { %6043 = vmatmul.mubr.bf16.vlgmr.msra.gmra.mrb[0].mxu1 %v571_v18 }
  0x6a   : > { %6067 = vmatpush3.bf16.msra.mxu1 %v6882_v19  ;;  %6082 = vmatprep.mubr.msk.bf16.mxu1 %vm7248_vm0, %v7247_v0  ;;  %v6934_v19 = vld [vmem:[#allocation2 + $0x1f0] sm:$0xff]  }
  0x6b   : > { %6068 = vmatprep.subr.bf16.mxu1 %v7247_v0  ;;  %6061 = vmatpush3.bf16.msra.mxu0 %v6895_v22 }
  0x6c   : > { %6086 = vmatprep.subr.bf16.mxu0 %v7247_v0 }
  0x6e   : > { %6069 = vmatpush3.bf16.msra.mxu1 %v6884_v21  ;;  %6063 = vmatmul.mubr.bf16.vlgmr.msra.gmra.mrb[4].mxu0 %v571_v18  ;;  %v6936_v21 = vld [vmem:[#allocation2 + $0x1f8] sm:$0xff]  }
  0x6f   : > { %6070 = vmatprep.subr.bf16.mxu1 %v7247_v0  ;;  %6087 = vmatpush3.bf16.msra.mxu0 %v6897_v24 }
  0x70   : > { %6088 = vmatprep.subr.bf16.mxu0 %v7247_v0  ;;  %6102 = vmatprep.mubr.msk.bf16.mxu0 %vm7248_vm0, %v7247_v0 }
  0x72   : > { %6071 = vmatpush3.bf16.msra.mxu1 %v6886_v23 }
  0x73   : > { %6072 = vmatprep.subr.bf16.mxu1 %v7247_v0  ;;  %6089 = vmatpush3.bf16.msra.mxu0 %v6899_v26 }
  0x74   : > { %6090 = vmatprep.subr.bf16.mxu0 %v7247_v0 }
  0x76   : > { %6073 = vmatpush3.bf16.msra.mxu1 %v6888_v25 }
  0x77   : > { %6074 = vmatprep.subr.bf16.mxu1 %v7247_v0  ;;  %6091 = vmatpush3.bf16.msra.mxu0 %v6901_v28 }
  0x78   : > { %6092 = vmatprep.subr.bf16.mxu0 %v7247_v0 }
  0x7a   : > { %6075 = vmatpush3.bf16.msra.mxu1 %v6890_v27 }
  0x7b   : > { %6076 = vmatprep.subr.bf16.mxu1 %v7247_v0  ;;  %6093 = vmatpush3.bf16.msra.mxu0 %v6903_v30 }
  0x7c   : > { %6094 = vmatprep.subr.bf16.mxu0 %v7247_v0 }
  0x7e   : > { %6077 = vmatpush3.bf16.msra.mxu1 %v6892_v29 }
  0x7f   : > { %6078 = vmatprep.subr.bf16.mxu1 %v7247_v0  ;;  %6095 = vmatpush3.bf16.msra.mxu0 %v6905_v32 }
  0x80   : > { %6096 = vmatprep.subr.bf16.mxu0 %v7247_v0 }
  0x82   : > { %6079 = vmatpush3.bf16.msra.mxu1 %v6894_v31 }
  0x83   : > { %6080 = vmatprep.subr.bf16.mxu1 %v7247_v0  ;;  %6097 = vmatpush3.bf16.msra.mxu0 %v6907_v34 }
  0x84   : > { %6098 = vmatprep.subr.bf16.mxu0 %v7247_v0 }
  0x86   : > { %6081 = vmatpush3.bf16.msra.mxu1 %v6896_v33 }
  0x87   : > { %6126 = vmatprep.subr.bf16.mxu1 %v7247_v0  ;;  %6099 = vmatpush3.bf16.msra.mxu0 %v6909_v36 }
  0x88   : > { %6100 = vmatprep.subr.bf16.mxu0 %v7247_v0 }
  0x89   : > { %6083 = vmatmul.mubr.bf16.vlgmr.msra.gmra.mrb[4].mxu1 %v571_v18  ;;  %v6933_v18 = vld [vmem:[#allocation2 + $0x1b0] sm:$0xff]  }
  0x8a   : > { %6127 = vmatpush3.bf16.msra.mxu1 %v6898_v35  ;;  %6142 = vmatprep.mubr.msk.bf16.mxu1 %vm7248_vm0, %v7247_v0 }
  0x8b   : > { %6128 = vmatprep.subr.bf16.mxu1 %v7247_v0  ;;  %6101 = vmatpush3.bf16.msra.mxu0 %v6911_v38 }
  0x8c   : > { %6106 = vmatprep.subr.bf16.mxu0 %v7247_v0 }
  0x8e   : > { %6129 = vmatpush3.bf16.msra.mxu1 %v6900_v37 }
  0x8f   : > { %6130 = vmatprep.subr.bf16.mxu1 %v7247_v0 }
  0x92   : > { %6131 = vmatpush3.bf16.msra.mxu1 %v6902_v39 }
  0x93   : > { %6132 = vmatprep.subr.bf16.mxu1 %v7247_v0 }
  0x96   : > { %6133 = vmatpush3.bf16.msra.mxu1 %v6904_v40  ;;  %v5387_v40 = vld [vmem:[#allocation4] ss:$0 sm:$0xff] }
  0x97   : > { %6134 = vmatprep.subr.bf16.mxu1 %v7247_v0 }
  0x9a   : > { %6135 = vmatpush3.bf16.msra.mxu1 %v6906_v41 }
  0x9b   : > { %6136 = vmatprep.subr.bf16.mxu1 %v7247_v0 }
  0x9e   : > { %6137 = vmatpush3.bf16.msra.mxu1 %v6908_v42  ;;  %v5388_v42 = vld [vmem:[#allocation4 + $0x1] ss:$0 sm:$0xff] }
  0x9f   : > { %6138 = vmatprep.subr.bf16.mxu1 %v7247_v0 }
  0xa2   : > { %6139 = vmatpush3.bf16.msra.mxu1 %v6910_v43 }
  0xa3   : > { %6140 = vmatprep.subr.bf16.mxu1 %v7247_v0 }
  0xa6   : > { %6141 = vmatpush3.bf16.msra.mxu1 %v6912_v44 }
  0xa7   : > { %6146 = vmatprep.subr.bf16.mxu1 %v7247_v0 }
 0x120   : > { %v565_v45 = vpop.f32.mrb[0].mxu0 }
 0x121   : > { %v569_v47 = vpack.c.bf16 %v565_v45, %v565_v45  ;;  %v6025_v48 = vpop.f32.mrb[1].mxu0 }
 0x122   : > { %v6938_v48 = vld [vmem:[#allocation2 + $0x208] sm:$0xff]  }
 0x123   : > { %6103 = vmatmul.mubr.bf16.vlgmr.msra.gmra.mrb[8].mxu0 %v569_v47  ;;  %6143 = vmatmul.mubr.bf16.vlgmr.msra.gmra.mrb[8].mxu1 %v569_v47 }
 0x124   : > { %6107 = vmatpush3.bf16.msra.mxu0 %v6913_v46  ;;  %6122 = vmatprep.mubr.msk.bf16.mxu0 %vm7248_vm0, %v7247_v0  ;;  %v6937_v46 = vld [vmem:[#allocation2 + $0x200] sm:$0xff]  }
 0x125   : > { %6108 = vmatprep.subr.bf16.mxu0 %v7247_v0  ;;  %6162 = vmatprep.mubr.msk.bf16.mxu1 %vm7248_vm0, %v7247_v0 }
 0x126   : > { %6147 = vmatpush3.bf16.msra.mxu1 %v6921_v6  ;;  %v6977_v6 = vld [vmem:[#allocation2 + $0x320] sm:$0xff]  }
 0x127   : > { %6148 = vmatprep.subr.bf16.mxu1 %v7247_v0 }
 0x128   : > { %6109 = vmatpush3.bf16.msra.mxu0 %v6914_v49  ;;  %v6939_v49 = vld [vmem:[#allocation2 + $0x210] sm:$0xff]  }
 0x129   : > { %6110 = vmatprep.subr.bf16.mxu0 %v7247_v0 }
 0x12a   : > { %6149 = vmatpush3.bf16.msra.mxu1 %v6923_v8 }
 0x12b   : > { %6150 = vmatprep.subr.bf16.mxu1 %v7247_v0 }
 0x12c   : > { %6111 = vmatpush3.bf16.msra.mxu0 %v6915_v50  ;;  %v6940_v50 = vld [vmem:[#allocation2 + $0x218] sm:$0xff]  }
 0x12d   : > { %6112 = vmatprep.subr.bf16.mxu0 %v7247_v0 }
 0x12e   : > { %6151 = vmatpush3.bf16.msra.mxu1 %v6925_v10 }
 0x12f   : > { %6152 = vmatprep.subr.bf16.mxu1 %v7247_v0 }
 0x130   : > { %6113 = vmatpush3.bf16.msra.mxu0 %v6916_v51  ;;  %v6941_v51 = vld [vmem:[#allocation2 + $0x220] sm:$0xff]  }
 0x131   : > { %6114 = vmatprep.subr.bf16.mxu0 %v7247_v0 }
 0x132   : > { %6153 = vmatpush3.bf16.msra.mxu1 %v6927_v12 }
 0x133   : > { %6154 = vmatprep.subr.bf16.mxu1 %v7247_v0 }
 0x134   : > { %6115 = vmatpush3.bf16.msra.mxu0 %v6917_v52  ;;  %v6942_v52 = vld [vmem:[#allocation2 + $0x228] sm:$0xff]  }
 0x135   : > { %6116 = vmatprep.subr.bf16.mxu0 %v7247_v0 }
 0x136   : > { %6155 = vmatpush3.bf16.msra.mxu1 %v6929_v14 }
 0x137   : > { %6156 = vmatprep.subr.bf16.mxu1 %v7247_v0 }
 0x138   : > { %6117 = vmatpush3.bf16.msra.mxu0 %v6918_v53  ;;  %v6943_v53 = vld [vmem:[#allocation2 + $0x230] sm:$0xff]  }
 0x139   : > { %6118 = vmatprep.subr.bf16.mxu0 %v7247_v0 }
 0x13a   : > { %6157 = vmatpush3.bf16.msra.mxu1 %v6931_v16 }
 0x13b   : > { %6158 = vmatprep.subr.bf16.mxu1 %v7247_v0 }
 0x13c   : > { %6119 = vmatpush3.bf16.msra.mxu0 %v6919_v54  ;;  %v670_v56 = vpop.f32.mrb[0].mxu1  ;;  %v6944_v54 = vld [vmem:[#allocation2 + $0x238] sm:$0xff]  }
 0x13d   : > { %6120 = vmatprep.subr.bf16.mxu0 %v7247_v0  ;;  %v6044_v57 = vpop.f32.mrb[1].mxu1  ;;  %v885_v60 = vrot.slane %v670_v56, 7  ;;  %v6955_v56 = vld [vmem:[#allocation2 + $0x288] sm:$0xff]  }
 0x13e   : > { %v673_v58 = vpop.f32.mrb[2].mxu1  ;;  %6159 = vmatpush3.bf16.msra.mxu1 %v6933_v18  ;;  %v6957_v57 = vld [vmem:[#allocation2 + $0x290] sm:$0xff]  }
 0x13f   : > { %v6045_v59 = vpop.f32.mrb[3].mxu1  ;;  %v888_v62 = vsel %vm887_vm3, 0.0, %v885_v60  ;;  %6160 = vmatprep.subr.bf16.mxu1 %v7247_v0  ;;  %v6959_v58 = vld [vmem:[#allocation2 + $0x298] sm:$0xff]   ;;  %v6963_v60 = vld [vmem:[#allocation2 + $0x2a8] sm:$0xff]  }
 0x140   : > { %6121 = vmatpush3.bf16.msra.mxu0 %v6920_v55  ;;  %v6953_v55 = vld [vmem:[#allocation2 + $0x280] sm:$0xff]  }
 0x141   : > { %6166 = vmatprep.subr.bf16.mxu0 %v7247_v0  ;;  %v6961_v59 = vld [vmem:[#allocation2 + $0x2a0] sm:$0xff]  }
 0x142   : > { %6161 = vmatpush3.bf16.msra.mxu1 %v6935_v20  ;;  %v6983_v20 = vld [vmem:[#allocation2 + $0x338] sm:$0xff]  }
 0x143   : > { %6123 = vmatmul.mubr.bf16.vlgmr.msra.gmra.mrb[4].mxu0 %v569_v47  ;;  %6186 = vmatprep.subr.bf16.mxu1 %v7247_v0 }
 0x144   : > { %6182 = vmatprep.mubr.msk.bf16.mxu0 %vm7248_vm0, %v7247_v0  ;;  %6167 = vmatpush3.bf16.msra.mxu0 %v6922_v7  ;;  %v6979_v7 = vld [vmem:[#allocation2 + $0x328] sm:$0xff]  }
 0x145   : > { %6168 = vmatprep.subr.bf16.mxu0 %v7247_v0 }
 0x148   : > { %6169 = vmatpush3.bf16.msra.mxu0 %v6924_v9 }
 0x149   : > { %6170 = vmatprep.subr.bf16.mxu0 %v7247_v0 }
 0x14c   : > { %6171 = vmatpush3.bf16.msra.mxu0 %v6926_v11 }
 0x14d   : > { %6172 = vmatprep.subr.bf16.mxu0 %v7247_v0 }
 0x150   : > { %6173 = vmatpush3.bf16.msra.mxu0 %v6928_v13 }
 0x151   : > { %6174 = vmatprep.subr.bf16.mxu0 %v7247_v0 }
 0x154   : > { %6175 = vmatpush3.bf16.msra.mxu0 %v6930_v15  ;;  %v6981_v15 = vld [vmem:[#allocation2 + $0x330] sm:$0xff]  }
 0x155   : > { %6176 = vmatprep.subr.bf16.mxu0 %v7247_v0 }
 0x158   : > { %6177 = vmatpush3.bf16.msra.mxu0 %v6932_v17 }
 0x159   : > { %6178 = vmatprep.subr.bf16.mxu0 %v7247_v0 }
 0x15c   : > { %v878_v61 = vpop.f32.mrb[4].mxu1  ;;  %6179 = vmatpush3.bf16.msra.mxu0 %v6934_v19 }
 0x15d   : > { %v891_v63 = vrot.slane %v878_v61, 1  ;;  %v6084_v1 = vpop.f32.mrb[5].mxu1  ;;  %6180 = vmatprep.subr.bf16.mxu0 %v7247_v0  ;;  %v6965_v61 = vld [vmem:[#allocation2 + $0x2b0] sm:$0xff]  }
 0x15e   : > { %v881_v2 = vpop.f32.mrb[6].mxu1 }
 0x15f   : > { %v894_v3 = vsel %vm893_vm4, %v891_v63, 0.0  ;;  %v6085_v4 = vpop.f32.mrb[7].mxu1  ;;  %v6967_v63 = vld [vmem:[#allocation2 + $0x2b8] sm:$0xff]   ;;  %v6969_v2 = vld [vmem:[#allocation2 + $0x300] sm:$0xff]  }
 0x160   : > { %v6790_v5 = vadd.f32 %v894_v3, %v888_v62  ;;  %6181 = vmatpush3.bf16.msra.mxu0 %v6936_v21  ;;  %v1648_v62 = vld [vmem:[%s472_s12] sm:$0xff]  ;;  %v6971_v3 = vld [vmem:[#allocation2 + $0x308] sm:$0xff]   ;;  %v6973_v4 = vld [vmem:[#allocation2 + $0x310] sm:$0xff]  }
 0x161   : > { %6206 = vmatprep.subr.mxu0 %v7247_v0  ;;  %v7520_v1 = vpack.c.bf16 %v1648_v62, %v1648_v62  ;;  %v6986_v62 = vld [vmem:[#allocation2 + $0x348] sm:$0xff]  }
 0x1f6   : > { %v994_v22 = vpop.f32.mrb[8].mxu0  ;;  %v1202_v23 = vpop.f32.mrb[8].mxu1 }
 0x1f7   : > { %v6104_v24 = vpop.f32.mrb[9].mxu0  ;;  %v6144_v25 = vpop.f32.mrb[9].mxu1  ;;  %v1209_v30 = vrot.slane %v994_v22, 7  ;;  %v1214_v31 = vrot.slane %v1202_v23, 1 }
 0x1f8   : > { %v997_v26 = vpop.f32.mrb[10].mxu0  ;;  %v1205_v27 = vpop.f32.mrb[10].mxu1 }
 0x1f9   : > { %v6105_v28 = vpop.f32.mrb[11].mxu0  ;;  %v6145_v29 = vpop.f32.mrb[11].mxu1  ;;  %v1211_v35 = vsel %vm887_vm3, 0.0, %v1209_v30  ;;  %v1216_v39 = vsel %vm893_vm4, %v1214_v31, 0.0  ;;  %v5413_v26 = vld [vmem:[#allocation4 + $0x2] ss:$0 sm:$0xff] }
 0x1fa   : > { %v5414_v29 = vld [vmem:[#allocation4 + $0x3] ss:$0 sm:$0xff] }
 0x216   : > { %v1098_v32 = vpop.f32.mrb[4].mxu0 }
 0x217   : > { %v6791_v33 = vadd.f32 %v6790_v5, %v1098_v32  ;;  %v6124_v34 = vpop.f32.mrb[5].mxu0  ;;  %v6975_v5 = vld [vmem:[#allocation2 + $0x318] sm:$0xff]  }
 0x218   : > { %v1101_v36 = vpop.f32.mrb[6].mxu0  ;;  %v6945_v34 = vld [vmem:[#allocation2 + $0x240] sm:$0xff]  }
 0x219   : > { %v6792_v37 = vadd.f32 %v6791_v33, %v1211_v35  ;;  %v6125_v38 = vpop.f32.mrb[7].mxu0  ;;  %v1568_v33 = vld [vmem:[%s7823_s6] sm:$0xff]  ;;  %v6946_v35 = vld [vmem:[#allocation2 + $0x248] sm:$0xff]   ;;  %v6947_v36 = vld [vmem:[#allocation2 + $0x250] sm:$0xff]  }
 0x21a   : > { %v6949_v38 = vld [vmem:[#allocation2 + $0x260] sm:$0xff]  }
 0x21b   : > { %v6793_v41 = vadd.f32 %v6792_v37, %v1216_v39  ;;  %v6948_v37 = vld [vmem:[#allocation2 + $0x258] sm:$0xff]   ;;  %v6950_v39 = vld [vmem:[#allocation2 + $0x268] sm:$0xff]  }
 0x21d   : > { %v1224_v43 = vmul.f32 %v6793_v41, %v5387_v40  ;;  %v6951_v40 = vld [vmem:[#allocation2 + $0x270] sm:$0xff]   ;;  %v6952_v41 = vld [vmem:[#allocation2 + $0x278] sm:$0xff]  }
 0x21f   : > { %v1230_v44 = vadd.f32 %v5388_v42, %v1224_v43  ;;  %v6954_v42 = vld [vmem:[#allocation2 + $0x2c0] sm:$0xff]   ;;  %v6956_v43 = vld [vmem:[#allocation2 + $0x2c8] sm:$0xff]  }
 0x221   : > { %v1231_v45 = vmax.f32 %v1230_v44, 0.0  ;;  %v6958_v44 = vld [vmem:[#allocation2 + $0x2d0] sm:$0xff]  }
 0x223   : > { %v1232_v47 = vpack.c.bf16 %v1231_v45, %v1231_v45  ;;  %v6960_v45 = vld [vmem:[#allocation2 + $0x2d8] sm:$0xff]  }
 0x225   : > { %6163 = vmatmul.mubr.bf16.vlgmr.msra.gmra.mrb[12].mxu1 %v1232_v47  ;;  %6183 = vmatmul.mubr.bf16.vlgmr.msra.gmra.mrb[12].mxu0 %v1232_v47 }
 0x226   : > { %6187 = vmatpush3.bf16.msra.mxu1 %v6937_v46  ;;  %6202 = vmatprep.mubr.msk.bf16.mxu1 %vm7248_vm0, %v7247_v0  ;;  %v6962_v46 = vld [vmem:[#allocation2 + $0x2e0] sm:$0xff]  }
 0x227   : > { %6188 = vmatprep.subr.bf16.mxu1 %v7247_v0  ;;  %6208 = vmatprep.mubr.msk.f32.mxu0 %vm7248_vm0, %v7247_v0 }
 0x22a   : > { %6189 = vmatpush3.bf16.msra.mxu1 %v6938_v48  ;;  %v6966_v48 = vld [vmem:[#allocation2 + $0x2f0] sm:$0xff]  }
 0x22b   : > { %6190 = vmatprep.subr.bf16.mxu1 %v7247_v0 }
 0x22e   : > { %6191 = vmatpush3.bf16.msra.mxu1 %v6939_v49  ;;  %v6968_v49 = vld [vmem:[#allocation2 + $0x2f8] sm:$0xff]  }
 0x22f   : > { %6192 = vmatprep.subr.bf16.mxu1 %v7247_v0 }
 0x232   : > { %6193 = vmatpush3.bf16.msra.mxu1 %v6940_v50  ;;  %v6970_v50 = vld [vmem:[#allocation2 + $0x380] sm:$0xff]  }
 0x233   : > { %6194 = vmatprep.subr.bf16.mxu1 %v7247_v0 }
 0x236   : > { %6195 = vmatpush3.bf16.msra.mxu1 %v6941_v51  ;;  %v6972_v51 = vld [vmem:[#allocation2 + $0x388] sm:$0xff]  }
 0x237   : > { %6196 = vmatprep.subr.bf16.mxu1 %v7247_v0 }
 0x23a   : > { %6197 = vmatpush3.bf16.msra.mxu1 %v6942_v52  ;;  %v6974_v52 = vld [vmem:[#allocation2 + $0x390] sm:$0xff]  }
 0x23b   : > { %6198 = vmatprep.subr.bf16.mxu1 %v7247_v0 }
 0x23e   : > { %6199 = vmatpush3.bf16.msra.mxu1 %v6943_v53  ;;  %v6976_v53 = vld [vmem:[#allocation2 + $0x398] sm:$0xff]  }
 0x23f   : > { %6200 = vmatprep.subr.bf16.mxu1 %v7247_v0 }
 0x242   : > { %6201 = vmatpush3.bf16.msra.mxu1 %v6944_v54  ;;  %v6978_v54 = vld [vmem:[#allocation2 + $0x3a0] sm:$0xff]  }
 0x243   : > { %6231 = vmatprep.subr.bf16.mxu1 %v7247_v0 }
 0x245   : > { %6203 = vmatmul.mubr.bf16.vlgmr.msra.gmra.mrb[16].mxu1 %v1232_v47  ;;  %v6964_v47 = vld [vmem:[#allocation2 + $0x2e8] sm:$0xff]  }
 0x246   : > { %6247 = vmatprep.mubr.msk.bf16.mxu1 %vm7248_vm0, %v7247_v0  ;;  %6232 = vmatpush3.bf16.msra.mxu1 %v6953_v55  ;;  %v6980_v55 = vld [vmem:[#allocation2 + $0x3a8] sm:$0xff]  }
 0x247   : > { %6233 = vmatprep.subr.bf16.mxu1 %v7247_v0 }
 0x24a   : > { %6234 = vmatpush3.bf16.msra.mxu1 %v6955_v56  ;;  %v6982_v56 = vld [vmem:[#allocation2 + $0x3b0] sm:$0xff]  }
 0x24b   : > { %6235 = vmatprep.subr.bf16.mxu1 %v7247_v0 }
 0x24e   : > { %6236 = vmatpush3.bf16.msra.mxu1 %v6957_v57  ;;  %v6984_v57 = vld [vmem:[#allocation2 + $0x3b8] sm:$0xff]  }
 0x24f   : > { %6237 = vmatprep.subr.bf16.mxu1 %v7247_v0 }
 0x252   : > { %6238 = vmatpush3.bf16.msra.mxu1 %v6959_v58 }
 0x253   : > { %6239 = vmatprep.subr.bf16.mxu1 %v7247_v0 }
 0x256   : > { %6240 = vmatpush3.bf16.msra.mxu1 %v6961_v59  ;;  %v6985_v59 = vld [vmem:[#allocation2 + $0x340] sm:$0xff]  }
 0x257   : > { %6241 = vmatprep.subr.bf16.mxu1 %v7247_v0 }
 0x25a   : > { %6242 = vmatpush3.bf16.msra.mxu1 %v6963_v60 }
 0x25b   : > { %6243 = vmatprep.subr.bf16.mxu1 %v7247_v0 }
 0x25e   : > { %6244 = vmatpush3.bf16.msra.mxu1 %v6965_v61 }
 0x25f   : > { %6245 = vmatprep.subr.bf16.mxu1 %v7247_v0 }
 0x262   : > { %6246 = vmatpush3.bf16.msra.mxu1 %v6967_v63  ;;  %v6987_v63 = vld [vmem:[#allocation2 + $0x350] sm:$0xff]  }
 0x263   : > { %6271 = vmatprep.subr.bf16.mxu1 %v7247_v0 }
 0x265   : > { %6248 = vmatmul.mubr.bf16.vlgmr.msra.gmra.mrb[20].mxu1 %v7520_v1 }
 0x266   : > { %6272 = vmatpush3.bf16.msra.mxu1 %v6969_v2  ;;  %6287 = vmatprep.mubr.msk.bf16.mxu1 %vm7248_vm0, %v7247_v0  ;;  %v6989_v2 = vld [vmem:[#allocation2 + $0x360] sm:$0xff]  }
 0x267   : > { %6273 = vmatprep.subr.bf16.mxu1 %v7247_v0 }
 0x26a   : > { %6274 = vmatpush3.bf16.msra.mxu1 %v6971_v3  ;;  %v6990_v3 = vld [vmem:[#allocation2 + $0x368] sm:$0xff]  }
 0x26b   : > { %6275 = vmatprep.subr.bf16.mxu1 %v7247_v0 }
 0x26e   : > { %6276 = vmatpush3.bf16.msra.mxu1 %v6973_v4  ;;  %v6991_v4 = vld [vmem:[#allocation2 + $0x370] sm:$0xff]  }
 0x26f   : > { %6277 = vmatprep.subr.bf16.mxu1 %v7247_v0 }
 0x272   : > { %6278 = vmatpush3.bf16.msra.mxu1 %v6975_v5  ;;  %v6992_v5 = vld [vmem:[#allocation2 + $0x378] sm:$0xff]  }
 0x273   : > { %6279 = vmatprep.subr.bf16.mxu1 %v7247_v0 }
 0x276   : > { %6280 = vmatpush3.bf16.msra.mxu1 %v6977_v6 }
 0x277   : > { %6281 = vmatprep.subr.bf16.mxu1 %v7247_v0 }
 0x27a   : > { %6282 = vmatpush3.bf16.msra.mxu1 %v6979_v7 }
 0x27b   : > { %6283 = vmatprep.subr.bf16.mxu1 %v7247_v0 }
 0x27e   : > { %6284 = vmatpush3.bf16.msra.mxu1 %v6981_v15 }
 0x27f   : > { %6285 = vmatprep.subr.bf16.mxu1 %v7247_v0 }
 0x282   : > { %6286 = vmatpush3.bf16.msra.mxu1 %v6983_v20  ;;  %v6994_v20 = vld [vmem:[#allocation2 + $0x400] sm:$0xff]  }
 0x283   : > { %6291 = vmatprep.subr.bf16.mxu1 %v7247_v0 }
 0x2f8   : > { %v1331_v8 = vpop.f32.mrb[12].mxu1  ;;  %v1435_v9 = vpop.f32.mrb[12].mxu0 }
 0x2f9   : > { %v1546_v10 = vrot.slane %v1331_v8, 7  ;;  %v6164_v11 = vpop.f32.mrb[13].mxu1  ;;  %v6184_v12 = vpop.f32.mrb[13].mxu0 }
 0x2fa   : > { %v1334_v13 = vpop.f32.mrb[14].mxu1  ;;  %v1438_v14 = vpop.f32.mrb[14].mxu0 }
 0x2fb   : > { %v1548_v16 = vsel %vm887_vm3, 0.0, %v1546_v10  ;;  %v6165_v17 = vpop.f32.mrb[15].mxu1  ;;  %v6185_v18 = vpop.f32.mrb[15].mxu0 }
 0x2fc   : > { %v1549_v19 = vadd.f32 %v1548_v16, %v1435_v9 }
 0x318   : > { %v1539_v21 = vpop.f32.mrb[16].mxu1 }
 0x319   : > { %v1551_v22 = vrot.slane %v1539_v21, 1  ;;  %v6204_v23 = vpop.f32.mrb[17].mxu1  ;;  %v6995_v21 = vld [vmem:[#allocation2 + $0x3c8] sm:$0xff]  }
 0x31a   : > { %v1542_v24 = vpop.f32.mrb[18].mxu1  ;;  %v6997_v23 = vld [vmem:[#allocation2 + $0x3d0] sm:$0xff]  }
 0x31b   : > { %v1553_v25 = vsel %vm893_vm4, %v1551_v22, 0.0  ;;  %v6205_v27 = vpop.f32.mrb[19].mxu1  ;;  %v6996_v22 = vld [vmem:[#allocation2 + $0x408] sm:$0xff]   ;;  %v6998_v24 = vld [vmem:[#allocation2 + $0x410] sm:$0xff]  }
 0x31c   : > { %v1554_v28 = vadd.f32 %v1553_v25, %v1549_v19  ;;  %v6993_v19 = vld [vmem:[#allocation2 + $0x3c0] sm:$0xff]   ;;  %v6999_v25 = vld [vmem:[#allocation2 + $0x3d8] sm:$0xff]  }
 0x31d   : > { %v7001_v27 = vld [vmem:[#allocation2 + $0x3e0] sm:$0xff]  }
 0x31e   : > { %v1560_v30 = vmul.f32 %v5413_v26, %v1554_v28  ;;  %v7000_v26 = vld [vmem:[#allocation2 + $0x418] sm:$0xff]   ;;  %v7002_v28 = vld [vmem:[#allocation2 + $0x420] sm:$0xff]  }
 0x320   : > { %v1566_v31 = vadd.f32 %v5414_v29, %v1560_v30  ;;  %v7003_v29 = vld [vmem:[#allocation2 + $0x3e8] sm:$0xff]  }
 0x321   : > { %v7004_v30 = vld [vmem:[#allocation2 + $0x428] sm:$0xff]  }
 0x322   : > { %v1567_v32 = vmax.f32 %v1566_v31, 0.0  ;;  %v7005_v31 = vld [vmem:[#allocation2 + $0x3f0] sm:$0xff]  }
 0x324   : > { %6207 = vmatpush3.msk.msra.mxu0 %vm1573_vm5, %v1567_v32  ;;  %v7006_v32 = vld [vmem:[#allocation2 + $0x430] sm:$0xff]  }
 0x325   : > { %6209 = vmatmul.mubr.msk.f32.vlgmr.msra.gmra.mrb[2].mxu0 %vm1569_vm6, %v1568_v33  ;;  %6211 = vmatprep.subr.bf16.mxu0 %v7247_v0  ;;  %v7007_v33 = vld [vmem:[#allocation2 + $0x3f8] sm:$0xff]  }
 0x326   : > { %6212 = vmatpush3.bf16.msra.mxu0 %v6945_v34  ;;  %6227 = vmatprep.mubr.msk.bf16.mxu0 %vm7248_vm0, %v7247_v0  ;;  %v7008_v34 = vld [vmem:[#allocation2 + $0x438] sm:$0xff]  }
 0x327   : > { %6213 = vmatprep.subr.bf16.mxu0 %v7247_v0 }
 0x32a   : > { %6214 = vmatpush3.bf16.msra.mxu0 %v6946_v35 }
 0x32b   : > { %6215 = vmatprep.subr.bf16.mxu0 %v7247_v0 }
 0x32e   : > { %6216 = vmatpush3.bf16.msra.mxu0 %v6947_v36 }
 0x32f   : > { %6217 = vmatprep.subr.bf16.mxu0 %v7247_v0 }
 0x332   : > { %6218 = vmatpush3.bf16.msra.mxu0 %v6948_v37 }
 0x333   : > { %6219 = vmatprep.subr.bf16.mxu0 %v7247_v0 }
 0x336   : > { %6220 = vmatpush3.bf16.msra.mxu0 %v6949_v38 }
 0x337   : > { %6221 = vmatprep.subr.bf16.mxu0 %v7247_v0 }
 0x33a   : > { %6222 = vmatpush3.bf16.msra.mxu0 %v6950_v39 }
 0x33b   : > { %6223 = vmatprep.subr.bf16.mxu0 %v7247_v0 }
 0x33e   : > { %6224 = vmatpush3.bf16.msra.mxu0 %v6951_v40 }
 0x33f   : > { %6225 = vmatprep.subr.bf16.mxu0 %v7247_v0 }
 0x342   : > { %6226 = vmatpush3.bf16.msra.mxu0 %v6952_v41 }
 0x343   : > { %6251 = vmatprep.subr.bf16.mxu0 %v7247_v0 }
 0x345   : > { %6228 = vmatmul.mubr.bf16.vlgmr.msra.gmra.mrb[16].mxu0 %v7520_v1 }
 0x346   : > { %6252 = vmatpush3.bf16.msra.mxu0 %v6954_v42  ;;  %6267 = vmatprep.mubr.msk.bf16.mxu0 %vm7248_vm0, %v7247_v0 }
 0x347   : > { %6253 = vmatprep.subr.bf16.mxu0 %v7247_v0 }
 0x34a   : > { %6254 = vmatpush3.bf16.msra.mxu0 %v6956_v43 }
 0x34b   : > { %6255 = vmatprep.subr.bf16.mxu0 %v7247_v0 }
 0x34e   : > { %6256 = vmatpush3.bf16.msra.mxu0 %v6958_v44 }
 0x34f   : > { %6257 = vmatprep.subr.bf16.mxu0 %v7247_v0 }
 0x352   : > { %6258 = vmatpush3.bf16.msra.mxu0 %v6960_v45 }
 0x353   : > { %6259 = vmatprep.subr.bf16.mxu0 %v7247_v0 }
 0x356   : > { %6260 = vmatpush3.bf16.msra.mxu0 %v6962_v46 }
 0x357   : > { %6261 = vmatprep.subr.bf16.mxu0 %v7247_v0 }
 0x35a   : > { %6262 = vmatpush3.bf16.msra.mxu0 %v6964_v47 }
 0x35b   : > { %6263 = vmatprep.subr.bf16.mxu0 %v7247_v0 }
 0x35e   : > { %6264 = vmatpush3.bf16.msra.mxu0 %v6966_v48 }
 0x35f   : > { %6265 = vmatprep.subr.bf16.mxu0 %v7247_v0 }
 0x362   : > { %6266 = vmatpush3.bf16.msra.mxu0 %v6968_v49 }
 0x363   : > { %6311 = vmatprep.subr.bf16.mxu0 %v7247_v0 }
 0x365   : > { %6268 = vmatmul.mubr.bf16.vlgmr.msra.gmra.mrb[20].mxu0 %v7520_v1  ;;  %v6988_v1 = vld [vmem:[#allocation2 + $0x358] sm:$0xff]  }
 0x366   : > { %6312 = vmatpush3.bf16.msra.mxu0 %v6970_v50  ;;  %6327 = vmatprep.mubr.msk.bf16.mxu0 %vm7248_vm0, %v7247_v0 }
 0x367   : > { %6313 = vmatprep.subr.bf16.mxu0 %v7247_v0 }
 0x36a   : > { %6314 = vmatpush3.bf16.msra.mxu0 %v6972_v51 }
 0x36b   : > { %6315 = vmatprep.subr.bf16.mxu0 %v7247_v0 }
 0x36e   : > { %6316 = vmatpush3.bf16.msra.mxu0 %v6974_v52 }
 0x36f   : > { %6317 = vmatprep.subr.bf16.mxu0 %v7247_v0 }
 0x372   : > { %6318 = vmatpush3.bf16.msra.mxu0 %v6976_v53  ;;  %v5465_v53 = vld [vmem:[#allocation4 + $0x8] ss:$0 sm:$0xff] }
 0x373   : > { %6319 = vmatprep.subr.bf16.mxu0 %v7247_v0 }
 0x376   : > { %6320 = vmatpush3.bf16.msra.mxu0 %v6978_v54 }
 0x377   : > { %6321 = vmatprep.subr.bf16.mxu0 %v7247_v0 }
 0x37a   : > { %6322 = vmatpush3.bf16.msra.mxu0 %v6980_v55  ;;  %v5466_v55 = vld [vmem:[#allocation4 + $0x9] ss:$0 sm:$0xff] }
 0x37b   : > { %6323 = vmatprep.subr.bf16.mxu0 %v7247_v0 }
 0x37e   : > { %6324 = vmatpush3.bf16.msra.mxu0 %v6982_v56 }
 0x37f   : > { %6325 = vmatprep.subr.bf16.mxu0 %v7247_v0 }
 0x382   : > { %6326 = vmatpush3.bf16.msra.mxu0 %v6984_v57 }
 0x383   : > { %6331 = vmatprep.subr.bf16.mxu0 %v7247_v0 }
 0x3f8   : > { %v1643_v58 = vpop.f32.mrb[2].mxu0 }
 0x3f9   : > { %v1647_v60 = vpack.c.bf16 %v1643_v58, %v1643_v58  ;;  %v6210_v61 = vpop.f32.mrb[3].mxu0 }
 0x3fa   : > { %v7010_v61 = vld [vmem:[#allocation2 + $0x448] sm:$0xff]  }
 0x3fb   : > { %6288 = vmatmul.mubr.bf16.vlgmr.msra.gmra.mrb[24].mxu1 %v1647_v60  ;;  %6328 = vmatmul.mubr.bf16.vlgmr.msra.gmra.mrb[24].mxu0 %v1647_v60 }
 0x3fc   : > { %6292 = vmatpush3.bf16.msra.mxu1 %v6985_v59  ;;  %6307 = vmatprep.mubr.msk.bf16.mxu1 %vm7248_vm0, %v7247_v0  ;;  %v7009_v59 = vld [vmem:[#allocation2 + $0x440] sm:$0xff]  }
 0x3fd   : > { %6293 = vmatprep.subr.bf16.mxu1 %v7247_v0  ;;  %6347 = vmatprep.mubr.msk.bf16.mxu0 %vm7248_vm0, %v7247_v0 }
 0x3fe   : > { %6332 = vmatpush3.bf16.msra.mxu0 %v6993_v19  ;;  %v7030_v19 = vld [vmem:[#allocation2 + $0x510] sm:$0xff]  }
 0x3ff   : > { %6333 = vmatprep.subr.bf16.mxu0 %v7247_v0 }
 0x400   : > { %6294 = vmatpush3.bf16.msra.mxu1 %v6986_v62  ;;  %v7011_v62 = vld [vmem:[#allocation2 + $0x450] sm:$0xff]  }
 0x401   : > { %6295 = vmatprep.subr.bf16.mxu1 %v7247_v0 }
 0x402   : > { %6334 = vmatpush3.bf16.msra.mxu0 %v6995_v21  ;;  %v7034_v21 = vld [vmem:[#allocation2 + $0x520] sm:$0xff]  }
 0x403   : > { %6335 = vmatprep.subr.bf16.mxu0 %v7247_v0 }
 0x404   : > { %6296 = vmatpush3.bf16.msra.mxu1 %v6987_v63  ;;  %v7012_v63 = vld [vmem:[#allocation2 + $0x458] sm:$0xff]  }
 0x405   : > { %6297 = vmatprep.subr.bf16.mxu1 %v7247_v0 }
 0x406   : > { %6336 = vmatpush3.bf16.msra.mxu0 %v6997_v23  ;;  %v7038_v23 = vld [vmem:[#allocation2 + $0x530] sm:$0xff]  }
 0x407   : > { %6337 = vmatprep.subr.bf16.mxu0 %v7247_v0 }
 0x408   : > { %6298 = vmatpush3.bf16.msra.mxu1 %v6988_v1  ;;  %v7013_v1 = vld [vmem:[#allocation2 + $0x460] sm:$0xff]  }
 0x409   : > { %6299 = vmatprep.subr.bf16.mxu1 %v7247_v0 }
 0x40a   : > { %6338 = vmatpush3.bf16.msra.mxu0 %v6999_v25  ;;  %v7042_v25 = vld [vmem:[#allocation2 + $0x5c0] sm:$0xff]  }
 0x40b   : > { %6339 = vmatprep.subr.bf16.mxu0 %v7247_v0 }
 0x40c   : > { %6300 = vmatpush3.bf16.msra.mxu1 %v6989_v2  ;;  %v7014_v2 = vld [vmem:[#allocation2 + $0x468] sm:$0xff]  }
 0x40d   : > { %6301 = vmatprep.subr.bf16.mxu1 %v7247_v0 }
 0x40e   : > { %6340 = vmatpush3.bf16.msra.mxu0 %v7001_v27  ;;  %v7046_v27 = vld [vmem:[#allocation2 + $0x5d0] sm:$0xff]  }
 0x40f   : > { %6341 = vmatprep.subr.bf16.mxu0 %v7247_v0 }
 0x410   : > { %6302 = vmatpush3.bf16.msra.mxu1 %v6990_v3  ;;  %v7015_v3 = vld [vmem:[#allocation2 + $0x470] sm:$0xff]  }
 0x411   : > { %6303 = vmatprep.subr.bf16.mxu1 %v7247_v0 }
 0x412   : > { %6342 = vmatpush3.bf16.msra.mxu0 %v7003_v29  ;;  %v7050_v29 = vld [vmem:[#allocation2 + $0x5e0] sm:$0xff]  }
 0x413   : > { %6343 = vmatprep.subr.bf16.mxu0 %v7247_v0 }
 0x414   : > { %6304 = vmatpush3.bf16.msra.mxu1 %v6991_v4  ;;  %v7016_v4 = vld [vmem:[#allocation2 + $0x478] sm:$0xff]  }
 0x415   : > { %6305 = vmatprep.subr.bf16.mxu1 %v7247_v0 }
 0x416   : > { %6344 = vmatpush3.bf16.msra.mxu0 %v7005_v31 }
 0x417   : > { %6345 = vmatprep.subr.bf16.mxu0 %v7247_v0 }
 0x418   : > { %6306 = vmatpush3.bf16.msra.mxu1 %v6992_v5  ;;  %v1748_v6 = vpop.f32.mrb[16].mxu0  ;;  %v2645_v5 = vld [vmem:[%s7824_s7] sm:$0xff] }
 0x419   : > { %v6229_v7 = vpop.f32.mrb[17].mxu0  ;;  %6351 = vmatprep.subr.bf16.mxu1 %v7247_v0  ;;  %v1963_v10 = vrot.slane %v1748_v6, 7  ;;  %v7017_v6 = vld [vmem:[#allocation2 + $0x480] sm:$0xff]  }
 0x41a   : > { %v1751_v8 = vpop.f32.mrb[18].mxu0  ;;  %6346 = vmatpush3.bf16.msra.mxu0 %v7007_v33  ;;  %v7018_v7 = vld [vmem:[#allocation2 + $0x488] sm:$0xff]  }
 0x41b   : > { %6308 = vmatmul.mubr.bf16.vlgmr.msra.gmra.mrb[20].mxu1 %v1647_v60  ;;  %v6230_v9 = vpop.f32.mrb[19].mxu0  ;;  %v1965_v12 = vsel %vm887_vm3, 0.0, %v1963_v10  ;;  %6371 = vmatprep.subr.bf16.mxu0 %v7247_v0  ;;  %v7019_v8 = vld [vmem:[#allocation2 + $0x490] sm:$0xff]   ;;  %v7021_v10 = vld [vmem:[#allocation2 + $0x4a0] sm:$0xff]  }
 0x41c   : > { %6367 = vmatprep.mubr.msk.bf16.mxu1 %vm7248_vm0, %v7247_v0  ;;  %6352 = vmatpush3.bf16.msra.mxu1 %v6994_v20  ;;  %v7020_v9 = vld [vmem:[#allocation2 + $0x498] sm:$0xff]  }
 0x41d   : > { %6353 = vmatprep.subr.bf16.mxu1 %v7247_v0  ;;  %v7032_v20 = vld [vmem:[#allocation2 + $0x518] sm:$0xff]  }
 0x420   : > { %6354 = vmatpush3.bf16.msra.mxu1 %v6996_v22  ;;  %v7036_v22 = vld [vmem:[#allocation2 + $0x528] sm:$0xff]  }
 0x421   : > { %6355 = vmatprep.subr.bf16.mxu1 %v7247_v0 }
 0x424   : > { %6356 = vmatpush3.bf16.msra.mxu1 %v6998_v24  ;;  %v7040_v24 = vld [vmem:[#allocation2 + $0x538] sm:$0xff]  }
 0x425   : > { %6357 = vmatprep.subr.bf16.mxu1 %v7247_v0 }
 0x428   : > { %6358 = vmatpush3.bf16.msra.mxu1 %v7000_v26  ;;  %v7044_v26 = vld [vmem:[#allocation2 + $0x5c8] sm:$0xff]  }
 0x429   : > { %6359 = vmatprep.subr.bf16.mxu1 %v7247_v0 }
 0x42c   : > { %6360 = vmatpush3.bf16.msra.mxu1 %v7002_v28  ;;  %v7048_v28 = vld [vmem:[#allocation2 + $0x5d8] sm:$0xff]  }
 0x42d   : > { %6361 = vmatprep.subr.bf16.mxu1 %v7247_v0 }
 0x430   : > { %6362 = vmatpush3.bf16.msra.mxu1 %v7004_v30 }
 0x431   : > { %6363 = vmatprep.subr.bf16.mxu1 %v7247_v0 }
 0x434   : > { %6364 = vmatpush3.bf16.msra.mxu1 %v7006_v32  ;;  %v7052_v32 = vld [vmem:[#allocation2 + $0x5e8] sm:$0xff]  }
 0x435   : > { %6365 = vmatprep.subr.bf16.mxu1 %v7247_v0 }
 0x438   : > { %v1956_v11 = vpop.f32.mrb[20].mxu0  ;;  %6366 = vmatpush3.bf16.msra.mxu1 %v7008_v34 }
 0x439   : > { %v1968_v13 = vrot.slane %v1956_v11, 1  ;;  %v6269_v14 = vpop.f32.mrb[21].mxu0  ;;  %6396 = vmatprep.subr.bf16.mxu1 %v7247_v0  ;;  %v7022_v11 = vld [vmem:[#allocation2 + $0x4a8] sm:$0xff]  }
 0x43a   : > { %v1959_v15 = vpop.f32.mrb[22].mxu0  ;;  %v2730_v14 = vld [vmem:[%s477_s18] sm:$0xff] }
 0x43b   : > { %v1971_v16 = vsel %vm1970_vm7, %v1968_v13, 0.0  ;;  %v6270_v17 = vpop.f32.mrb[23].mxu0  ;;  %v7024_v13 = vld [vmem:[#allocation2 + $0x4b8] sm:$0xff]   ;;  %v2731_v15 = vld [vmem:[%s477_s18 + $0x8] sm:$0xff]  ;;  %s487_s18 = scalar_lea.vmem %s7828_s11, %s5663_s28 }
 0x43c   : > { %v6794_v18 = vadd.f32 %v1971_v16, %v1965_v12  ;;  %v7023_v12 = vld [vmem:[#allocation2 + $0x4b0] sm:$0xff]   ;;  %v7632_v16 = vpack.c.bf16 %v2731_v15, %v2730_v14  ;;  %v7026_v17 = vld [vmem:[#allocation2 + $0x500] sm:$0xff]  }
 0x4ce   : > { %v2071_v35 = vpop.f32.mrb[24].mxu1  ;;  %v2279_v36 = vpop.f32.mrb[24].mxu0 }
 0x4cf   : > { %v6289_v37 = vpop.f32.mrb[25].mxu1  ;;  %v6329_v38 = vpop.f32.mrb[25].mxu0  ;;  %v2286_v43 = vrot.slane %v2071_v35, 7  ;;  %v2291_v44 = vrot.slane %v2279_v36, 1 }
 0x4d0   : > { %v2074_v39 = vpop.f32.mrb[26].mxu1  ;;  %v2282_v40 = vpop.f32.mrb[26].mxu0 }
 0x4d1   : > { %v6290_v41 = vpop.f32.mrb[27].mxu1  ;;  %v6330_v42 = vpop.f32.mrb[27].mxu0  ;;  %v2288_v48 = vsel %vm887_vm3, 0.0, %v2286_v43  ;;  %v2293_v52 = vsel %vm1970_vm7, %v2291_v44, 0.0 }
 0x4d2   : > { %v7054_v42 = vld [vmem:[#allocation2 + $0x5f0] sm:$0xff]  }
 0x4ee   : > { %v2175_v45 = vpop.f32.mrb[20].mxu1 }
 0x4ef   : > { %v6795_v46 = vadd.f32 %v6794_v18, %v2175_v45  ;;  %v6309_v47 = vpop.f32.mrb[21].mxu1  ;;  %v7028_v18 = vld [vmem:[#allocation2 + $0x508] sm:$0xff]  }
 0x4f0   : > { %v2178_v49 = vpop.f32.mrb[22].mxu1 }
 0x4f1   : > { %v6796_v50 = vadd.f32 %v6795_v46, %v2288_v48  ;;  %v6310_v51 = vpop.f32.mrb[23].mxu1  ;;  %v5491_v48 = vld [vmem:[#allocation4 + $0xa] ss:$0 sm:$0xff] }
 0x4f2   : > { %v5492_v51 = vld [vmem:[#allocation4 + $0xb] ss:$0 sm:$0xff] }
 0x4f3   : > { %v6797_v54 = vadd.f32 %v6796_v50, %v2293_v52 }
 0x4f5   : > { %v2301_v56 = vmul.f32 %v6797_v54, %v5465_v53 }
 0x4f7   : > { %v2307_v57 = vadd.f32 %v5466_v55, %v2301_v56  ;;  %v2646_v55 = vld [vmem:[%s7824_s7 + $0x8] sm:$0xff]  ;;  %v7025_v56 = vld [vmem:[#allocation2 + $0x4c0] sm:$0xff]  }
 0x4f9   : > { %v2308_v58 = vmax.f32 %v2307_v57, 0.0  ;;  %v7027_v57 = vld [vmem:[#allocation2 + $0x4c8] sm:$0xff]  }
 0x4fb   : > { %v2309_v60 = vpack.c.bf16 %v2308_v58, %v2308_v58  ;;  %v7029_v58 = vld [vmem:[#allocation2 + $0x4d0] sm:$0xff]  }
 0x4fd   : > { %6348 = vmatmul.mubr.bf16.vlgmr.msra.gmra.mrb[28].mxu0 %v2309_v60  ;;  %6368 = vmatmul.mubr.bf16.vlgmr.msra.gmra.mrb[28].mxu1 %v2309_v60 }
 0x4fe   : > { %6372 = vmatpush3.bf16.msra.mxu0 %v7009_v59  ;;  %6387 = vmatprep.mubr.msk.bf16.mxu0 %vm7248_vm0, %v7247_v0  ;;  %v7031_v59 = vld [vmem:[#allocation2 + $0x4d8] sm:$0xff]  }
 0x4ff   : > { %6373 = vmatprep.subr.bf16.mxu0 %v7247_v0  ;;  %6412 = vmatprep.mubr.msk.bf16.mxu1 %vm7248_vm0, %v7247_v0 }
 0x500   : > { %6397 = vmatpush3.bf16.msra.mxu1 %v7017_v6  ;;  %v7051_v6 = vld [vmem:[#allocation2 + $0x568] sm:$0xff]  }
 0x501   : > { %6398 = vmatprep.subr.bf16.mxu1 %v7247_v0 }
 0x502   : > { %6374 = vmatpush3.bf16.msra.mxu0 %v7010_v61  ;;  %v7035_v61 = vld [vmem:[#allocation2 + $0x4e8] sm:$0xff]  }
 0x503   : > { %6375 = vmatprep.subr.bf16.mxu0 %v7247_v0 }
 0x504   : > { %6399 = vmatpush3.bf16.msra.mxu1 %v7018_v7  ;;  %v7053_v7 = vld [vmem:[#allocation2 + $0x570] sm:$0xff]  }
 0x505   : > { %6400 = vmatprep.subr.bf16.mxu1 %v7247_v0 }
 0x506   : > { %6376 = vmatpush3.bf16.msra.mxu0 %v7011_v62  ;;  %v7037_v62 = vld [vmem:[#allocation2 + $0x4f0] sm:$0xff]  }
 0x507   : > { %6377 = vmatprep.subr.bf16.mxu0 %v7247_v0 }
 0x508   : > { %6401 = vmatpush3.bf16.msra.mxu1 %v7019_v8  ;;  %v7055_v8 = vld [vmem:[#allocation2 + $0x578] sm:$0xff]  }
 0x509   : > { %6402 = vmatprep.subr.bf16.mxu1 %v7247_v0 }
 0x50a   : > { %6378 = vmatpush3.bf16.msra.mxu0 %v7012_v63  ;;  %v7039_v63 = vld [vmem:[#allocation2 + $0x4f8] sm:$0xff]  }
 0x50b   : > { %6379 = vmatprep.subr.bf16.mxu0 %v7247_v0 }
 0x50c   : > { %6403 = vmatpush3.bf16.msra.mxu1 %v7020_v9  ;;  %v7056_v9 = vld [vmem:[#allocation2 + $0x5f8] sm:$0xff]  }
 0x50d   : > { %6404 = vmatprep.subr.bf16.mxu1 %v7247_v0 }
 0x50e   : > { %6380 = vmatpush3.bf16.msra.mxu0 %v7013_v1  ;;  %v7041_v1 = vld [vmem:[#allocation2 + $0x540] sm:$0xff]  }
 0x50f   : > { %6381 = vmatprep.subr.bf16.mxu0 %v7247_v0 }
 0x510   : > { %6405 = vmatpush3.bf16.msra.mxu1 %v7021_v10 }
 0x511   : > { %6406 = vmatprep.subr.bf16.mxu1 %v7247_v0 }
 0x512   : > { %6382 = vmatpush3.bf16.msra.mxu0 %v7014_v2  ;;  %v7043_v2 = vld [vmem:[#allocation2 + $0x548] sm:$0xff]  }
 0x513   : > { %6383 = vmatprep.subr.bf16.mxu0 %v7247_v0 }
 0x514   : > { %6407 = vmatpush3.bf16.msra.mxu1 %v7022_v11 }
 0x515   : > { %6408 = vmatprep.subr.bf16.mxu1 %v7247_v0 }
 0x516   : > { %6384 = vmatpush3.bf16.msra.mxu0 %v7015_v3  ;;  %v7045_v3 = vld [vmem:[#allocation2 + $0x550] sm:$0xff]  }
 0x517   : > { %6385 = vmatprep.subr.bf16.mxu0 %v7247_v0 }
 0x518   : > { %6409 = vmatpush3.bf16.msra.mxu1 %v7023_v12 }
 0x519   : > { %6410 = vmatprep.subr.bf16.mxu1 %v7247_v0 }
 0x51a   : > { %6386 = vmatpush3.bf16.msra.mxu0 %v7016_v4  ;;  %v7047_v4 = vld [vmem:[#allocation2 + $0x558] sm:$0xff]  }
 0x51c   : > { %6411 = vmatpush3.bf16.msra.mxu1 %v7024_v13 }
 0x51d   : > { %6388 = vmatmul.mubr.bf16.vlgmr.msra.gmra.mrb[32].mxu0 %v2309_v60  ;;  %6436 = vmatprep.subr.bf16.mxu1 %v7247_v0  ;;  %v7033_v60 = vld [vmem:[#allocation2 + $0x4e0] sm:$0xff]  }
 0x51e   : > { %6393 = vmatprep.mubr.msk.f32.mxu0 %vm2647_vm8, %v2645_v5  ;;  %v7049_v5 = vld [vmem:[#allocation2 + $0x560] sm:$0xff]  }
 0x51f   : > { %6413 = vmatmul.mubr.bf16.vlgmr.msra.gmra.mrb[32].mxu1 %v7632_v16 }
 0x520   : > { %6437 = vmatpush3.bf16.msra.mxu1 %v7026_v17  ;;  %6452 = vmatprep.mubr.msk.bf16.mxu1 %vm7248_vm0, %v7247_v0 }
 0x521   : > { %6438 = vmatprep.subr.bf16.mxu1 %v7247_v0 }
 0x524   : > { %6439 = vmatpush3.bf16.msra.mxu1 %v7028_v18 }
 0x525   : > { %6440 = vmatprep.subr.bf16.mxu1 %v7247_v0 }
 0x528   : > { %6441 = vmatpush3.bf16.msra.mxu1 %v7030_v19 }
 0x529   : > { %6442 = vmatprep.subr.bf16.mxu1 %v7247_v0 }
 0x52c   : > { %6443 = vmatpush3.bf16.msra.mxu1 %v7032_v20  ;;  %v7057_v20 = vld [vmem:[#allocation2 + $0x580] sm:$0xff]  }
 0x52d   : > { %6444 = vmatprep.subr.bf16.mxu1 %v7247_v0 }
 0x530   : > { %6445 = vmatpush3.bf16.msra.mxu1 %v7034_v21 }
 0x531   : > { %6446 = vmatprep.subr.bf16.mxu1 %v7247_v0 }
 0x534   : > { %6447 = vmatpush3.bf16.msra.mxu1 %v7036_v22  ;;  %v7058_v22 = vld [vmem:[#allocation2 + $0x588] sm:$0xff]  }
 0x535   : > { %6448 = vmatprep.subr.bf16.mxu1 %v7247_v0 }
 0x538   : > { %6449 = vmatpush3.bf16.msra.mxu1 %v7038_v23  ;;  %v7059_v23 = vld [vmem:[#allocation2 + $0x590] sm:$0xff]  }
 0x539   : > { %6450 = vmatprep.subr.bf16.mxu1 %v7247_v0 }
 0x53c   : > { %6451 = vmatpush3.bf16.msra.mxu1 %v7040_v24  ;;  %v7060_v24 = vld [vmem:[#allocation2 + $0x598] sm:$0xff]  }
 0x53d   : > { %6496 = vmatprep.subr.bf16.mxu1 %v7247_v0 }
 0x53f   : > { %6453 = vmatmul.mubr.bf16.vlgmr.msra.gmra.mrb[36].mxu1 %v7632_v16 }
 0x540   : > { %6497 = vmatpush3.bf16.msra.mxu1 %v7042_v25  ;;  %6512 = vmatprep.mubr.msk.bf16.mxu1 %vm7248_vm0, %v7247_v0  ;;  %v7061_v25 = vld [vmem:[#allocation2 + $0x5a0] sm:$0xff]  }
 0x541   : > { %6498 = vmatprep.subr.bf16.mxu1 %v7247_v0 }
 0x544   : > { %6499 = vmatpush3.bf16.msra.mxu1 %v7044_v26  ;;  %v7062_v26 = vld [vmem:[#allocation2 + $0x5a8] sm:$0xff]  }
 0x545   : > { %6500 = vmatprep.subr.bf16.mxu1 %v7247_v0 }
 0x548   : > { %6501 = vmatpush3.bf16.msra.mxu1 %v7046_v27  ;;  %v7063_v27 = vld [vmem:[#allocation2 + $0x5b0] sm:$0xff]  }
 0x549   : > { %6502 = vmatprep.subr.bf16.mxu1 %v7247_v0 }
 0x54c   : > { %6503 = vmatpush3.bf16.msra.mxu1 %v7048_v28  ;;  %v7064_v28 = vld [vmem:[#allocation2 + $0x5b8] sm:$0xff]  }
 0x54d   : > { %6504 = vmatprep.subr.bf16.mxu1 %v7247_v0 }
 0x550   : > { %6505 = vmatpush3.bf16.msra.mxu1 %v7050_v29 }
 0x551   : > { %6506 = vmatprep.subr.bf16.mxu1 %v7247_v0 }
 0x554   : > { %6507 = vmatpush3.bf16.msra.mxu1 %v7052_v32 }
 0x555   : > { %6508 = vmatprep.subr.bf16.mxu1 %v7247_v0 }
 0x558   : > { %6509 = vmatpush3.bf16.msra.mxu1 %v7054_v42  ;;  %v7068_v42 = vld [vmem:[#allocation2 + $0x648] sm:$0xff]  }
 0x559   : > { %6510 = vmatprep.subr.bf16.mxu1 %v7247_v0 }
 0x55c   : > { %6511 = vmatpush3.bf16.msra.mxu1 %v7056_v9 }
 0x55d   : > { %6516 = vmatprep.subr.bf16.mxu1 %v7247_v0 }
 0x5d0   : > { %v2408_v30 = vpop.f32.mrb[28].mxu0  ;;  %v2512_v31 = vpop.f32.mrb[28].mxu1 }
 0x5d1   : > { %v2623_v33 = vrot.slane %v2408_v30, 7  ;;  %v6349_v34 = vpop.f32.mrb[29].mxu0  ;;  %v6369_v35 = vpop.f32.mrb[29].mxu1 }
 0x5d2   : > { %v2411_v36 = vpop.f32.mrb[30].mxu0  ;;  %v2515_v37 = vpop.f32.mrb[30].mxu1 }
 0x5d3   : > { %v2625_v38 = vsel %vm887_vm3, 0.0, %v2623_v33  ;;  %v6350_v39 = vpop.f32.mrb[31].mxu0  ;;  %v6370_v40 = vpop.f32.mrb[31].mxu1 }
 0x5d4   : > { %v2626_v41 = vadd.f32 %v2625_v38, %v2512_v31  ;;  %v7065_v39 = vld [vmem:[#allocation2 + $0x600] sm:$0xff]  }
 0x5d5   : > { %v7066_v40 = vld [vmem:[#allocation2 + $0x640] sm:$0xff]  }
 0x5f0   : > { %v2616_v43 = vpop.f32.mrb[32].mxu0 }
 0x5f1   : > { %v2628_v44 = vrot.slane %v2616_v43, 1  ;;  %v6389_v45 = vpop.f32.mrb[33].mxu0  ;;  %v7069_v43 = vld [vmem:[#allocation2 + $0x610] sm:$0xff]  }
 0x5f2   : > { %v2619_v46 = vpop.f32.mrb[34].mxu0  ;;  %v2831_v10 = vpop.f32.mrb[32].mxu1  ;;  %v7071_v45 = vld [vmem:[#allocation2 + $0x618] sm:$0xff]  }
 0x5f3   : > { %v2630_v47 = vsel %vm1970_vm7, %v2628_v44, 0.0  ;;  %v6390_v49 = vpop.f32.mrb[35].mxu0  ;;  %v6414_v11 = vpop.f32.mrb[33].mxu1  ;;  %v3050_v29 = vrot.slane %v2831_v10, 7  ;;  %v7070_v44 = vld [vmem:[#allocation2 + $0x650] sm:$0xff]   ;;  %v7072_v46 = vld [vmem:[#allocation2 + $0x658] sm:$0xff]  }
 0x5f4   : > { %v2631_v50 = vadd.f32 %v2630_v47, %v2626_v41  ;;  %v2834_v12 = vpop.f32.mrb[34].mxu1  ;;  %v7067_v41 = vld [vmem:[#allocation2 + $0x608] sm:$0xff]   ;;  %v7073_v47 = vld [vmem:[#allocation2 + $0x620] sm:$0xff]  }
 0x5f5   : > { %v6415_v13 = vpop.f32.mrb[35].mxu1  ;;  %v3051_v31 = vrot.slane %v2834_v12, 7  ;;  %v3055_v33 = vsel %vm887_vm3, 0.0, %v3050_v29  ;;  %v7075_v49 = vld [vmem:[#allocation2 + $0x628] sm:$0xff]  }
 0x5f6   : > { %v2637_v52 = vmul.f32 %v5491_v48, %v2631_v50  ;;  %v7074_v48 = vld [vmem:[#allocation2 + $0x660] sm:$0xff]   ;;  %v7076_v50 = vld [vmem:[#allocation2 + $0x668] sm:$0xff]  }
 0x5f7   : > { %v3052_v36 = vsel %vm887_vm3, %v3050_v29, %v3051_v31  ;;  %v7083_v29 = vld [vmem:[#allocation2 + $0x690] sm:$0xff]   ;;  %v7085_v31 = vld [vmem:[#allocation2 + $0x6a0] sm:$0xff]  }
 0x5f8   : > { %v2643_v53 = vadd.f32 %v5492_v51, %v2637_v52  ;;  %v7077_v51 = vld [vmem:[#allocation2 + $0x630] sm:$0xff]  }
 0x5f9   : > { %v7078_v52 = vld [vmem:[#allocation2 + $0x670] sm:$0xff]  }
 0x5fa   : > { %v2644_v54 = vmax.f32 %v2643_v53, 0.0  ;;  %v7079_v53 = vld [vmem:[#allocation2 + $0x638] sm:$0xff]  }
 0x5fc   : > { %6391 = vmatprep.subr.mxu0 %v2644_v54 }
 0x5fd   : > { %6392 = vmatpush3.msra.mxu0 %v2644_v54  ;;  %v7080_v54 = vld [vmem:[#allocation2 + $0x678] sm:$0xff]  }
 0x5fe   : > { %6394 = vmatmul.mubr.msk.f32.vlgmr.msra.gmra.mrb[36].mxu0 %vm2647_vm8, %v2646_v55  ;;  %6416 = vmatprep.subr.bf16.mxu0 %v7247_v0 }
 0x5ff   : > { %6417 = vmatpush3.bf16.msra.mxu0 %v7025_v56  ;;  %6432 = vmatprep.mubr.msk.bf16.mxu0 %vm7248_vm0, %v7247_v0 }
 0x600   : > { %6418 = vmatprep.subr.bf16.mxu0 %v7247_v0 }
 0x603   : > { %6419 = vmatpush3.bf16.msra.mxu0 %v7027_v57 }
 0x604   : > { %6420 = vmatprep.subr.bf16.mxu0 %v7247_v0 }
 0x607   : > { %6421 = vmatpush3.bf16.msra.mxu0 %v7029_v58 }
 0x608   : > { %6422 = vmatprep.subr.bf16.mxu0 %v7247_v0 }
 0x60b   : > { %6423 = vmatpush3.bf16.msra.mxu0 %v7031_v59 }
 0x60c   : > { %6424 = vmatprep.subr.bf16.mxu0 %v7247_v0 }
 0x60f   : > { %6425 = vmatpush3.bf16.msra.mxu0 %v7033_v60 }
 0x610   : > { %6426 = vmatprep.subr.bf16.mxu0 %v7247_v0 }
 0x612   : > { %v3041_v14 = vpop.f32.mrb[36].mxu1 }
 0x613   : > { %6427 = vmatpush3.bf16.msra.mxu0 %v7035_v61  ;;  %v6454_v15 = vpop.f32.mrb[37].mxu1  ;;  %v3060_v32 = vrot.slane %v3041_v14, 1  ;;  %v5543_v14 = vld [vmem:[#allocation4 + $0x10] ss:$0 sm:$0xff] }
 0x614   : > { %6428 = vmatprep.subr.bf16.mxu0 %v7247_v0 }
 0x617   : > { %6429 = vmatpush3.bf16.msra.mxu0 %v7037_v62 }
 0x618   : > { %6430 = vmatprep.subr.bf16.mxu0 %v7247_v0 }
 0x61b   : > { %6431 = vmatpush3.bf16.msra.mxu0 %v7039_v63 }
 0x61c   : > { %6456 = vmatprep.subr.bf16.mxu0 %v7247_v0 }
 0x61e   : > { %6433 = vmatmul.mubr.bf16.vlgmr.msra.gmra.mrb[40].mxu0 %v7632_v16  ;;  %v3044_v16 = vpop.f32.mrb[38].mxu1 }
 0x61f   : > { %6457 = vmatpush3.bf16.msra.mxu0 %v7041_v1  ;;  %6472 = vmatprep.mubr.msk.bf16.mxu0 %vm7248_vm0, %v7247_v0  ;;  %v6455_v17 = vpop.f32.mrb[39].mxu1  ;;  %v3061_v30 = vrot.slane %v3044_v16, 1 }
 0x620   : > { %6458 = vmatprep.subr.bf16.mxu0 %v7247_v0 }
 0x621   : > { %v3065_v34 = vsel %vm1970_vm7, %v3061_v30, 0.0  ;;  %v3062_v35 = vsel %vm1970_vm7, %v3060_v32, %v3061_v30  ;;  %v7084_v30 = vld [vmem:[#allocation2 + $0x698] sm:$0xff]   ;;  %v7086_v32 = vld [vmem:[#allocation2 + $0x6a8] sm:$0xff]  }
 0x622   : > { %v7703_v37 = vadd.f32 %v3062_v35, %v3055_v33  ;;  %v7705_v38 = vadd.f32 %v3065_v34, %v3052_v36  ;;  %v7087_v33 = vld [vmem:[#allocation2 + $0x6b0] sm:$0xff]   ;;  %v7088_v34 = vld [vmem:[#allocation2 + $0x6b8] sm:$0xff]   ;;  %v3773_v35 = vld [vmem:[%s7825_s8] sm:$0xff] }
 0x623   : > { %6459 = vmatpush3.bf16.msra.mxu0 %v7043_v2  ;;  %v7097_v36 = vld [vmem:[#allocation2 + $0x700] sm:$0xff]  }
 0x624   : > { %6460 = vmatprep.subr.bf16.mxu0 %v7247_v0 }
 0x627   : > { %6461 = vmatpush3.bf16.msra.mxu0 %v7045_v3 }
 0x628   : > { %6462 = vmatprep.subr.bf16.mxu0 %v7247_v0 }
 0x62b   : > { %6463 = vmatpush3.bf16.msra.mxu0 %v7047_v4 }
 0x62c   : > { %6464 = vmatprep.subr.bf16.mxu0 %v7247_v0 }
 0x62f   : > { %6465 = vmatpush3.bf16.msra.mxu0 %v7049_v5 }
 0x630   : > { %6466 = vmatprep.subr.bf16.mxu0 %v7247_v0 }
 0x633   : > { %6467 = vmatpush3.bf16.msra.mxu0 %v7051_v6 }
 0x634   : > { %6468 = vmatprep.subr.bf16.mxu0 %v7247_v0 }
 0x637   : > { %6469 = vmatpush3.bf16.msra.mxu0 %v7053_v7 }
 0x638   : > { %6470 = vmatprep.subr.bf16.mxu0 %v7247_v0 }
 0x63b   : > { %6471 = vmatpush3.bf16.msra.mxu0 %v7055_v8 }
 0x63c   : > { %6476 = vmatprep.subr.bf16.mxu0 %v7247_v0 }
 0x6d1   : > { %v6395_v18 = vpop.f32.mrb[36].mxu0 }
 0x6d2   : > { %v2720_v19 = vpop.f32.mrb[37].mxu0 }
 0x6d3   : > { %v2729_v21 = vpack.c.bf16 %v6395_v18, %v2720_v19  ;;  %v5544_v18 = vld [vmem:[#allocation4 + $0x11] ss:$0 sm:$0xff] }
 0x6d5   : > { %6473 = vmatmul.mubr.bf16.vlgmr.msra.gmra.mrb[44].mxu0 %v2729_v21  ;;  %6513 = vmatmul.mubr.bf16.vlgmr.msra.gmra.mrb[40].mxu1 %v2729_v21 }
 0x6d6   : > { %6477 = vmatpush3.bf16.msra.mxu0 %v7057_v20  ;;  %6492 = vmatprep.mubr.msk.bf16.mxu0 %vm7248_vm0, %v7247_v0 }
 0x6d7   : > { %6478 = vmatprep.subr.bf16.mxu0 %v7247_v0  ;;  %6532 = vmatprep.mubr.msk.bf16.mxu1 %vm7248_vm0, %v7247_v0 }
 0x6d8   : > { %6517 = vmatpush3.bf16.msra.mxu1 %v7065_v39 }
 0x6d9   : > { %6518 = vmatprep.subr.bf16.mxu1 %v7247_v0 }
 0x6da   : > { %6479 = vmatpush3.bf16.msra.mxu0 %v7058_v22 }
 0x6db   : > { %6480 = vmatprep.subr.bf16.mxu0 %v7247_v0 }
 0x6dc   : > { %6519 = vmatpush3.bf16.msra.mxu1 %v7067_v41  ;;  %v7102_v41 = vld [vmem:[#allocation2 + $0x718] sm:$0xff]  }
 0x6dd   : > { %6520 = vmatprep.subr.bf16.mxu1 %v7247_v0 }
 0x6de   : > { %6481 = vmatpush3.bf16.msra.mxu0 %v7059_v23 }
 0x6df   : > { %6482 = vmatprep.subr.bf16.mxu0 %v7247_v0 }
 0x6e0   : > { %6521 = vmatpush3.bf16.msra.mxu1 %v7069_v43  ;;  %v7106_v43 = vld [vmem:[#allocation2 + $0x728] sm:$0xff]  }
 0x6e1   : > { %6522 = vmatprep.subr.bf16.mxu1 %v7247_v0 }
 0x6e2   : > { %6483 = vmatpush3.bf16.msra.mxu0 %v7060_v24 }
 0x6e3   : > { %6484 = vmatprep.subr.bf16.mxu0 %v7247_v0 }
 0x6e4   : > { %6523 = vmatpush3.bf16.msra.mxu1 %v7071_v45  ;;  %v7110_v45 = vld [vmem:[#allocation2 + $0x738] sm:$0xff]  }
 0x6e5   : > { %6524 = vmatprep.subr.bf16.mxu1 %v7247_v0 }
 0x6e6   : > { %6485 = vmatpush3.bf16.msra.mxu0 %v7061_v25 }
 0x6e7   : > { %6486 = vmatprep.subr.bf16.mxu0 %v7247_v0 }
 0x6e8   : > { %6525 = vmatpush3.bf16.msra.mxu1 %v7073_v47  ;;  %v3880_v47 = vld [vmem:[%s482_s19 + $0x18] sm:$0xff] }
 0x6e9   : > { %6526 = vmatprep.subr.bf16.mxu1 %v7247_v0 }
 0x6ea   : > { %6487 = vmatpush3.bf16.msra.mxu0 %v7062_v26  ;;  %v7081_v26 = vld [vmem:[#allocation2 + $0x680] sm:$0xff]  }
 0x6eb   : > { %6488 = vmatprep.subr.bf16.mxu0 %v7247_v0 }
 0x6ec   : > { %6527 = vmatpush3.bf16.msra.mxu1 %v7075_v49  ;;  %v7113_v49 = vld [vmem:[#allocation2 + $0x780] sm:$0xff]  }
 0x6ed   : > { %6528 = vmatprep.subr.bf16.mxu1 %v7247_v0 }
 0x6ee   : > { %6489 = vmatpush3.bf16.msra.mxu0 %v7063_v27 }
 0x6ef   : > { %6490 = vmatprep.subr.bf16.mxu0 %v7247_v0 }
 0x6f0   : > { %6529 = vmatpush3.bf16.msra.mxu1 %v7077_v51  ;;  %v7116_v51 = vld [vmem:[#allocation2 + $0x790] sm:$0xff]  }
 0x6f1   : > { %6530 = vmatprep.subr.bf16.mxu1 %v7247_v0 }
 0x6f2   : > { %6491 = vmatpush3.bf16.msra.mxu0 %v7064_v28  ;;  %v7082_v28 = vld [vmem:[#allocation2 + $0x688] sm:$0xff]  }
 0x6f3   : > { %6536 = vmatprep.subr.bf16.mxu0 %v7247_v0 }
 0x6f4   : > { %6531 = vmatpush3.bf16.msra.mxu1 %v7079_v53  ;;  %v7120_v53 = vld [vmem:[#allocation2 + $0x7a0] sm:$0xff]  }
 0x6f5   : > { %6493 = vmatmul.mubr.bf16.vlgmr.msra.gmra.mrb[40].mxu0 %v2729_v21  ;;  %6556 = vmatprep.subr.bf16.mxu1 %v7247_v0 }
 0x6f6   : > { %6552 = vmatprep.mubr.msk.bf16.mxu0 %vm7248_vm0, %v7247_v0  ;;  %6537 = vmatpush3.bf16.msra.mxu0 %v7066_v40  ;;  %v7100_v40 = vld [vmem:[#allocation2 + $0x710] sm:$0xff]  }
 0x6f7   : > { %6538 = vmatprep.subr.bf16.mxu0 %v7247_v0 }
 0x6fa   : > { %6539 = vmatpush3.bf16.msra.mxu0 %v7068_v42  ;;  %v7104_v42 = vld [vmem:[#allocation2 + $0x720] sm:$0xff]  }
 0x6fb   : > { %6540 = vmatprep.subr.bf16.mxu0 %v7247_v0 }
 0x6fe   : > { %6541 = vmatpush3.bf16.msra.mxu0 %v7070_v44  ;;  %v7108_v44 = vld [vmem:[#allocation2 + $0x730] sm:$0xff]  }
 0x6ff   : > { %6542 = vmatprep.subr.bf16.mxu0 %v7247_v0 }
 0x702   : > { %6543 = vmatpush3.bf16.msra.mxu0 %v7072_v46  ;;  %v3879_v46 = vld [vmem:[%s482_s19 + $0x10] sm:$0xff] }
 0x703   : > { %6544 = vmatprep.subr.bf16.mxu0 %v7247_v0 }
 0x706   : > { %6545 = vmatpush3.bf16.msra.mxu0 %v7074_v48  ;;  %v7750_v48 = vpack.c.bf16 %v3880_v47, %v3879_v46  ;;  %v7119_v46 = vld [vmem:[#allocation2 + $0x810] sm:$0xff]   ;;  %v7121_v47 = vld [vmem:[#allocation2 + $0x818] sm:$0xff]  }
 0x707   : > { %6546 = vmatprep.subr.bf16.mxu0 %v7247_v0 }
 0x70a   : > { %6547 = vmatpush3.bf16.msra.mxu0 %v7076_v50  ;;  %v7114_v50 = vld [vmem:[#allocation2 + $0x788] sm:$0xff]  }
 0x70b   : > { %6548 = vmatprep.subr.bf16.mxu0 %v7247_v0 }
 0x70e   : > { %6549 = vmatpush3.bf16.msra.mxu0 %v7078_v52  ;;  %v7118_v52 = vld [vmem:[#allocation2 + $0x798] sm:$0xff]  }
 0x70f   : > { %6550 = vmatprep.subr.bf16.mxu0 %v7247_v0 }
 0x712   : > { %6551 = vmatpush3.bf16.msra.mxu0 %v7080_v54 }
 0x7a8   : > { %v3166_v55 = vpop.f32.mrb[44].mxu0  ;;  %v3376_v56 = vpop.f32.mrb[40].mxu1 }
 0x7a9   : > { %v6474_v57 = vpop.f32.mrb[45].mxu0  ;;  %v6514_v58 = vpop.f32.mrb[41].mxu1  ;;  %v3385_v61 = vrot.slane %v3166_v55, 7  ;;  %v3395_v62 = vrot.slane %v3376_v56, 1 }
 0x7aa   : > { %v3169_v59 = vpop.f32.mrb[46].mxu0  ;;  %v3379_v60 = vpop.f32.mrb[42].mxu1 }
 0x7ab   : > { %v3386_v63 = vrot.slane %v3169_v59, 7  ;;  %v3396_v1 = vrot.slane %v3379_v60, 1  ;;  %v6475_v2 = vpop.f32.mrb[47].mxu0  ;;  %v6515_v3 = vpop.f32.mrb[43].mxu1  ;;  %v3390_v9 = vsel %vm887_vm3, 0.0, %v3385_v61  ;;  %v7122_v59 = vld [vmem:[#allocation2 + $0x7a8] sm:$0xff]  }
 0x7ad   : > { %v3397_v4 = vsel %vm1970_vm7, %v3395_v62, %v3396_v1  ;;  %v3387_v5 = vsel %vm887_vm3, %v3385_v61, %v3386_v63  ;;  %v3400_v17 = vsel %vm1970_vm7, %v3396_v1, 0.0 }
 0x7c8   : > { %v3271_v6 = vpop.f32.mrb[40].mxu0 }
 0x7c9   : > { %v6799_v7 = vadd.f32 %v7703_v37, %v3271_v6  ;;  %v6494_v8 = vpop.f32.mrb[41].mxu0  ;;  %v7098_v37 = vld [vmem:[#allocation2 + $0x708] sm:$0xff]  }
 0x7ca   : > { %v3274_v10 = vpop.f32.mrb[42].mxu0 }
 0x7cb   : > { %v6800_v11 = vadd.f32 %v6799_v7, %v3390_v9  ;;  %v6803_v12 = vadd.f32 %v7705_v38, %v3274_v10  ;;  %v6495_v13 = vpop.f32.mrb[43].mxu0  ;;  %v3878_v38 = vld [vmem:[%s482_s19 + $0x8] sm:$0xff] }
 0x7cd   : > { %v6801_v15 = vadd.f32 %v6800_v11, %v3397_v4  ;;  %v6804_v16 = vadd.f32 %v6803_v12, %v3387_v5  ;;  %v7124_v5 = vld [vmem:[#allocation2 + $0x7b0] sm:$0xff]  }
 0x7cf   : > { %v3410_v19 = vmul.f32 %v6801_v15, %v5543_v14  ;;  %v6805_v20 = vadd.f32 %v6804_v16, %v3400_v17  ;;  %v5569_v15 = vld [vmem:[#allocation4 + $0x12] ss:$0 sm:$0xff] }
 0x7d1   : > { %v3417_v21 = vadd.f32 %v5544_v18, %v3410_v19  ;;  %v3411_v22 = vmul.f32 %v6805_v20, %v5543_v14 }
 0x7d3   : > { %v3418_v23 = vadd.f32 %v5544_v18, %v3411_v22  ;;  %v3419_v24 = vmax.f32 %v3417_v21, 0.0  ;;  %v5570_v18 = vld [vmem:[#allocation4 + $0x13] ss:$0 sm:$0xff] }
 0x7d5   : > { %v3420_v25 = vmax.f32 %v3418_v23, 0.0 }
 0x7d7   : > { %v3421_v27 = vpack.c.bf16 %v3420_v25, %v3419_v24 }
 0x7d9   : > { %6533 = vmatmul.mubr.bf16.vlgmr.msra.gmra.mrb[44].mxu1 %v3421_v27  ;;  %6553 = vmatmul.mubr.bf16.vlgmr.msra.gmra.mrb[48].mxu0 %v3421_v27 }
 0x7da   : > { %6557 = vmatpush3.bf16.msra.mxu1 %v7081_v26  ;;  %6572 = vmatprep.mubr.msk.bf16.mxu1 %vm7248_vm0, %v7247_v0  ;;  %v7089_v26 = vld [vmem:[#allocation2 + $0x6c0] sm:$0xff]  }
 0x7db   : > { %6558 = vmatprep.subr.bf16.mxu1 %v7247_v0  ;;  %6580 = vmatprep.mubr.msk.f32.mxu0 %vm3777_vm9, %v3773_v35  ;;  %v7095_v35 = vld [vmem:[#allocation2 + $0x6f0] sm:$0xff]  }
 0x7de   : > { %6559 = vmatpush3.bf16.msra.mxu1 %v7082_v28  ;;  %v3775_v28 = vld [vmem:[%s7825_s8 + $0x10] sm:$0xff] }
 0x7df   : > { %6560 = vmatprep.subr.bf16.mxu1 %v7247_v0 }
 0x7e2   : > { %6561 = vmatpush3.bf16.msra.mxu1 %v7083_v29  ;;  %v7090_v29 = vld [vmem:[#allocation2 + $0x6c8] sm:$0xff]  }
 0x7e3   : > { %6562 = vmatprep.subr.bf16.mxu1 %v7247_v0 }
 0x7e6   : > { %6563 = vmatpush3.bf16.msra.mxu1 %v7084_v30  ;;  %v3776_v30 = vld [vmem:[%s7825_s8 + $0x18] sm:$0xff] }
 0x7e7   : > { %6564 = vmatprep.subr.bf16.mxu1 %v7247_v0 }
 0x7ea   : > { %6565 = vmatpush3.bf16.msra.mxu1 %v7085_v31  ;;  %v7091_v31 = vld [vmem:[#allocation2 + $0x6d0] sm:$0xff]  }
 0x7eb   : > { %6566 = vmatprep.subr.bf16.mxu1 %v7247_v0 }
 0x7ee   : > { %6567 = vmatpush3.bf16.msra.mxu1 %v7086_v32  ;;  %v7092_v32 = vld [vmem:[#allocation2 + $0x6d8] sm:$0xff]  }
 0x7ef   : > { %6568 = vmatprep.subr.bf16.mxu1 %v7247_v0 }
 0x7f2   : > { %6569 = vmatpush3.bf16.msra.mxu1 %v7087_v33  ;;  %v7093_v33 = vld [vmem:[#allocation2 + $0x6e0] sm:$0xff]  }
 0x7f3   : > { %6570 = vmatprep.subr.bf16.mxu1 %v7247_v0  ;;  %v3877_v0 = vld [vmem:[%s482_s19] sm:$0xff] }
 0x7f4   : > { %v7747_v39 = vpack.c.bf16 %v3878_v38, %v3877_v0  ;;  %v7101_v0 = vld [vmem:[#allocation2 + $0x748] sm:$0xff]   ;;  %v7103_v38 = vld [vmem:[#allocation2 + $0x750] sm:$0xff]  }
 0x7f6   : > { %6571 = vmatpush3.bf16.msra.mxu1 %v7088_v34  ;;  %v7094_v34 = vld [vmem:[#allocation2 + $0x6e8] sm:$0xff]  }
 0x7f7   : > { %6606 = vmatprep.subr.bf16.mxu1 %v7097_v36 }
 0x7f9   : > { %6573 = vmatmul.mubr.bf16.vlgmr.msra.gmra.mrb[48].mxu1 %v3421_v27  ;;  %v3774_v27 = vld [vmem:[%s7825_s8 + $0x8] sm:$0xff] }
 0x7fa   : > { %6607 = vmatpush3.bf16.msra.mxu1 %v7097_v36  ;;  %6622 = vmatprep.mubr.bf16.mxu1 %v7747_v39  ;;  %v7096_v36 = vld [vmem:[#allocation2 + $0x6f8] sm:$0xff]  }
 0x7fb   : > { %6608 = vmatprep.subr.bf16.mxu1 %v7098_v37 }
 0x7fe   : > { %6609 = vmatpush3.bf16.msra.mxu1 %v7098_v37  ;;  %v7099_v37 = vld [vmem:[#allocation2 + $0x740] sm:$0xff]  }
 0x7ff   : > { %6610 = vmatprep.subr.bf16.mxu1 %v7100_v40 }
 0x802   : > { %6611 = vmatpush3.bf16.msra.mxu1 %v7100_v40  ;;  %v7105_v40 = vld [vmem:[#allocation2 + $0x758] sm:$0xff]  }
 0x803   : > { %6612 = vmatprep.subr.bf16.mxu1 %v7102_v41 }
 0x806   : > { %6613 = vmatpush3.bf16.msra.mxu1 %v7102_v41  ;;  %v7107_v41 = vld [vmem:[#allocation2 + $0x760] sm:$0xff]  }
 0x807   : > { %6614 = vmatprep.subr.bf16.mxu1 %v7104_v42 }
 0x80a   : > { %6615 = vmatpush3.bf16.msra.mxu1 %v7104_v42  ;;  %v7109_v42 = vld [vmem:[#allocation2 + $0x768] sm:$0xff]  }
 0x80b   : > { %6616 = vmatprep.subr.bf16.mxu1 %v7106_v43 }
 0x80e   : > { %6617 = vmatpush3.bf16.msra.mxu1 %v7106_v43  ;;  %v7111_v43 = vld [vmem:[#allocation2 + $0x770] sm:$0xff]  }
 0x80f   : > { %6618 = vmatprep.subr.bf16.mxu1 %v7108_v44 }
 0x812   : > { %6619 = vmatpush3.bf16.msra.mxu1 %v7108_v44  ;;  %v7112_v44 = vld [vmem:[#allocation2 + $0x778] sm:$0xff]  }
 0x813   : > { %6620 = vmatprep.subr.bf16.mxu1 %v7110_v45 }
 0x816   : > { %6621 = vmatpush3.bf16.msra.mxu1 %v7110_v45  ;;  %v7117_v45 = vld [vmem:[#allocation2 + $0x808] sm:$0xff]  }
 0x817   : > { %6646 = vmatprep.subr.bf16.mxu1 %v7113_v49 }
 0x819   : > { %6623 = vmatmul.mubr.bf16.vlgmr.msra.gmra.mrb[52].mxu1 %v7750_v48 }
 0x81a   : > { %6647 = vmatpush3.bf16.msra.mxu1 %v7113_v49  ;;  %v7123_v49 = vld [vmem:[#allocation2 + $0x820] sm:$0xff]  }
 0x81b   : > { %6648 = vmatprep.subr.bf16.mxu1 %v7114_v50 }
 0x81e   : > { %6649 = vmatpush3.bf16.msra.mxu1 %v7114_v50  ;;  %v7125_v50 = vld [vmem:[#allocation2 + $0x828] sm:$0xff]  }
 0x81f   : > { %6650 = vmatprep.subr.bf16.mxu1 %v7116_v51 }
 0x822   : > { %6651 = vmatpush3.bf16.msra.mxu1 %v7116_v51  ;;  %v7127_v51 = vld [vmem:[#allocation2 + $0x830] sm:$0xff]  }
 0x823   : > { %6652 = vmatprep.subr.bf16.mxu1 %v7118_v52 }
 0x826   : > { %6653 = vmatpush3.bf16.msra.mxu1 %v7118_v52  ;;  %v7126_v52 = vld [vmem:[#allocation2 + $0x7b8] sm:$0xff]  }
 0x827   : > { %6654 = vmatprep.subr.bf16.mxu1 %v7120_v53 }
 0x82a   : > { %6655 = vmatpush3.bf16.msra.mxu1 %v7120_v53  ;;  %v7128_v53 = vld [vmem:[#allocation2 + $0x7c0] sm:$0xff]  }
 0x82b   : > { %6656 = vmatprep.subr.bf16.mxu1 %v7122_v59 }
 0x82e   : > { %6657 = vmatpush3.bf16.msra.mxu1 %v7122_v59 }
 0x82f   : > { %6658 = vmatprep.subr.bf16.mxu1 %v7124_v5 }
 0x832   : > { %6659 = vmatpush3.bf16.msra.mxu1 %v7124_v5 }
 0x833   : > { %6660 = vmatprep.subr.bf16.mxu1 %v7126_v52 }
 0x836   : > { %6661 = vmatpush3.bf16.msra.mxu1 %v7126_v52 }
 0x837   : > { %6666 = vmatprep.subr.bf16.mxu1 %v7128_v53 }
 0x8ac   : > { %v3520_v54 = vpop.f32.mrb[44].mxu1  ;;  %v3625_v55 = vpop.f32.mrb[48].mxu0 }
 0x8ad   : > { %v3739_v56 = vrot.slane %v3520_v54, 7  ;;  %v6534_v57 = vpop.f32.mrb[45].mxu1  ;;  %v6554_v58 = vpop.f32.mrb[49].mxu0 }
 0x8ae   : > { %v3523_v60 = vpop.f32.mrb[46].mxu1  ;;  %v3628_v61 = vpop.f32.mrb[50].mxu0 }
 0x8af   : > { %v3744_v62 = vsel %vm887_vm3, 0.0, %v3739_v56  ;;  %v3740_v63 = vrot.slane %v3523_v60, 7  ;;  %v6535_v1 = vpop.f32.mrb[47].mxu1  ;;  %v6555_v2 = vpop.f32.mrb[51].mxu0  ;;  %v7130_v60 = vld [vmem:[#allocation2 + $0x7c8] sm:$0xff]  }
 0x8b0   : > { %v3745_v3 = vadd.f32 %v3744_v62, %v3625_v55  ;;  %v7132_v62 = vld [vmem:[#allocation2 + $0x7d8] sm:$0xff]   ;;  %v7134_v1 = vld [vmem:[#allocation2 + $0x7e8] sm:$0xff]   ;;  %v7135_v2 = vld [vmem:[#allocation2 + $0x7f0] sm:$0xff]  }
 0x8b1   : > { %v3741_v4 = vsel %vm887_vm3, %v3739_v56, %v3740_v63  ;;  %v7133_v63 = vld [vmem:[#allocation2 + $0x7e0] sm:$0xff]  }
 0x8b2   : > { %v3746_v6 = vadd.f32 %v3741_v4, %v3628_v61  ;;  %v7131_v61 = vld [vmem:[#allocation2 + $0x7d0] sm:$0xff]  }
 0x8cc   : > { %v3730_v7 = vpop.f32.mrb[48].mxu1 }
 0x8cd   : > { %v6574_v8 = vpop.f32.mrb[49].mxu1  ;;  %v3749_v10 = vrot.slane %v3730_v7, 1 }
 0x8ce   : > { %v3733_v9 = vpop.f32.mrb[50].mxu1 }
 0x8cf   : > { %v3750_v11 = vrot.slane %v3733_v9, 1  ;;  %v6575_v12 = vpop.f32.mrb[51].mxu1 }
 0x8d1   : > { %v3751_v13 = vsel %vm1970_vm7, %v3749_v10, %v3750_v11  ;;  %v3754_v14 = vsel %vm1970_vm7, %v3750_v11, 0.0 }
 0x8d2   : > { %v3755_v16 = vadd.f32 %v3751_v13, %v3745_v3  ;;  %v3756_v17 = vadd.f32 %v3754_v14, %v3746_v6  ;;  %v7136_v3 = vld [vmem:[#allocation2 + $0x7f8] sm:$0xff]  }
 0x8d4   : > { %v3762_v19 = vmul.f32 %v5569_v15, %v3755_v16  ;;  %v3763_v20 = vmul.f32 %v5569_v15, %v3756_v17 }
 0x8d6   : > { %v3769_v21 = vadd.f32 %v5570_v18, %v3762_v19  ;;  %v3770_v22 = vadd.f32 %v5570_v18, %v3763_v20 }
 0x8d8   : > { %v3771_v23 = vmax.f32 %v3769_v21, 0.0  ;;  %v3772_v24 = vmax.f32 %v3770_v22, 0.0 }
 0x8da   : > { %v6786_v25 = vpack.c.bf16 %v3772_v24, %v3771_v23 }
 0x8dc   : > { %6787 = vmatprep.subr.bf16.mxu0 %v6786_v25 }
 0x8dd   : > { %6789 = vmatpush3.bf16.msra.mxu0 %v6786_v25 }
 0x8de   : > { %6586 = vmatprep.subr.bf16.mxu0 %v7089_v26 }
 0x8e0   : > { %6581 = vmatmul.mubr.msk.f32.vlgmr.msra.gmra.mrb[38].mxu0 %vm3777_vm9, %v3774_v27 }
 0x8e1   : > { %6583 = vmatprep.mubr.msk.f32.mxu0 %vm3777_vm9, %v3775_v28  ;;  %6587 = vmatpush3.bf16.msra.mxu0 %v7089_v26 }
 0x8e2   : > { %6588 = vmatprep.subr.bf16.mxu0 %v7090_v29 }
 0x8e4   : > { %6584 = vmatmul.mubr.msk.f32.gmra.mrb[52].mxu0 %vm3777_vm9, %v3776_v30 }
 0x8e5   : > { %6589 = vmatpush3.bf16.msra.mxu0 %v7090_v29  ;;  %6602 = vmatprep.mubr.bf16.mxu0 %v7747_v39 }
 0x8e6   : > { %6590 = vmatprep.subr.bf16.mxu0 %v7091_v31 }
 0x8e9   : > { %6591 = vmatpush3.bf16.msra.mxu0 %v7091_v31 }
 0x8ea   : > { %6592 = vmatprep.subr.bf16.mxu0 %v7092_v32 }
 0x8ed   : > { %6593 = vmatpush3.bf16.msra.mxu0 %v7092_v32  ;;  %v7137_v32 = vld [vmem:[#allocation2 + $0x840] sm:$0xff]  }
 0x8ee   : > { %6594 = vmatprep.subr.bf16.mxu0 %v7093_v33 }
 0x8f1   : > { %6595 = vmatpush3.bf16.msra.mxu0 %v7093_v33  ;;  %v7138_v33 = vld [vmem:[#allocation2 + $0x880] sm:$0xff]  }
 0x8f2   : > { %6596 = vmatprep.subr.bf16.mxu0 %v7094_v34 }
 0x8f5   : > { %6597 = vmatpush3.bf16.msra.mxu0 %v7094_v34  ;;  %v7139_v34 = vld [vmem:[#allocation2 + $0x848] sm:$0xff]  }
 0x8f6   : > { %6598 = vmatprep.subr.bf16.mxu0 %v7095_v35 }
 0x8f9   : > { %6599 = vmatpush3.bf16.msra.mxu0 %v7095_v35  ;;  %v7140_v35 = vld [vmem:[#allocation2 + $0x888] sm:$0xff]  }
 0x8fa   : > { %6600 = vmatprep.subr.bf16.mxu0 %v7096_v36 }
 0x8fd   : > { %6601 = vmatpush3.bf16.msra.mxu0 %v7096_v36  ;;  %v7141_v36 = vld [vmem:[#allocation2 + $0x850] sm:$0xff]  }
 0x8fe   : > { %6626 = vmatprep.subr.bf16.mxu0 %v7099_v37 }
 0x900   : > { %6603 = vmatmul.mubr.bf16.vlgmr.msra.gmra.mrb[56].mxu0 %v7750_v48 }
 0x901   : > { %6627 = vmatpush3.bf16.msra.mxu0 %v7099_v37  ;;  %6642 = vmatprep.mubr.bf16.mxu0 %v7747_v39  ;;  %v7115_v39 = vld [vmem:[#allocation2 + $0x800] sm:$0xff]   ;;  %v7142_v37 = vld [vmem:[#allocation2 + $0x890] sm:$0xff]  }
 0x902   : > { %6628 = vmatprep.subr.bf16.mxu0 %v7101_v0 }
 0x905   : > { %6629 = vmatpush3.bf16.msra.mxu0 %v7101_v0  ;;  %v7143_v0 = vld [vmem:[#allocation2 + $0x858] sm:$0xff]  }
 0x906   : > { %6630 = vmatprep.subr.bf16.mxu0 %v7103_v38 }
 0x909   : > { %6631 = vmatpush3.bf16.msra.mxu0 %v7103_v38  ;;  %v7144_v38 = vld [vmem:[#allocation2 + $0x898] sm:$0xff]  }
 0x90a   : > { %6632 = vmatprep.subr.bf16.mxu0 %v7105_v40 }
 0x90d   : > { %6633 = vmatpush3.bf16.msra.mxu0 %v7105_v40  ;;  %v7145_v40 = vld [vmem:[#allocation2 + $0x860] sm:$0xff]  }
 0x90e   : > { %6634 = vmatprep.subr.bf16.mxu0 %v7107_v41 }
 0x911   : > { %6635 = vmatpush3.bf16.msra.mxu0 %v7107_v41  ;;  %v7146_v41 = vld [vmem:[#allocation2 + $0x8a0] sm:$0xff]  }
 0x912   : > { %6636 = vmatprep.subr.bf16.mxu0 %v7109_v42 }
 0x915   : > { %6637 = vmatpush3.bf16.msra.mxu0 %v7109_v42  ;;  %v7147_v42 = vld [vmem:[#allocation2 + $0x868] sm:$0xff]  }
 0x916   : > { %6638 = vmatprep.subr.bf16.mxu0 %v7111_v43 }
 0x919   : > { %6639 = vmatpush3.bf16.msra.mxu0 %v7111_v43  ;;  %v7148_v43 = vld [vmem:[#allocation2 + $0x8a8] sm:$0xff]  }
 0x91a   : > { %6640 = vmatprep.subr.bf16.mxu0 %v7112_v44 }
 0x91d   : > { %6641 = vmatpush3.bf16.msra.mxu0 %v7112_v44  ;;  %v7149_v44 = vld [vmem:[#allocation2 + $0x870] sm:$0xff]  }
 0x91e   : > { %6686 = vmatprep.subr.bf16.mxu0 %v7115_v39 }
 0x920   : > { %6643 = vmatmul.mubr.bf16.vlgmr.msra.gmra.mrb[60].mxu0 %v7750_v48  ;;  %v7129_v48 = vld [vmem:[#allocation2 + $0x838] sm:$0xff]  }
 0x921   : > { %6687 = vmatpush3.bf16.msra.mxu0 %v7115_v39  ;;  %v7150_v39 = vld [vmem:[#allocation2 + $0x8b0] sm:$0xff]  }
 0x922   : > { %6688 = vmatprep.subr.bf16.mxu0 %v7117_v45 }
 0x925   : > { %6689 = vmatpush3.bf16.msra.mxu0 %v7117_v45  ;;  %v7151_v45 = vld [vmem:[#allocation2 + $0x878] sm:$0xff]  }
 0x926   : > { %6690 = vmatprep.subr.bf16.mxu0 %v7119_v46 }
 0x929   : > { %6691 = vmatpush3.bf16.msra.mxu0 %v7119_v46  ;;  %v7152_v46 = vld [vmem:[#allocation2 + $0x8b8] sm:$0xff]  }
 0x92a   : > { %6692 = vmatprep.subr.bf16.mxu0 %v7121_v47 }
 0x92d   : > { %6693 = vmatpush3.bf16.msra.mxu0 %v7121_v47  ;;  %v7153_v47 = vld [vmem:[#allocation2 + $0x8c0] sm:$0xff]  }
 0x92e   : > { %6694 = vmatprep.subr.bf16.mxu0 %v7123_v49 }
 0x931   : > { %6695 = vmatpush3.bf16.msra.mxu0 %v7123_v49 }
 0x932   : > { %6696 = vmatprep.subr.bf16.mxu0 %v7125_v50 }
 0x935   : > { %6697 = vmatpush3.bf16.msra.mxu0 %v7125_v50 }
 0x936   : > { %6698 = vmatprep.subr.bf16.mxu0 %v7127_v51 }
 0x939   : > { %6699 = vmatpush3.bf16.msra.mxu0 %v7127_v51 }
 0x93a   : > { %6700 = vmatprep.subr.bf16.mxu0 %v7129_v48 }
 0x93d   : > { %6701 = vmatpush3.bf16.msra.mxu0 %v7129_v48 }
 0x93e   : > { %6706 = vmatprep.subr.bf16.mxu0 %v7137_v32 }
 0x9b3   : > { %v6582_v54 = vpop.f32.mrb[38].mxu0 }
 0x9b4   : > { %v3856_v55 = vpop.f32.mrb[39].mxu0 }
 0x9b5   : > { %v3875_v56 = vpack.c.bf16 %v6582_v54, %v3856_v55 }
 0x9b7   : > { %v6585_v57 = vpop.f32.mrb[52].mxu0  ;;  %6662 = vmatprep.mubr.bf16.mxu1 %v3875_v56  ;;  %6702 = vmatprep.mubr.bf16.mxu0 %v3875_v56 }
 0x9b8   : > { %v3866_v58 = vpop.f32.mrb[53].mxu0 }
 0x9b9   : > { %v3876_v59 = vpack.c.bf16 %v6585_v57, %v3866_v58 }
 0x9bb   : > { %6663 = vmatmul.mubr.bf16.vlgmr.msra.gmra.mrb[56].mxu1 %v3876_v59  ;;  %6703 = vmatmul.mubr.bf16.vlgmr.msra.gmra.mrb[64].mxu0 %v3876_v59 }
 0x9bc   : > { %6667 = vmatpush3.bf16.msra.mxu1 %v7128_v53  ;;  %6682 = vmatprep.mubr.bf16.mxu1 %v3875_v56 }
 0x9bd   : > { %6668 = vmatprep.subr.bf16.mxu1 %v7130_v60  ;;  %6707 = vmatpush3.bf16.msra.mxu0 %v7137_v32 }
 0x9be   : > { %6708 = vmatprep.subr.bf16.mxu0 %v7139_v34 }
 0x9c0   : > { %6669 = vmatpush3.bf16.msra.mxu1 %v7130_v60 }
 0x9c1   : > { %6670 = vmatprep.subr.bf16.mxu1 %v7131_v61  ;;  %6709 = vmatpush3.bf16.msra.mxu0 %v7139_v34 }
 0x9c2   : > { %6710 = vmatprep.subr.bf16.mxu0 %v7141_v36 }
 0x9c4   : > { %6671 = vmatpush3.bf16.msra.mxu1 %v7131_v61 }
 0x9c5   : > { %6672 = vmatprep.subr.bf16.mxu1 %v7132_v62  ;;  %6711 = vmatpush3.bf16.msra.mxu0 %v7141_v36 }
 0x9c6   : > { %6712 = vmatprep.subr.bf16.mxu0 %v7143_v0 }
 0x9c8   : > { %6673 = vmatpush3.bf16.msra.mxu1 %v7132_v62 }
 0x9c9   : > { %6674 = vmatprep.subr.bf16.mxu1 %v7133_v63  ;;  %6713 = vmatpush3.bf16.msra.mxu0 %v7143_v0 }
 0x9ca   : > { %6714 = vmatprep.subr.bf16.mxu0 %v7145_v40 }
 0x9cc   : > { %6675 = vmatpush3.bf16.msra.mxu1 %v7133_v63 }
 0x9cd   : > { %6676 = vmatprep.subr.bf16.mxu1 %v7134_v1  ;;  %6715 = vmatpush3.bf16.msra.mxu0 %v7145_v40 }
 0x9ce   : > { %6716 = vmatprep.subr.bf16.mxu0 %v7147_v42 }
 0x9d0   : > { %6677 = vmatpush3.bf16.msra.mxu1 %v7134_v1 }
 0x9d1   : > { %6678 = vmatprep.subr.bf16.mxu1 %v7135_v2  ;;  %6717 = vmatpush3.bf16.msra.mxu0 %v7147_v42  ;;  %v7155_v42 = vld [vmem:[#allocation2 + $0x8d0] sm:$0xff]  }
 0x9d2   : > { %6718 = vmatprep.subr.bf16.mxu0 %v7149_v44 }
 0x9d3   : > { %v6604_v4 = vpop.f32.mrb[56].mxu0 }
 0x9d4   : > { %6679 = vmatpush3.bf16.msra.mxu1 %v7135_v2  ;;  %v3981_v5 = vpop.f32.mrb[57].mxu0  ;;  %v4229_v8 = vrot.slane %v6604_v4, 7 }
 0x9d5   : > { %6680 = vmatprep.subr.bf16.mxu1 %v7136_v3  ;;  %v6605_v6 = vpop.f32.mrb[58].mxu0  ;;  %v4226_v9 = vrot.slane %v3981_v5, 7  ;;  %6719 = vmatpush3.bf16.msra.mxu0 %v7149_v44  ;;  %v7157_v44 = vld [vmem:[#allocation2 + $0x8e0] sm:$0xff]  }
 0x9d6   : > { %v3984_v7 = vpop.f32.mrb[59].mxu0  ;;  %v4231_v10 = vrot.slane %v6605_v6, 7  ;;  %6720 = vmatprep.subr.bf16.mxu0 %v7151_v45 }
 0x9d7   : > { %v4227_v11 = vrot.slane %v3984_v7, 7  ;;  %v4237_v22 = vsel %vm887_vm3, 0.0, %v4226_v9 }
 0x9d8   : > { %6681 = vmatpush3.bf16.msra.mxu1 %v7136_v3  ;;  %v4232_v14 = vsel %vm887_vm3, %v4229_v8, %v4231_v10 }
 0x9d9   : > { %v4230_v13 = vsel %vm887_vm3, %v4227_v11, %v4229_v8  ;;  %v4228_v15 = vsel %vm887_vm3, %v4226_v9, %v4227_v11  ;;  %6726 = vmatprep.subr.bf16.mxu1 %v7138_v33  ;;  %6721 = vmatpush3.bf16.msra.mxu0 %v7151_v45  ;;  %v7159_v45 = vld [vmem:[#allocation2 + $0x8f0] sm:$0xff]  }
 0x9da   : > { %6746 = vmatprep.subr.bf16.mxu0 %v7153_v47 }
 0x9db   : > { %6683 = vmatmul.mubr.bf16.vlgmr.msra.gmra.mrb[52].mxu1 %v3876_v59 }
 0x9dc   : > { %6727 = vmatpush3.bf16.msra.mxu1 %v7138_v33 }
 0x9dd   : > { %6728 = vmatprep.subr.bf16.mxu1 %v7140_v35 }
 0x9e0   : > { %6729 = vmatpush3.bf16.msra.mxu1 %v7140_v35 }
 0x9e1   : > { %6730 = vmatprep.subr.bf16.mxu1 %v7142_v37 }
 0x9e4   : > { %6731 = vmatpush3.bf16.msra.mxu1 %v7142_v37 }
 0x9e5   : > { %6732 = vmatprep.subr.bf16.mxu1 %v7144_v38 }
 0x9e8   : > { %6733 = vmatpush3.bf16.msra.mxu1 %v7144_v38 }
 0x9e9   : > { %6734 = vmatprep.subr.bf16.mxu1 %v7146_v41 }
 0x9ec   : > { %6735 = vmatpush3.bf16.msra.mxu1 %v7146_v41  ;;  %v7154_v41 = vld [vmem:[#allocation2 + $0x8c8] sm:$0xff]  }
 0x9ed   : > { %6736 = vmatprep.subr.bf16.mxu1 %v7148_v43 }
 0x9f0   : > { %6737 = vmatpush3.bf16.msra.mxu1 %v7148_v43  ;;  %v7156_v43 = vld [vmem:[#allocation2 + $0x8d8] sm:$0xff]  }
 0x9f1   : > { %6738 = vmatprep.subr.bf16.mxu1 %v7150_v39 }
 0x9f3   : > { %v6644_v12 = vpop.f32.mrb[60].mxu0 }
 0x9f4   : > { %v4249_v16 = vrot.slane %v6644_v12, 1  ;;  %v4207_v17 = vpop.f32.mrb[61].mxu0  ;;  %6739 = vmatpush3.bf16.msra.mxu1 %v7150_v39  ;;  %v7158_v39 = vld [vmem:[#allocation2 + $0x8e8] sm:$0xff]  }
 0x9f5   : > { %v4246_v18 = vrot.slane %v4207_v17, 1  ;;  %v6645_v19 = vpop.f32.mrb[62].mxu0  ;;  %6740 = vmatprep.subr.bf16.mxu1 %v7152_v46 }
 0x9f6   : > { %v4251_v20 = vrot.slane %v6645_v19, 1  ;;  %v4210_v21 = vpop.f32.mrb[63].mxu0 }
 0x9f7   : > { %v4247_v23 = vrot.slane %v4210_v21, 1 }
 0x9f8   : > { %v4257_v24 = vsel %vm1970_vm7, %v4251_v20, 0.0  ;;  %v4252_v25 = vsel %vm1970_vm7, %v4249_v16, %v4251_v20  ;;  %6741 = vmatpush3.bf16.msra.mxu1 %v7152_v46  ;;  %v7160_v46 = vld [vmem:[#allocation2 + $0x8f8] sm:$0xff]  }
 0x9f9   : > { %v7779_v26 = vadd.f32 %v4252_v25, %v4230_v13  ;;  %v4248_v27 = vsel %vm1970_vm7, %v4246_v18, %v4247_v23  ;;  %v7782_v28 = vadd.f32 %v4257_v24, %v4232_v14  ;;  %v4250_v29 = vsel %vm1970_vm7, %v4247_v23, %v4249_v16  ;;  %v5623_v16 = vld [vmem:[#allocation4 + $0x18] ss:$0 sm:$0xff] }
 0x9fa   : > { %v7785_v30 = vadd.f32 %v4248_v27, %v4237_v22  ;;  %v7787_v31 = vadd.f32 %v4250_v29, %v4228_v15  ;;  %v5624_v22 = vld [vmem:[#allocation4 + $0x19] ss:$0 sm:$0xff] }
 0xa8e   : > { %v6664_v49 = vpop.f32.mrb[56].mxu1  ;;  %v6704_v50 = vpop.f32.mrb[64].mxu0 }
 0xa8f   : > { %v4360_v51 = vpop.f32.mrb[57].mxu1  ;;  %v4586_v52 = vpop.f32.mrb[65].mxu0  ;;  %v4608_v54 = vrot.slane %v6664_v49, 7  ;;  %v4628_v55 = vrot.slane %v6704_v50, 1  ;;  %v7162_v49 = vld [vmem:[#allocation2 + $0x908] sm:$0xff]   ;;  %v7163_v50 = vld [vmem:[#allocation2 + $0x910] sm:$0xff]  }
 0xa90   : > { %v6665_v48 = vpop.f32.mrb[58].mxu1  ;;  %v6705_v53 = vpop.f32.mrb[66].mxu0  ;;  %v4605_v60 = vrot.slane %v4360_v51, 7  ;;  %v4625_v61 = vrot.slane %v4586_v52, 1  ;;  %v7164_v51 = vld [vmem:[#allocation2 + $0x918] sm:$0xff]   ;;  %v7165_v52 = vld [vmem:[#allocation2 + $0x920] sm:$0xff]  }
 0xa91   : > { %v4610_v56 = vrot.slane %v6665_v48, 7  ;;  %v4630_v57 = vrot.slane %v6705_v53, 1  ;;  %v4363_v58 = vpop.f32.mrb[59].mxu1  ;;  %v4589_v59 = vpop.f32.mrb[67].mxu0  ;;  %v7166_v48 = vld [vmem:[#allocation2 + $0x928] sm:$0xff]   ;;  %v7167_v53 = vld [vmem:[#allocation2 + $0x930] sm:$0xff]  }
 0xa92   : > { %v4606_v62 = vrot.slane %v4363_v58, 7  ;;  %v4626_v63 = vrot.slane %v4589_v59, 1  ;;  %v4616_v12 = vsel %vm887_vm3, 0.0, %v4605_v60 }
 0xa93   : > { %v4631_v1 = vsel %vm1970_vm7, %v4628_v55, %v4630_v57  ;;  %v4611_v2 = vsel %vm887_vm3, %v4608_v54, %v4610_v56  ;;  %v4636_v21 = vsel %vm1970_vm7, %v4630_v57, 0.0 }
 0xa94   : > { %v4627_v3 = vsel %vm1970_vm7, %v4625_v61, %v4626_v63  ;;  %v4629_v4 = vsel %vm1970_vm7, %v4626_v63, %v4628_v55  ;;  %v4609_v5 = vsel %vm887_vm3, %v4606_v62, %v4608_v54  ;;  %v4607_v6 = vsel %vm887_vm3, %v4605_v60, %v4606_v62  ;;  %v7168_v54 = vld [vmem:[#allocation2 + $0x938] sm:$0xff]  }
 0xaae   : > { %v6684_v7 = vpop.f32.mrb[52].mxu1 }
 0xaaf   : > { %v6807_v8 = vadd.f32 %v7779_v26, %v6684_v7  ;;  %v4473_v9 = vpop.f32.mrb[53].mxu1 }
 0xab0   : > { %v6811_v10 = vadd.f32 %v7785_v30, %v4473_v9  ;;  %v6685_v11 = vpop.f32.mrb[54].mxu1 }
 0xab1   : > { %v6808_v13 = vadd.f32 %v6807_v8, %v4609_v5  ;;  %v6815_v14 = vadd.f32 %v7782_v28, %v6685_v11  ;;  %v4476_v15 = vpop.f32.mrb[55].mxu1 }
 0xab2   : > { %v6812_v17 = vadd.f32 %v6811_v10, %v4616_v12  ;;  %v6819_v18 = vadd.f32 %v7787_v31, %v4476_v15 }
 0xab3   : > { %v6809_v19 = vadd.f32 %v6808_v13, %v4631_v1  ;;  %v6816_v20 = vadd.f32 %v6815_v14, %v4611_v2 }
 0xab4   : > { %v6813_v23 = vadd.f32 %v6812_v17, %v4627_v3  ;;  %v6820_v24 = vadd.f32 %v6819_v18, %v4607_v6 }
 0xab5   : > { %v4652_v25 = vmul.f32 %v6809_v19, %v5623_v16  ;;  %v6817_v26 = vadd.f32 %v6816_v20, %v4636_v21 }
 0xab6   : > { %v4650_v27 = vmul.f32 %v6813_v23, %v5623_v16  ;;  %v6821_v29 = vadd.f32 %v6820_v24, %v4629_v4 }
 0xab7   : > { %v4661_v30 = vadd.f32 %v5624_v22, %v4652_v25  ;;  %v4653_v32 = vmul.f32 %v6817_v26, %v5623_v16 }
 0xab8   : > { %v4651_v33 = vmul.f32 %v6821_v29, %v5623_v16  ;;  %v4659_v28 = vadd.f32 %v5624_v22, %v4650_v27  ;;  %v5650_v27 = vld [vmem:[#allocation4 + $0x1b] ss:$0 sm:$0xff] }
 0xab9   : > { %v4662_v34 = vadd.f32 %v5624_v22, %v4653_v32  ;;  %v4665_v36 = vmax.f32 %v4661_v30, 0.0 }
 0xaba   : > { %v4660_v35 = vadd.f32 %v5624_v22, %v4651_v33  ;;  %v4663_v31 = vmax.f32 %v4659_v28, 0.0  ;;  %v5649_v22 = vld [vmem:[#allocation4 + $0x1a] ss:$0 sm:$0xff] }
 0xabb   : > { %v4666_v37 = vmax.f32 %v4662_v34, 0.0 }
 0xabc   : > { %v4664_v0 = vmax.f32 %v4660_v35, 0.0 }
 0xabd   : > { %v4668_v38 = vpack.c.bf16 %v4666_v37, %v4665_v36 }
 0xabe   : > { %v4667_v40 = vpack.c.bf16 %v4664_v0, %v4663_v31 }
 0xac0   : > { %6722 = vmatprep.mubr.bf16.mxu0 %v4667_v40  ;;  %6742 = vmatprep.mubr.bf16.mxu1 %v4667_v40 }
 0xac1   : > { %6723 = vmatmul.mubr.bf16.vlgmr.msra.gmra.mrb[68].mxu0 %v4668_v38  ;;  %6743 = vmatmul.mubr.bf16.vlgmr.msra.gmra.mrb[60].mxu1 %v4668_v38 }
 0xac2   : > { %6747 = vmatpush3.bf16.msra.mxu0 %v7153_v47  ;;  %6762 = vmatprep.mubr.bf16.mxu0 %v4667_v40  ;;  %v7161_v47 = vld [vmem:[#allocation2 + $0x900] sm:$0xff]  }
 0xac3   : > { %6748 = vmatprep.subr.bf16.mxu0 %v7154_v41  ;;  %6766 = vmatprep.subr.bf16.mxu1 %v7161_v47 }
 0xac4   : > { %6767 = vmatpush3.bf16.msra.mxu1 %v7161_v47 }
 0xac5   : > { %6768 = vmatprep.subr.bf16.mxu1 %v7162_v49 }
 0xac6   : > { %6749 = vmatpush3.bf16.msra.mxu0 %v7154_v41 }
 0xac7   : > { %6750 = vmatprep.subr.bf16.mxu0 %v7155_v42 }
 0xac8   : > { %6769 = vmatpush3.bf16.msra.mxu1 %v7162_v49 }
 0xac9   : > { %6770 = vmatprep.subr.bf16.mxu1 %v7163_v50 }
 0xaca   : > { %6751 = vmatpush3.bf16.msra.mxu0 %v7155_v42 }
 0xacb   : > { %6752 = vmatprep.subr.bf16.mxu0 %v7156_v43 }
 0xacc   : > { %6771 = vmatpush3.bf16.msra.mxu1 %v7163_v50 }
 0xacd   : > { %6772 = vmatprep.subr.bf16.mxu1 %v7164_v51 }
 0xace   : > { %6753 = vmatpush3.bf16.msra.mxu0 %v7156_v43 }
 0xacf   : > { %6754 = vmatprep.subr.bf16.mxu0 %v7157_v44 }
 0xad0   : > { %6773 = vmatpush3.bf16.msra.mxu1 %v7164_v51 }
 0xad1   : > { %6774 = vmatprep.subr.bf16.mxu1 %v7165_v52 }
 0xad2   : > { %6755 = vmatpush3.bf16.msra.mxu0 %v7157_v44  ;;  %v5651_v44 = vld [vmem:[#allocation4 + $0x20] ss:$0 sm:$0xff] }
 0xad3   : > { %6756 = vmatprep.subr.bf16.mxu0 %v7158_v39 }
 0xad4   : > { %6775 = vmatpush3.bf16.msra.mxu1 %v7165_v52 }
 0xad5   : > { %6776 = vmatprep.subr.bf16.mxu1 %v7166_v48 }
 0xad6   : > { %6757 = vmatpush3.bf16.msra.mxu0 %v7158_v39 }
 0xad7   : > { %6758 = vmatprep.subr.bf16.mxu0 %v7159_v45 }
 0xad8   : > { %6777 = vmatpush3.bf16.msra.mxu1 %v7166_v48 }
 0xad9   : > { %6778 = vmatprep.subr.bf16.mxu1 %v7167_v53 }
 0xada   : > { %6759 = vmatpush3.bf16.msra.mxu0 %v7159_v45 }
 0xadb   : > { %6760 = vmatprep.subr.bf16.mxu0 %v7160_v46 }
 0xadc   : > { %6779 = vmatpush3.bf16.msra.mxu1 %v7167_v53 }
 0xadd   : > { %6780 = vmatprep.subr.bf16.mxu1 %v7168_v54 }
 0xade   : > { %6761 = vmatpush3.bf16.msra.mxu0 %v7160_v46 }
 0xae0   : > { %6781 = vmatpush3.bf16.msra.mxu1 %v7168_v54 }
 0xae1   : > { %6763 = vmatmul.mubr.bf16.vlgmr.msra.gmra.mrb[72].mxu0 %v4668_v38 }
 0xb94   : > { %v6724_v55 = vpop.f32.mrb[68].mxu0  ;;  %v6744_v56 = vpop.f32.mrb[60].mxu1 }
 0xb95   : > { %v4767_v57 = vpop.f32.mrb[69].mxu0  ;;  %v4880_v58 = vpop.f32.mrb[61].mxu1  ;;  %v5015_v62 = vrot.slane %v6724_v55, 7 }
 0xb96   : > { %v5012_v59 = vrot.slane %v4767_v57, 7  ;;  %v6725_v60 = vpop.f32.mrb[70].mxu0  ;;  %v6745_v61 = vpop.f32.mrb[62].mxu1 }
 0xb97   : > { %v5017_v63 = vrot.slane %v6725_v60, 7  ;;  %v4770_v1 = vpop.f32.mrb[71].mxu0  ;;  %v4883_v2 = vpop.f32.mrb[63].mxu1 }
 0xb98   : > { %v5023_v3 = vsel %vm887_vm3, 0.0, %v5012_v59  ;;  %v5013_v4 = vrot.slane %v4770_v1, 7 }
 0xb99   : > { %v5024_v5 = vadd.f32 %v5023_v3, %v4880_v58  ;;  %v5018_v6 = vsel %vm887_vm3, %v5015_v62, %v5017_v63 }
 0xb9a   : > { %v5027_v7 = vadd.f32 %v6745_v61, %v5018_v6  ;;  %v5016_v8 = vsel %vm887_vm3, %v5013_v4, %v5015_v62  ;;  %v5014_v9 = vsel %vm887_vm3, %v5012_v59, %v5013_v4 }
 0xb9b   : > { %v5026_v10 = vadd.f32 %v6744_v56, %v5016_v8  ;;  %v5025_v11 = vadd.f32 %v5014_v9, %v4883_v2 }
 0xbb4   : > { %v6764_v12 = vpop.f32.mrb[72].mxu0 }
 0xbb5   : > { %v4993_v13 = vpop.f32.mrb[73].mxu0  ;;  %v5035_v15 = vrot.slane %v6764_v12, 1 }
 0xbb6   : > { %v6765_v14 = vpop.f32.mrb[74].mxu0  ;;  %v5032_v18 = vrot.slane %v4993_v13, 1 }
 0xbb7   : > { %v5037_v16 = vrot.slane %v6765_v14, 1  ;;  %v4996_v17 = vpop.f32.mrb[75].mxu0 }
 0xbb8   : > { %v5033_v19 = vrot.slane %v4996_v17, 1 }
 0xbb9   : > { %v5038_v20 = vsel %vm1970_vm7, %v5035_v15, %v5037_v16  ;;  %v5043_v21 = vsel %vm1970_vm7, %v5037_v16, 0.0 }
 0xbba   : > { %v5046_v23 = vadd.f32 %v5038_v20, %v5026_v10  ;;  %v5047_v24 = vadd.f32 %v5043_v21, %v5027_v7  ;;  %v5034_v25 = vsel %vm1970_vm7, %v5032_v18, %v5033_v19  ;;  %v5036_v26 = vsel %vm1970_vm7, %v5033_v19, %v5035_v15 }
 0xbbb   : > { %v5044_v29 = vadd.f32 %v5034_v25, %v5024_v5  ;;  %v5045_v30 = vadd.f32 %v5036_v26, %v5025_v11 }
 0xbbc   : > { %v5055_v32 = vmul.f32 %v5649_v22, %v5046_v23  ;;  %v5056_v33 = vmul.f32 %v5649_v22, %v5047_v24 }
 0xbbd   : > { %v5053_v28 = vmul.f32 %v5649_v22, %v5044_v29  ;;  %v5054_v34 = vmul.f32 %v5649_v22, %v5045_v30 }
 0xbbe   : > { %v5065_v35 = vadd.f32 %v5650_v27, %v5056_v33  ;;  %v5064_v36 = vadd.f32 %v5650_v27, %v5055_v32 }
 0xbbf   : > { %v5062_v37 = vadd.f32 %v5650_v27, %v5053_v28  ;;  %v5063_v31 = vadd.f32 %v5650_v27, %v5054_v34 }
 0xbc0   : > { %v5069_v0 = vmax.f32 %v5065_v35, 0.0  ;;  %v5068_v38 = vmax.f32 %v5064_v36, 0.0 }
 0xbc1   : > { %v5066_v40 = vmax.f32 %v5062_v37, 0.0  ;;  %v5067_v41 = vmax.f32 %v5063_v31, 0.0 }
 0xbc2   : > { %v5071_v42 = vpack.c.bf16 %v5069_v0, %v5068_v38 }
 0xbc3   : > { %v5070_v43 = vpack.c.bf16 %v5067_v41, %v5066_v40 }
 0xbc5   : > { %6782 = vmatprep.mubr.bf16.mxu1 %v5070_v43 }
 0xbc6   : > { %6783 = vmatmul.mubr.bf16.vlgmr.msra.gmra.mrb[64].mxu1 %v5071_v42 }
 0xc99   : > { %v6784_v39 = vpop.f32.mrb[64].mxu1 }
 0xc9a   : > { %v5184_v45 = vadd.f32 %v6784_v39, %v5651_v44  ;;  %v5175_v46 = vpop.f32.mrb[65].mxu1 }
 0xc9b   : > { %v5176_v47 = vadd.f32 %v5651_v44, %v5175_v46  ;;  %v6785_v49 = vpop.f32.mrb[66].mxu1 }
 0xc9c   : > { %5192 = vst [vmem:[%s487_s18 + $0x10] sm:$0xff] %v5184_v45  ;;  %v5187_v50 = vadd.f32 %v6785_v49, %v5651_v44  ;;  %v5178_v51 = vpop.f32.mrb[67].mxu1 }
 0xc9d   : > { %5190 = vst [vmem:[%s487_s18] sm:$0xff] %v5176_v47  ;;  %v5179_v52 = vadd.f32 %v5651_v44, %v5178_v51 }
 0xc9e   : > { %5193 = vst [vmem:[%s487_s18 + $0x18] sm:$0xff] %v5187_v50 }
 0xc9f   : > { %5191 = vst [vmem:[%s487_s18 + $0x8] sm:$0xff] %v5179_v52 }
 0xca0 PF: > { %s23_s17 = sadd.s32 1, %s7239_s17  }
 0xca1   : > { %p20_p5 = scmp.ge.s32.totalorder %s23_s17, 4  }
 0xca3   :  { %22 = sbr.rel (!%p20_p5) target bundleno = 2 (0x2), region = 115 }
 0xcaa   :  { %5215 = vsyncpa [#allocation3], 1 }
 0xcab   :  { %5217 = vsyncpa [#allocation3 + $0x1], 1 }
 0xcac   :  { %5218 = vsyncpa [#allocation5], 1 }

</bundles_post_ra>
